<compile_context>
chip_gen: v7x
topology: tpu7x:2x2x1
jax: 0.10.0
libtpu: 0.0.40
codegen_flags: <defaults>
</compile_context>

<pallas_src>
import functools

import jax
import jax.numpy as jnp
from jax.experimental import pallas as pl
from jax.experimental.pallas import tpu as pltpu


# ----------------------------- kernel -----------------------------------------

def _layer_norm(x, gamma, beta, eps=1e-5):
    # PyTorch LayerNorm: biased variance over last dim, f32 math.
    mu = jnp.mean(x, axis=-1, keepdims=True)
    var = jnp.mean((x - mu) ** 2, axis=-1, keepdims=True)
    return (x - mu) * jax.lax.rsqrt(var + eps) * gamma + beta


def fused_gpt_kernel(x_ref, wqkv_ref, bqkv_ref, wo_ref, bo_ref,
                     g1_ref, b1_ref, wff1_ref, bff1_ref,
                     wff2_ref, bff2_ref, g2_ref, b2_ref,
                     lmw_ref, lmb_ref,
                     logits_ref, h_scr, *, num_heads):
    """Grid = (splits, L). The (B_s*T, E) activation slab stays resident in VMEM
    scratch across the layer axis while per-layer bf16 weights stream past; the
    lm_head matmul runs in the last-layer branch."""
    l = pl.program_id(1)

    bs, T, E = x_ref.shape                      # (B_s, T, E) block
    M = bs * T
    H = num_heads
    hd = E // H
    scale = 1.0 / float(hd) ** 0.5

    @pl.when(l == 0)
    def _():
        h_scr[...] = x_ref[...].astype(jnp.float32).reshape(M, E)

    h = h_scr[...]                              # (M, E) f32, resident across layers

    # --- self attention (no mask): QKV projection over all flattened rows ---
    qkv = jnp.dot(h.astype(jnp.bfloat16), wqkv_ref[0],
                  preferred_element_type=jnp.float32) + bqkv_ref[0]      # (M, 3E)

    # Per-sequence attention (static, tiny loop: bs <= 2; the score/context
    # einsums are far below MXU tile size and not on the critical path here).
    ctx_rows = []
    for b in range(bs):
        qkv_b = qkv[b * T:(b + 1) * T]                                   # (T, 3E)
        q = jnp.transpose(qkv_b[:, :E].reshape(T, H, hd), (1, 0, 2))     # (H, T, hd)
        k = jnp.transpose(qkv_b[:, E:2 * E].reshape(T, H, hd), (1, 0, 2))
        v = jnp.transpose(qkv_b[:, 2 * E:].reshape(T, H, hd), (1, 0, 2))

        s = jnp.einsum('hqd,hkd->hqk', q.astype(jnp.bfloat16),
                       k.astype(jnp.bfloat16),
                       preferred_element_type=jnp.float32) * scale       # (H, T, T)
        s = s - jnp.max(s, axis=-1, keepdims=True)
        p = jnp.exp(s)
        p = p * pl.reciprocal(jnp.sum(p, axis=-1, keepdims=True), approx=True)
        c = jnp.einsum('hqk,hkd->hqd', p.astype(jnp.bfloat16),
                       v.astype(jnp.bfloat16),
                       preferred_element_type=jnp.float32)               # (H, T, hd)
        ctx_rows.append(jnp.transpose(c, (1, 0, 2)).reshape(T, E))
    ctx = ctx_rows[0] if bs == 1 else jnp.concatenate(ctx_rows, axis=0)  # (M, E)

    attn = jnp.dot(ctx.astype(jnp.bfloat16), wo_ref[0],
                   preferred_element_type=jnp.float32) + bo_ref[0]

    # --- post-LN residual 1 ---
    h1 = _layer_norm(h + attn, g1_ref[0], b1_ref[0])

    # --- feed-forward (ReLU), bf16 MXU inputs, f32 accumulation ---
    ff = jnp.dot(h1.astype(jnp.bfloat16), wff1_ref[0],
                 preferred_element_type=jnp.float32) + bff1_ref[0]
    ff = jnp.maximum(ff, 0.0).astype(jnp.bfloat16)          # bf16 before 2nd matmul
    ff = jnp.dot(ff, wff2_ref[0],
                 preferred_element_type=jnp.float32) + bff2_ref[0]

    # --- post-LN residual 2 ---
    h2 = _layer_norm(h1 + ff, g2_ref[0], b2_ref[0])
    h_scr[...] = h2

    # --- fused lm_head on the last layer only ---
    @pl.when(l == pl.num_programs(1) - 1)
    def _():
        logits = jnp.dot(h2.astype(jnp.bfloat16), lmw_ref[...],
                         preferred_element_type=jnp.float32) + lmb_ref[...]
        logits_ref[...] = logits.reshape(logits_ref.shape)


# ----------------------------- wrapper ----------------------------------------

def tiny_gpt_forward(x_ids, params, num_heads, *, batch_splits=2):
    B, T = x_ids.shape
    E = params["token_emb"].shape[1]
    V = params["lm_head_w"].shape[1]
    L = params["wqkv"].shape[0]

    # TODO(synk): embedding gathers have no clean rectangular BlockSpec form at
    # this size; token/pos lookup + add stay as plain-JAX glue (slab fed in bf16).
    tok_emb = jnp.take(params["token_emb"], x_ids, axis=0)              # (B, T, E)
    h0 = (tok_emb + params["pos_emb"][None, :T, :]).astype(jnp.bfloat16)

    # 2-way parallel leading axis so both v7x TensorCores are used; v5e/v6e just
    # iterate the two halves sequentially. Falls back to 1 split if B is odd.
    splits = batch_splits if (batch_splits > 0 and B % batch_splits == 0) else 1
    bs = B // splits

    weight_args = (params["wqkv"], params["bqkv"], params["wo"], params["bo"],
                   params["ln1_g"], params["ln1_b"],
                   params["wff1"], params["bff1"], params["wff2"], params["bff2"],
                   params["ln2_g"], params["ln2_b"])

    in_specs = [pl.BlockSpec((bs, T, E), lambda s, l: (s, 0, 0))]         # activations
    in_specs += [pl.BlockSpec((1,) + w.shape[1:], lambda s, l: (l, 0, 0)) # stream layer weights
                 for w in weight_args]
    in_specs += [pl.BlockSpec((E, V), lambda s, l: (0, 0)),               # lm_head resident
                 pl.BlockSpec((1, V), lambda s, l: (0, 0))]

    return pl.pallas_call(
        functools.partial(fused_gpt_kernel, num_heads=num_heads),
        out_shape=jax.ShapeDtypeStruct((B, T, V), jnp.float32),
        grid=(splits, L),
        in_specs=in_specs,
        out_specs=pl.BlockSpec((bs, T, V), lambda s, l: (s, 0, 0)),
        scratch_shapes=[pltpu.VMEM((bs * T, E), jnp.float32)],
        compiler_params=pltpu.CompilerParams(
            dimension_semantics=("parallel", "arbitrary")),
    )(h0, *weight_args, params["lm_head_w"], params["lm_head_b"])


# ----------------------------- param init -------------------------------------

def init_params(key, vocab_size, embed_dim, num_heads, num_layers, block_size,
                dim_feedforward=2048):
    E, F, V, L = embed_dim, dim_feedforward, vocab_size, num_layers
    keys = jax.random.split(key, 7)
    s = 0.02

    def rnd(k, shape, dtype=jnp.float32):
        return (jax.random.normal(k, shape, jnp.float32) * s).astype(dtype)

    # All matmul weights stored pre-transposed to [in, out] and in bf16
    # (y = x @ W_T + b, matching PyTorch's y = x @ W.T + b with W = [out, in]).
    # Per-layer weights stacked along a leading layer axis for the fused kernel.
    return {
        "token_emb": rnd(keys[0], (V, E)),
        "pos_emb": rnd(keys[1], (block_size, E)),
        "lm_head_w": rnd(keys[2], (E, V), jnp.bfloat16),
        "lm_head_b": jnp.zeros((1, V), jnp.float32),
        "wqkv": rnd(keys[3], (L, E, 3 * E), jnp.bfloat16),
        "bqkv": jnp.zeros((L, 1, 3 * E), jnp.float32),
        "wo": rnd(keys[4], (L, E, E), jnp.bfloat16),
        "bo": jnp.zeros((L, 1, E), jnp.float32),
        "ln1_g": jnp.ones((L, 1, E), jnp.float32),
        "ln1_b": jnp.zeros((L, 1, E), jnp.float32),
        "wff1": rnd(keys[5], (L, E, F), jnp.bfloat16),
        "bff1": jnp.zeros((L, 1, F), jnp.float32),
        "wff2": rnd(keys[6], (L, F, E), jnp.bfloat16),
        "bff2": jnp.zeros((L, 1, E), jnp.float32),
        "ln2_g": jnp.ones((L, 1, E), jnp.float32),
        "ln2_b": jnp.zeros((L, 1, E), jnp.float32),
    }


# ----------------------------- main --------------------------------------------

if __name__ == "__main__":
    # Small, deterministic, lane-friendly config (tokenizer unavailable -> synthetic
    # vocab). E and V are multiples of 128 so every contraction / output last dim is
    # lane-dense; dim_feedforward keeps the PyTorch default (2048).
    vocab_size = 256
    embed_dim = 128
    num_heads = 4
    num_layers = 2
    block_size = 16
    B, T = 2, 8

    key = jax.random.PRNGKey(0)
    k_params, k_ids = jax.random.split(key)
    params = init_params(k_params, vocab_size, embed_dim, num_heads,
                         num_layers, block_size)
    x_ids = jax.random.randint(k_ids, (B, T), 0, vocab_size, dtype=jnp.int32)

    logits = tiny_gpt_forward(x_ids, params, num_heads)
    jax.block_until_ready(logits)
    assert logits.shape == (B, T, vocab_size)
    print("KERNEL_OK")
</pallas_src>

<mosaic_0001>
module attributes {stable_mosaic.version = 11 : i64} {
  func.func @fused_gpt_kernel(%arg0: i32, %arg1: i32, %arg2: memref<1x8x128xbf16, #tpu.memory_space<vmem>>, %arg3: memref<1x128x384xbf16, #tpu.memory_space<vmem>>, %arg4: memref<1x1x384xf32, #tpu.memory_space<vmem>>, %arg5: memref<1x128x128xbf16, #tpu.memory_space<vmem>>, %arg6: memref<1x1x128xf32, #tpu.memory_space<vmem>>, %arg7: memref<1x1x128xf32, #tpu.memory_space<vmem>>, %arg8: memref<1x1x128xf32, #tpu.memory_space<vmem>>, %arg9: memref<1x128x2048xbf16, #tpu.memory_space<vmem>>, %arg10: memref<1x1x2048xf32, #tpu.memory_space<vmem>>, %arg11: memref<1x2048x128xbf16, #tpu.memory_space<vmem>>, %arg12: memref<1x1x128xf32, #tpu.memory_space<vmem>>, %arg13: memref<1x1x128xf32, #tpu.memory_space<vmem>>, %arg14: memref<1x1x128xf32, #tpu.memory_space<vmem>>, %arg15: memref<128x256xbf16, #tpu.memory_space<vmem>>, %arg16: memref<1x256xf32, #tpu.memory_space<vmem>>, %arg17: memref<1x8x256xf32, #tpu.memory_space<vmem>>, %arg18: memref<8x128xf32, #tpu.memory_space<vmem>>) attributes {dimension_semantics = [#tpu.dimension_semantics<parallel>, #tpu.dimension_semantics<arbitrary>], iteration_bounds = array<i64: 2, 2>, scalar_prefetch = 0 : i64, scratch_operands = 1 : i64, tpu.core_type = #tpu.core_type<tc>, window_params = [{transform_indices = @transform_0, window_bounds = array<i64: 1, 8, 128>}, {transform_indices = @transform_1, window_bounds = array<i64: 1, 128, 384>}, {transform_indices = @transform_2, window_bounds = array<i64: 1, 1, 384>}, {transform_indices = @transform_3, window_bounds = array<i64: 1, 128, 128>}, {transform_indices = @transform_4, window_bounds = array<i64: 1, 1, 128>}, {transform_indices = @transform_5, window_bounds = array<i64: 1, 1, 128>}, {transform_indices = @transform_6, window_bounds = array<i64: 1, 1, 128>}, {transform_indices = @transform_7, window_bounds = array<i64: 1, 128, 2048>}, {transform_indices = @transform_8, window_bounds = array<i64: 1, 1, 2048>}, {transform_indices = @transform_9, window_bounds = array<i64: 1, 2048, 128>}, {transform_indices = @transform_10, window_bounds = array<i64: 1, 1, 128>}, {transform_indices = @transform_11, window_bounds = array<i64: 1, 1, 128>}, {transform_indices = @transform_12, window_bounds = array<i64: 1, 1, 128>}, {pipeline_mode = #tpu.pipeline_mode<synchronous>, transform_indices = @transform_13, window_bounds = array<i64: 128, 256>}, {pipeline_mode = #tpu.pipeline_mode<synchronous>, transform_indices = @transform_14, window_bounds = array<i64: 1, 256>}, {transform_indices = @transform_15, window_bounds = array<i64: 1, 8, 256>}]} {
    %c0_i32 = arith.constant 0 : i32
    %0 = arith.cmpi eq, %arg1, %c0_i32 : i32
    %1 = arith.extui %0 : i1 to i32
    %c0_i32_0 = arith.constant 0 : i32
    %2 = arith.cmpi ne, %1, %c0_i32_0 : i32
    scf.if %2 {
      %c0_60 = arith.constant 0 : index
      %c0_61 = arith.constant 0 : index
      %c0_62 = arith.constant 0 : index
      %125 = vector.load %arg2[%c0_60, %c0_61, %c0_62] : memref<1x8x128xbf16, #tpu.memory_space<vmem>>, vector<1x8x128xbf16>
      %126 = arith.extf %125 : vector<1x8x128xbf16> to vector<1x8x128xf32>
      %127 = vector.shape_cast %126 : vector<1x8x128xf32> to vector<8x128xf32>
      %c0_63 = arith.constant 0 : index
      %c0_64 = arith.constant 0 : index
      %128 = vector.load %arg18[%c0_63, %c0_64] : memref<8x128xf32, #tpu.memory_space<vmem>>, vector<8x128xf32>
      tpu.vector_store %arg18[%c0_63, %c0_64], %127 {strides = array<i32>} : memref<8x128xf32, #tpu.memory_space<vmem>>, vector<8x128xf32>,
    } else {
    }
    %c0 = arith.constant 0 : index
    %c0_1 = arith.constant 0 : index
    %3 = vector.load %arg18[%c0, %c0_1] : memref<8x128xf32, #tpu.memory_space<vmem>>, vector<8x128xf32>
    %4 = arith.truncf %3 : vector<8x128xf32> to vector<8x128xbf16>
    %c0_2 = arith.constant 0 : index
    %c0_3 = arith.constant 0 : index
    %c0_4 = arith.constant 0 : index
    %5 = vector.load %arg3[%c0_2, %c0_3, %c0_4] : memref<1x128x384xbf16, #tpu.memory_space<vmem>>, vector<1x128x384xbf16>
    %6 = vector.shape_cast %5 : vector<1x128x384xbf16> to vector<128x384xbf16>
    %cst = arith.constant dense<0.000000e+00> : vector<8x384xf32>
    %7 = tpu.matmul %4, %6, %cst {dimension_numbers = #tpu.dot_dimension_numbers<[1], [0], [0], [1], [0, 0, 1, 1], [], []>} : vector<8x128xbf16>, vector<128x384xbf16>, vector<8x384xf32> -> vector<8x384xf32>
    %c0_5 = arith.constant 0 : index
    %c0_6 = arith.constant 0 : index
    %c0_7 = arith.constant 0 : index
    %8 = vector.load %arg4[%c0_5, %c0_6, %c0_7] : memref<1x1x384xf32, #tpu.memory_space<vmem>>, vector<1x1x384xf32>
    %9 = vector.shape_cast %8 : vector<1x1x384xf32> to vector<1x384xf32>
    %10 = vector.broadcast %9 : vector<1x384xf32> to vector<8x384xf32>
    %11 = arith.addf %7, %10 : vector<8x384xf32>
    %12 = vector.extract_strided_slice %11 {offsets = [0, 0], sizes = [8, 128], strides = [1, 1]} : vector<8x384xf32> to vector<8x128xf32>
    %13 = vector.shape_cast %12 : vector<8x128xf32> to vector<8x4x32xf32>
    %14 = tpu.transpose %13, [1, 0, 2] : vector<8x4x32xf32> -> vector<4x8x32xf32>
    %15 = vector.extract_strided_slice %11 {offsets = [0, 128], sizes = [8, 128], strides = [1, 1]} : vector<8x384xf32> to vector<8x128xf32>
    %16 = vector.shape_cast %15 : vector<8x128xf32> to vector<8x4x32xf32>
    %17 = tpu.transpose %16, [1, 0, 2] : vector<8x4x32xf32> -> vector<4x8x32xf32>
    %18 = vector.extract_strided_slice %11 {offsets = [0, 256], sizes = [8, 128], strides = [1, 1]} : vector<8x384xf32> to vector<8x128xf32>
    %19 = vector.shape_cast %18 : vector<8x128xf32> to vector<8x4x32xf32>
    %20 = tpu.transpose %19, [1, 0, 2] : vector<8x4x32xf32> -> vector<4x8x32xf32>
    %21 = arith.truncf %14 : vector<4x8x32xf32> to vector<4x8x32xbf16>
    %22 = arith.truncf %17 : vector<4x8x32xf32> to vector<4x8x32xbf16>
    "tpu.trace_start"() <{level = 10 : i32, message = "hqd,hkd->hqk"}> : () -> ()
    %cst_8 = arith.constant dense<0.000000e+00> : vector<4x8x8xf32>
    %23 = tpu.matmul %21, %22, %cst_8 {dimension_numbers = #tpu.dot_dimension_numbers<[2], [2], [1], [1], [0, 0, 0, 1, 1, 1], [0], [0]>} : vector<4x8x32xbf16>, vector<4x8x32xbf16>, vector<4x8x8xf32> -> vector<4x8x8xf32>
    "tpu.trace_stop"() : () -> ()
    %cst_9 = arith.constant 0.176776692 : f32
    %24 = vector.broadcast %cst_9 : f32 to vector<4x8x8xf32>
    %25 = arith.mulf %23, %24 : vector<4x8x8xf32>
    %cst_10 = arith.constant dense<0xFF800000> : vector<4x8xf32>
    %26 = vector.multi_reduction <maximumf>, %25, %cst_10 [2] : vector<4x8x8xf32> to vector<4x8xf32>
    %27 = vector.shape_cast %26 : vector<4x8xf32> to vector<4x8x1xf32>
    %28 = vector.broadcast %27 : vector<4x8x1xf32> to vector<4x8x8xf32>
    %29 = arith.subf %25, %28 : vector<4x8x8xf32>
    %30 = math.exp %29 : vector<4x8x8xf32>
    %cst_11 = arith.constant dense<0.000000e+00> : vector<4x8xf32>
    %31 = vector.multi_reduction <add>, %30, %cst_11 [2] : vector<4x8x8xf32> to vector<4x8xf32>
    %32 = vector.shape_cast %31 : vector<4x8xf32> to vector<4x8x1xf32>
    %33 = tpu.reciprocal %32 {approx = true} : vector<4x8x1xf32> -> vector<4x8x1xf32>
    %34 = vector.broadcast %33 : vector<4x8x1xf32> to vector<4x8x8xf32>
    %35 = arith.mulf %30, %34 : vector<4x8x8xf32>
    %36 = arith.truncf %35 : vector<4x8x8xf32> to vector<4x8x8xbf16>
    %37 = arith.truncf %20 : vector<4x8x32xf32> to vector<4x8x32xbf16>
    "tpu.trace_start"() <{level = 10 : i32, message = "hqk,hkd->hqd"}> : () -> ()
    %cst_12 = arith.constant dense<0.000000e+00> : vector<4x8x32xf32>
    %38 = tpu.matmul %36, %37, %cst_12 {dimension_numbers = #tpu.dot_dimension_numbers<[2], [1], [1], [2], [0, 0, 0, 1, 1, 2], [0], [0]>} : vector<4x8x8xbf16>, vector<4x8x32xbf16>, vector<4x8x32xf32> -> vector<4x8x32xf32>
    "tpu.trace_stop"() : () -> ()
    %39 = tpu.transpose %38, [1, 0, 2] : vector<4x8x32xf32> -> vector<8x4x32xf32>
    %40 = vector.shape_cast %39 : vector<8x4x32xf32> to vector<8x128xf32>
    %41 = arith.truncf %40 : vector<8x128xf32> to vector<8x128xbf16>
    %c0_13 = arith.constant 0 : index
    %c0_14 = arith.constant 0 : index
    %c0_15 = arith.constant 0 : index
    %42 = vector.load %arg5[%c0_13, %c0_14, %c0_15] : memref<1x128x128xbf16, #tpu.memory_space<vmem>>, vector<1x128x128xbf16>
    %43 = vector.shape_cast %42 : vector<1x128x128xbf16> to vector<128x128xbf16>
    %cst_16 = arith.constant dense<0.000000e+00> : vector<8x128xf32>
    %44 = tpu.matmul %41, %43, %cst_16 {dimension_numbers = #tpu.dot_dimension_numbers<[1], [0], [0], [1], [0, 0, 1, 1], [], []>} : vector<8x128xbf16>, vector<128x128xbf16>, vector<8x128xf32> -> vector<8x128xf32>
    %c0_17 = arith.constant 0 : index
    %c0_18 = arith.constant 0 : index
    %c0_19 = arith.constant 0 : index
    %45 = vector.load %arg6[%c0_17, %c0_18, %c0_19] : memref<1x1x128xf32, #tpu.memory_space<vmem>>, vector<1x1x128xf32>
    %46 = vector.shape_cast %45 : vector<1x1x128xf32> to vector<1x128xf32>
    %47 = vector.broadcast %46 : vector<1x128xf32> to vector<8x128xf32>
    %48 = arith.addf %44, %47 : vector<8x128xf32>
    %49 = arith.addf %3, %48 : vector<8x128xf32>
    %c0_20 = arith.constant 0 : index
    %c0_21 = arith.constant 0 : index
    %c0_22 = arith.constant 0 : index
    %50 = vector.load %arg7[%c0_20, %c0_21, %c0_22] : memref<1x1x128xf32, #tpu.memory_space<vmem>>, vector<1x1x128xf32>
    %51 = vector.shape_cast %50 : vector<1x1x128xf32> to vector<1x128xf32>
    %c0_23 = arith.constant 0 : index
    %c0_24 = arith.constant 0 : index
    %c0_25 = arith.constant 0 : index
    %52 = vector.load %arg8[%c0_23, %c0_24, %c0_25] : memref<1x1x128xf32, #tpu.memory_space<vmem>>, vector<1x1x128xf32>
    %53 = vector.shape_cast %52 : vector<1x1x128xf32> to vector<1x128xf32>
    %cst_26 = arith.constant dense<0.000000e+00> : vector<8xf32>
    %54 = vector.multi_reduction <add>, %49, %cst_26 [1] : vector<8x128xf32> to vector<8xf32>
    %55 = vector.shape_cast %54 : vector<8xf32> to vector<8x1xf32>
    %cst_27 = arith.constant 1.280000e+02 : f32
    %56 = vector.broadcast %cst_27 : f32 to vector<8x1xf32>
    %57 = arith.divf %55, %56 : vector<8x1xf32>
    %58 = vector.broadcast %57 : vector<8x1xf32> to vector<8x128xf32>
    %59 = arith.subf %49, %58 : vector<8x128xf32>
    %60 = arith.mulf %59, %59 : vector<8x128xf32>
    %cst_28 = arith.constant dense<0.000000e+00> : vector<8xf32>
    %61 = vector.multi_reduction <add>, %60, %cst_28 [1] : vector<8x128xf32> to vector<8xf32>
    %62 = vector.shape_cast %61 : vector<8xf32> to vector<8x1xf32>
    %cst_29 = arith.constant 1.280000e+02 : f32
    %63 = vector.broadcast %cst_29 : f32 to vector<8x1xf32>
    %64 = arith.divf %62, %63 : vector<8x1xf32>
    %65 = vector.broadcast %57 : vector<8x1xf32> to vector<8x128xf32>
    %66 = arith.subf %49, %65 : vector<8x128xf32>
    %cst_30 = arith.constant 9.99999974E-6 : f32
    %67 = vector.broadcast %cst_30 : f32 to vector<8x1xf32>
    %68 = arith.addf %64, %67 : vector<8x1xf32>
    %69 = math.rsqrt %68 : vector<8x1xf32>
    %70 = vector.broadcast %69 : vector<8x1xf32> to vector<8x128xf32>
    %71 = arith.mulf %66, %70 : vector<8x128xf32>
    %72 = vector.broadcast %51 : vector<1x128xf32> to vector<8x128xf32>
    %73 = arith.mulf %71, %72 : vector<8x128xf32>
    %74 = vector.broadcast %53 : vector<1x128xf32> to vector<8x128xf32>
    %75 = arith.addf %73, %74 : vector<8x128xf32>
    %76 = arith.truncf %75 : vector<8x128xf32> to vector<8x128xbf16>
    %c0_31 = arith.constant 0 : index
    %c0_32 = arith.constant 0 : index
    %c0_33 = arith.constant 0 : index
    %77 = vector.load %arg9[%c0_31, %c0_32, %c0_33] : memref<1x128x2048xbf16, #tpu.memory_space<vmem>>, vector<1x128x2048xbf16>
    %78 = vector.shape_cast %77 : vector<1x128x2048xbf16> to vector<128x2048xbf16>
    %cst_34 = arith.constant dense<0.000000e+00> : vector<8x2048xf32>
    %79 = tpu.matmul %76, %78, %cst_34 {dimension_numbers = #tpu.dot_dimension_numbers<[1], [0], [0], [1], [0, 0, 1, 1], [], []>} : vector<8x128xbf16>, vector<128x2048xbf16>, vector<8x2048xf32> -> vector<8x2048xf32>
    %c0_35 = arith.constant 0 : index
    %c0_36 = arith.constant 0 : index
    %c0_37 = arith.constant 0 : index
    %80 = vector.load %arg10[%c0_35, %c0_36, %c0_37] : memref<1x1x2048xf32, #tpu.memory_space<vmem>>, vector<1x1x2048xf32>
    %81 = vector.shape_cast %80 : vector<1x1x2048xf32> to vector<1x2048xf32>
    %82 = vector.broadcast %81 : vector<1x2048xf32> to vector<8x2048xf32>
    %83 = arith.addf %79, %82 : vector<8x2048xf32>
    %cst_38 = arith.constant 0.000000e+00 : f32
    %84 = vector.broadcast %cst_38 : f32 to vector<8x2048xf32>
    %85 = arith.maximumf %83, %84 : vector<8x2048xf32>
    %86 = arith.truncf %85 : vector<8x2048xf32> to vector<8x2048xbf16>
    %c0_39 = arith.constant 0 : index
    %c0_40 = arith.constant 0 : index
    %c0_41 = arith.constant 0 : index
    %87 = vector.load %arg11[%c0_39, %c0_40, %c0_41] : memref<1x2048x128xbf16, #tpu.memory_space<vmem>>, vector<1x2048x128xbf16>
    %88 = vector.shape_cast %87 : vector<1x2048x128xbf16> to vector<2048x128xbf16>
    %cst_42 = arith.constant dense<0.000000e+00> : vector<8x128xf32>
    %89 = tpu.matmul %86, %88, %cst_42 {dimension_numbers = #tpu.dot_dimension_numbers<[1], [0], [0], [1], [0, 0, 1, 1], [], []>} : vector<8x2048xbf16>, vector<2048x128xbf16>, vector<8x128xf32> -> vector<8x128xf32>
    %c0_43 = arith.constant 0 : index
    %c0_44 = arith.constant 0 : index
    %c0_45 = arith.constant 0 : index
    %90 = vector.load %arg12[%c0_43, %c0_44, %c0_45] : memref<1x1x128xf32, #tpu.memory_space<vmem>>, vector<1x1x128xf32>
    %91 = vector.shape_cast %90 : vector<1x1x128xf32> to vector<1x128xf32>
    %92 = vector.broadcast %91 : vector<1x128xf32> to vector<8x128xf32>
    %93 = arith.addf %89, %92 : vector<8x128xf32>
    %94 = arith.addf %75, %93 : vector<8x128xf32>
    %c0_46 = arith.constant 0 : index
    %c0_47 = arith.constant 0 : index
    %c0_48 = arith.constant 0 : index
    %95 = vector.load %arg13[%c0_46, %c0_47, %c0_48] : memref<1x1x128xf32, #tpu.memory_space<vmem>>, vector<1x1x128xf32>
    %96 = vector.shape_cast %95 : vector<1x1x128xf32> to vector<1x128xf32>
    %c0_49 = arith.constant 0 : index
    %c0_50 = arith.constant 0 : index
    %c0_51 = arith.constant 0 : index
    %97 = vector.load %arg14[%c0_49, %c0_50, %c0_51] : memref<1x1x128xf32, #tpu.memory_space<vmem>>, vector<1x1x128xf32>
    %98 = vector.shape_cast %97 : vector<1x1x128xf32> to vector<1x128xf32>
    %cst_52 = arith.constant dense<0.000000e+00> : vector<8xf32>
    %99 = vector.multi_reduction <add>, %94, %cst_52 [1] : vector<8x128xf32> to vector<8xf32>
    %100 = vector.shape_cast %99 : vector<8xf32> to vector<8x1xf32>
    %cst_53 = arith.constant 1.280000e+02 : f32
    %101 = vector.broadcast %cst_53 : f32 to vector<8x1xf32>
    %102 = arith.divf %100, %101 : vector<8x1xf32>
    %103 = vector.broadcast %102 : vector<8x1xf32> to vector<8x128xf32>
    %104 = arith.subf %94, %103 : vector<8x128xf32>
    %105 = arith.mulf %104, %104 : vector<8x128xf32>
    %cst_54 = arith.constant dense<0.000000e+00> : vector<8xf32>
    %106 = vector.multi_reduction <add>, %105, %cst_54 [1] : vector<8x128xf32> to vector<8xf32>
    %107 = vector.shape_cast %106 : vector<8xf32> to vector<8x1xf32>
    %cst_55 = arith.constant 1.280000e+02 : f32
    %108 = vector.broadcast %cst_55 : f32 to vector<8x1xf32>
    %109 = arith.divf %107, %108 : vector<8x1xf32>
    %110 = vector.broadcast %102 : vector<8x1xf32> to vector<8x128xf32>
    %111 = arith.subf %94, %110 : vector<8x128xf32>
    %cst_56 = arith.constant 9.99999974E-6 : f32
    %112 = vector.broadcast %cst_56 : f32 to vector<8x1xf32>
    %113 = arith.addf %109, %112 : vector<8x1xf32>
    %114 = math.rsqrt %113 : vector<8x1xf32>
    %115 = vector.broadcast %114 : vector<8x1xf32> to vector<8x128xf32>
    %116 = arith.mulf %111, %115 : vector<8x128xf32>
    %117 = vector.broadcast %96 : vector<1x128xf32> to vector<8x128xf32>
    %118 = arith.mulf %116, %117 : vector<8x128xf32>
    %119 = vector.broadcast %98 : vector<1x128xf32> to vector<8x128xf32>
    %120 = arith.addf %118, %119 : vector<8x128xf32>
    %c0_57 = arith.constant 0 : index
    %c0_58 = arith.constant 0 : index
    %121 = vector.load %arg18[%c0_57, %c0_58] : memref<8x128xf32, #tpu.memory_space<vmem>>, vector<8x128xf32>
    tpu.vector_store %arg18[%c0_57, %c0_58], %120 {strides = array<i32>} : memref<8x128xf32, #tpu.memory_space<vmem>>, vector<8x128xf32>,
    %c1_i32 = arith.constant 1 : i32
    %122 = arith.cmpi eq, %arg1, %c1_i32 : i32
    %123 = arith.extui %122 : i1 to i32
    %c0_i32_59 = arith.constant 0 : i32
    %124 = arith.cmpi ne, %123, %c0_i32_59 : i32
    scf.if %124 {
      %125 = arith.truncf %120 : vector<8x128xf32> to vector<8x128xbf16>
      %c0_60 = arith.constant 0 : index
      %c0_61 = arith.constant 0 : index
      %126 = vector.load %arg15[%c0_60, %c0_61] : memref<128x256xbf16, #tpu.memory_space<vmem>>, vector<128x256xbf16>
      %cst_62 = arith.constant dense<0.000000e+00> : vector<8x256xf32>
      %127 = tpu.matmul %125, %126, %cst_62 {dimension_numbers = #tpu.dot_dimension_numbers<[1], [0], [0], [1], [0, 0, 1, 1], [], []>} : vector<8x128xbf16>, vector<128x256xbf16>, vector<8x256xf32> -> vector<8x256xf32>
      %c0_63 = arith.constant 0 : index
      %c0_64 = arith.constant 0 : index
      %128 = vector.load %arg16[%c0_63, %c0_64] : memref<1x256xf32, #tpu.memory_space<vmem>>, vector<1x256xf32>
      %129 = vector.broadcast %128 : vector<1x256xf32> to vector<8x256xf32>
      %130 = arith.addf %127, %129 : vector<8x256xf32>
      %131 = vector.shape_cast %130 : vector<8x256xf32> to vector<1x8x256xf32>
      %c0_65 = arith.constant 0 : index
      %c0_66 = arith.constant 0 : index
      %c0_67 = arith.constant 0 : index
      %132 = vector.load %arg17[%c0_65, %c0_66, %c0_67] : memref<1x8x256xf32, #tpu.memory_space<vmem>>, vector<1x8x256xf32>
      tpu.vector_store %arg17[%c0_65, %c0_66, %c0_67], %131 {strides = array<i32>} : memref<1x8x256xf32, #tpu.memory_space<vmem>>, vector<1x8x256xf32>,
    } else {
    }
    return
  }
  func.func @transform_0(%arg0: i32, %arg1: i32) -> (i32, i32, i32) {
    %c0_i32 = arith.constant 0 : i32
    %c0_i32_0 = arith.constant 0 : i32
    %c0_i32_1 = arith.constant 0 : i32
    return %arg0, %c0_i32, %c0_i32_0 : i32, i32, i32
  }
  func.func @transform_1(%arg0: i32, %arg1: i32) -> (i32, i32, i32) {
    %c0_i32 = arith.constant 0 : i32
    %c0_i32_0 = arith.constant 0 : i32
    %c0_i32_1 = arith.constant 0 : i32
    return %arg1, %c0_i32, %c0_i32_0 : i32, i32, i32
  }
  func.func @transform_2(%arg0: i32, %arg1: i32) -> (i32, i32, i32) {
    %c0_i32 = arith.constant 0 : i32
    %c0_i32_0 = arith.constant 0 : i32
    %c0_i32_1 = arith.constant 0 : i32
    return %arg1, %c0_i32, %c0_i32_0 : i32, i32, i32
  }
  func.func @transform_3(%arg0: i32, %arg1: i32) -> (i32, i32, i32) {
    %c0_i32 = arith.constant 0 : i32
    %c0_i32_0 = arith.constant 0 : i32
    %c0_i32_1 = arith.constant 0 : i32
    return %arg1, %c0_i32, %c0_i32_0 : i32, i32, i32
  }
  func.func @transform_4(%arg0: i32, %arg1: i32) -> (i32, i32, i32) {
    %c0_i32 = arith.constant 0 : i32
    %c0_i32_0 = arith.constant 0 : i32
    %c0_i32_1 = arith.constant 0 : i32
    return %arg1, %c0_i32, %c0_i32_0 : i32, i32, i32
  }
  func.func @transform_5(%arg0: i32, %arg1: i32) -> (i32, i32, i32) {
    %c0_i32 = arith.constant 0 : i32
    %c0_i32_0 = arith.constant 0 : i32
    %c0_i32_1 = arith.constant 0 : i32
    return %arg1, %c0_i32, %c0_i32_0 : i32, i32, i32
  }
  func.func @transform_6(%arg0: i32, %arg1: i32) -> (i32, i32, i32) {
    %c0_i32 = arith.constant 0 : i32
    %c0_i32_0 = arith.constant 0 : i32
    %c0_i32_1 = arith.constant 0 : i32
    return %arg1, %c0_i32, %c0_i32_0 : i32, i32, i32
  }
  func.func @transform_7(%arg0: i32, %arg1: i32) -> (i32, i32, i32) {
    %c0_i32 = arith.constant 0 : i32
    %c0_i32_0 = arith.constant 0 : i32
    %c0_i32_1 = arith.constant 0 : i32
    return %arg1, %c0_i32, %c0_i32_0 : i32, i32, i32
  }
  func.func @transform_8(%arg0: i32, %arg1: i32) -> (i32, i32, i32) {
    %c0_i32 = arith.constant 0 : i32
    %c0_i32_0 = arith.constant 0 : i32
    %c0_i32_1 = arith.constant 0 : i32
    return %arg1, %c0_i32, %c0_i32_0 : i32, i32, i32
  }
  func.func @transform_9(%arg0: i32, %arg1: i32) -> (i32, i32, i32) {
    %c0_i32 = arith.constant 0 : i32
    %c0_i32_0 = arith.constant 0 : i32
    %c0_i32_1 = arith.constant 0 : i32
    return %arg1, %c0_i32, %c0_i32_0 : i32, i32, i32
  }
  func.func @transform_10(%arg0: i32, %arg1: i32) -> (i32, i32, i32) {
    %c0_i32 = arith.constant 0 : i32
    %c0_i32_0 = arith.constant 0 : i32
    %c0_i32_1 = arith.constant 0 : i32
    return %arg1, %c0_i32, %c0_i32_0 : i32, i32, i32
  }
  func.func @transform_11(%arg0: i32, %arg1: i32) -> (i32, i32, i32) {
    %c0_i32 = arith.constant 0 : i32
    %c0_i32_0 = arith.constant 0 : i32
    %c0_i32_1 = arith.constant 0 : i32
    return %arg1, %c0_i32, %c0_i32_0 : i32, i32, i32
  }
  func.func @transform_12(%arg0: i32, %arg1: i32) -> (i32, i32, i32) {
    %c0_i32 = arith.constant 0 : i32
    %c0_i32_0 = arith.constant 0 : i32
    %c0_i32_1 = arith.constant 0 : i32
    return %arg1, %c0_i32, %c0_i32_0 : i32, i32, i32
  }
  func.func @transform_13(%arg0: i32, %arg1: i32) -> (i32, i32) {
    %c0_i32 = arith.constant 0 : i32
    %c0_i32_0 = arith.constant 0 : i32
    %c0_i32_1 = arith.constant 0 : i32
    return %c0_i32, %c0_i32_0 : i32, i32
  }
  func.func @transform_14(%arg0: i32, %arg1: i32) -> (i32, i32) {
    %c0_i32 = arith.constant 0 : i32
    %c0_i32_0 = arith.constant 0 : i32
    %c0_i32_1 = arith.constant 0 : i32
    return %c0_i32, %c0_i32_0 : i32, i32
  }
  func.func @transform_15(%arg0: i32, %arg1: i32) -> (i32, i32, i32) {
    %c0_i32 = arith.constant 0 : i32
    %c0_i32_0 = arith.constant 0 : i32
    %c0_i32_1 = arith.constant 0 : i32
    return %arg0, %c0_i32, %c0_i32_0 : i32, i32, i32
  }
}

</mosaic_0001>

<bundles_post_ra>
// kernel: tpu_custom_call.1
= control target key start
LH: loop header
LB: loop body
LE: loop exit
PB: predicated region body
PF: predicated region fallthrough
CT: control target
= control target key end

     0   :  { %s7910_s0 = inlined_call_operand.hbm [shape: bf16[2,8,128], index: 0, kind: input, shape index: {}]   ;;  %s7911_s1 = inlined_call_operand.hbm [shape: bf16[2,128,384], index: 1, kind: input, shape index: {}]   ;;  %s7912_s2 = inlined_call_operand.vmem [shape: f32[2,1,384], index: 2, kind: input, shape index: {}]   ;;  %s7913_s3 = inlined_call_operand.hbm [shape: bf16[2,128,128], index: 3, kind: input, shape index: {}]   ;;  %s7914_s4 = inlined_call_operand.vmem [shape: f32[2,1,128], index: 4, kind: input, shape index: {}]   ;;  %s7915_s5 = inlined_call_operand.vmem [shape: f32[2,1,128], index: 5, kind: input, shape index: {}]   ;;  %s7916_s6 = inlined_call_operand.vmem [shape: f32[2,1,128], index: 6, kind: input, shape index: {}]   ;;  %s7917_s7 = inlined_call_operand.hbm [shape: bf16[2,128,2048], index: 7, kind: input, shape index: {}]   ;;  %s7918_s8 = inlined_call_operand.hbm [shape: f32[2,1,2048], index: 8, kind: input, shape index: {}]   ;;  %s7919_s9 = inlined_call_operand.hbm [shape: bf16[2,2048,128], index: 9, kind: input, shape index: {}]   ;;  %s7920_s10 = inlined_call_operand.vmem [shape: f32[2,1,128], index: 10, kind: input, shape index: {}]   ;;  %s7921_s11 = inlined_call_operand.vmem [shape: f32[2,1,128], index: 11, kind: input, shape index: {}]   ;;  %s7922_s12 = inlined_call_operand.vmem [shape: f32[2,1,128], index: 12, kind: input, shape index: {}]   ;;  %s7923_s13 = inlined_call_operand.hbm [shape: bf16[128,256], index: 13, kind: input, shape index: {}]   ;;  %s7924_s14 = inlined_call_operand.vmem [shape: f32[1,256], index: 14, kind: input, shape index: {}]   ;;  %s7925_s15 = inlined_call_operand.hbm [shape: f32[2,8,256], index: 15, kind: output, shape index: {}]  }
   0x1   :  { %7957 = sst [smem:[#allocation41_spill]] %s7910_s0 }
   0x2   :  { %7958 = sst [smem:[#allocation42_spill]] %s7911_s1 }
   0x3   :  { %7959 = sst [smem:[#allocation43_spill]] %s7912_s2 }
   0x4   :  { %7960 = sst [smem:[#allocation44_spill]] %s7913_s3 }
   0x5   :  { %7961 = sst [smem:[#allocation45_spill]] %s7914_s4 }
   0x6   :  { %7962 = sst [smem:[#allocation46_spill]] %s7915_s5 }
   0x7   :  { %7963 = sst [smem:[#allocation47_spill]] %s7916_s6 }
   0x8   :  { %7964 = sst [smem:[#allocation48_spill]] %s7917_s7 }
   0x9   :  { %7965 = sst [smem:[#allocation49_spill]] %s7918_s8 }
   0xa   :  { %7966 = sst [smem:[#allocation50_spill]] %s7919_s9 }
   0xb   :  { %7967 = sst [smem:[#allocation51_spill]] %s7920_s10 }
   0xc   :  { %7968 = sst [smem:[#allocation52_spill]] %s7921_s11 }
   0xd   :  { %7969 = sst [smem:[#allocation53_spill]] %s7922_s12 }
   0xe   :  { %7970 = sst [smem:[#allocation54_spill]] %s7923_s13 }
   0xf   :  { %7971 = sst [smem:[#allocation55_spill]] %s7924_s14 }
  0x10   :  { %7972 = sst [smem:[#allocation56_spill]] %s7925_s15 }
  0x11   :  { %20 = vsyncpa [#allocation4], 0 }
  0x12   :  { %22 = vsyncpa [#allocation4 + $0x1], 0 }
  0x13   :  { %23 = vsyncpa [#allocation7], 0 }
  0x14   :  { %25 = vsyncpa [#allocation7 + $0x1], 0 }
  0x15   :  { %26 = vsyncpa [#allocation10], 0 }
  0x16   :  { %28 = vsyncpa [#allocation10 + $0x1], 0 }
  0x17   :  { %29 = vsyncpa [#allocation13], 0 }
  0x18   :  { %31 = vsyncpa [#allocation13 + $0x1], 0 }
  0x19   :  { %32 = vsyncpa [#allocation5], 0 }
  0x1a   :  { %34 = vsyncpa [#allocation5 + $0x1], 0  ;;  %s6780_s18 = smov 0   ;;  %s6782_s19 = smov 0  }
  0x1b   :  { %s6784_s20 = smov 0   ;;  %s6786_s21 = smov 0  }
  0x1c   :  { %s6788_s22 = smov 0   ;;  %s6790_s23 = smov 0  }
  0x1d   :  { %s6792_s24 = smov 0   ;;  %s6794_s25 = smov 0  }
  0x1e   :  { %s6796_s26 = smov 0   ;;  %s6798_s27 = smov 0  }
  0x1f   :  { %s6800_s28 = smov 0  }
  0x20 LB: > { %7973 = sst [smem:[#allocation22_spill]] %s6638_s19  ;;  %s6834_s29 = sadd.s32 4294967295, %s6674_s28   ;;  %s6674_s28 = sphi %s6800_s28, %s40_s28   ;;  %s6670_s27 = sphi %s6798_s27, %s8065_s27   ;;  %s6666_s26 = sphi %s6796_s26, %s8064_s26   ;;  %s6662_s25 = sphi %s6794_s25, %s8063_s25   ;;  %s6658_s24 = sphi %s6792_s24, %s8062_s24   ;;  %s6654_s23 = sphi %s6790_s23, %s8061_s23   ;;  %s6650_s22 = sphi %s6788_s22, %s8060_s22   ;;  %s6646_s21 = sphi %s6786_s21, %s8059_s21   ;;  %s6642_s20 = sphi %s6784_s20, %s8058_s20   ;;  %s6638_s19 = sphi %s6782_s19, %s8057_s19   ;;  %s6634_s18 = sphi %s6780_s18, %s8056_s18  }
  0x21   : > { %7974 = sst [smem:[#allocation23_spill]] %s6642_s20  ;;  %p98_p0 = scmp.ne.s32.totalorder %s6638_s19, %s6634_s18 }
  0x22   : > { %7975 = sst [smem:[#allocation24_spill]] %s6646_s21  ;;  %p7927_p1 = scmp.eq.s32.totalorder %s6834_s29, 0 }
  0x23   : > { %7976 = sst [smem:[#allocation25_spill]] %s6650_s22  ;;  %p5295_p2 = scmp.ge.s32.totalorder %s6674_s28, 1 }
  0x24   : > { %7977 = sst [smem:[#allocation26_spill]] %s6654_s23  ;;  %p463_p3 = scmp.lt.s32.totalorder %s6674_s28, 5 }
  0x25   : > { %7978 = sst [smem:[#allocation27_spill]] %s6658_s24  ;;  %p6842_p4 = por %p98_p0, %p7927_p1 }
  0x26   : > { %7979 = sst [smem:[#allocation28_spill]] %s6662_s25  ;;  %p6846_p5 = pnand %p5295_p2, %p463_p3 }
  0x27   : > { %7980 = sst [smem:[#allocation29_spill]] %s6666_s26  ;;  %s6676_s17 = smov [#allocation14]  }
  0x28   : > { %7981 = sst [smem:[#allocation30_spill]] %s6670_s27  ;;  %s475_s15 = sshll.u32 %s6676_s17, 4  ;;  %s476_s15 = int_to_ptr.vmem [resolvable:$true] %s475_s15 }
  0x29   : > { %7982 = sst [smem:[#allocation31_spill]] %s6674_s28  ;;  %p5979_p6 = pneg %p6846_p5 }
  0x2a   : > { %s7983_s30 = scalar_select %p6842_p4, 1, 0 }
  0x2b   : > { %s7985_s16 = scalar_select %p6846_p5, 1, 0 }
  0x2c   : > { %7984 = sst [smem:[#allocation32_spill]] %s7983_s30  ;;  %p6854_p7 = pnand %p5979_p6, %p7927_p1 }
  0x2d   : > { %7986 = sst [smem:[#allocation33_spill]] %s7985_s16  ;;  %s7988_s13 = sld [smem:[#allocation54_spill]] }
  0x2e   : > { %p6330_p10 = pneg %p6854_p7 }
  0x33   : > { %s6328_s12 = scalar_lea.hbm %s7988_s13, 2048 }
  0x34   : > { %p6329_p9 = scmp.ne.s32.totalorder %s7988_s13, %s6328_s12  ;;  %p6335_p13 = scmp.lt.u32.totalorder %s6328_s12, %s7988_s13 }
  0x36   : > { %p6331_p11 = pnand %p6330_p10, %p6329_p9 }
  0x38   : > { %p6332_p12 = pneg %p6331_p11 }
  0x3a   : > { %p6337_p0 = pnand %p6335_p13, %p6332_p12 }
  0x3c   : > { %6340 = shalt.err (!%p6337_p0)
}
  0x3d   : > { %s6341_s6 = scalar_lea.vmem %s476_s15, 2048  ;;  %p6349_p1 = scmp.lt.s32.totalorder %s476_s15, %s476_s15 }
  0x3e   : > { %p6342_p2 = scmp.ne.s32.totalorder %s476_s15, %s6341_s6  ;;  %p6350_p8 = scmp.lt.s32.totalorder %s6341_s6, %s6341_s6 }
  0x40   : > { %p6344_p3 = pnand %p6342_p2, %p6330_p10  ;;  %p6351_p4 = por %p6350_p8, %p6349_p1 }
  0x42   : > { %p6345_p6 = pneg %p6344_p3 }
  0x44   : > { %p6352_p5 = pnand %p6351_p4, %p6345_p6 }
  0x46   : > { %6355 = shalt.err (!%p6352_p5)
}
  0x47   : > { %s6677_s10 = smov 128   ;;  %s6678_s2 = smov 8  }
  0x48   : > { %5982 = dma.hbm_to_vmem [thread:$0]  (!%p6854_p7), %s7988_s13, 2048, %s476_s15, [#allocation13], %s6677_s10, %s6677_s10, %s6678_s2  }
  0x49   : > { %p92_p1 = scmp.ne.s32.totalorder %s6642_s20, %s6638_s19  ;;  %p7930_p4 = scmp.lt.s32.totalorder %s6674_s28, 4 }
  0x4a   : > { %s6880_s14 = sand.u32 1, %s6674_s28   ;;  %p7989_p5 = scmp.eq.s32.totalorder %s6674_s28, 0 }
  0x4b   : > { %s6885_s25 = sand.u32 1, %s6642_s20   ;;  %s5958_s17 = smul.u32 3072, %s6666_s26 }
  0x4c   : > { %p94_p8 = por %p92_p1, %p7989_p5  ;;  %s5957_s5 = smul.u32 192, %s6885_s25 }
  0x4d   : > { %s7991_s1 = sld [smem:[#allocation42_spill]] }
  0x4e   : > { %p6891_p9 = pnand %p7930_p4, %p94_p8  ;;  %s514_s2 = scalar_lea.vmem [#allocation6], %s5957_s5 }
  0x4f   : > { %s521_s12 = sshll.u32 %s514_s2, 4  ;;  %s6900_s12 = int_to_ptr.vmem [resolvable:$true] %s521_s12 }
  0x50   : > { %s7990_s18 = scalar_select %p6891_p9, 1, 0 }
  0x51   : > { %p6907_p10 = pneg %p6891_p9 }
  0x53   : > { %s6898_s10 = scalar_lea.hbm %s7991_s1, %s5958_s17  ;;  %s6361_s15 = scalar_lea.hbm %s7991_s1, 6144 }
  0x54   : > { %s6356_s13 = scalar_lea.hbm %s6898_s10, 3072  ;;  %p6362_p13 = scmp.lt.u32.totalorder %s6898_s10, %s7991_s1 }
  0x55   : > { %p6357_p7 = scmp.ne.s32.totalorder %s6898_s10, %s6356_s13  ;;  %p6363_p0 = scmp.lt.u32.totalorder %s6361_s15, %s6356_s13 }
  0x56   : > { %p6365_p3 = scmp.lt.u32.totalorder %s6356_s13, %s6898_s10 }
  0x57   : > { %p6359_p11 = pnand %p6907_p10, %p6357_p7  ;;  %p6364_p2 = por %p6363_p0, %p6362_p13 }
  0x59   : > { %p6360_p12 = pneg %p6359_p11  ;;  %p6366_p6 = por %p6365_p3, %p6364_p2 }
  0x5b   : > { %p6367_p1 = pnand %p6366_p6, %p6360_p12 }
  0x5d   : > { %6370 = shalt.err (!%p6367_p1)
}
  0x5e   : > { %s6371_s6 = scalar_lea.vmem %s6900_s12, 3072  ;;  %s6679_s17 = smov [#allocation6]  }
  0x5f   : > { %p6372_p5 = scmp.ne.s32.totalorder %s6900_s12, %s6371_s6  ;;  %s6376_s11 = sshll.u32 %s6679_s17, 4  ;;  %s6377_s11 = int_to_ptr.vmem [resolvable:$false] %s6376_s11 }
  0x60   : > { %s6378_s5 = scalar_lea.vmem %s6377_s11, 6144  ;;  %p6379_p11 = scmp.lt.s32.totalorder %s6900_s12, %s6377_s11 }
  0x61   : > { %p6374_p8 = pnand %p6372_p5, %p6907_p10  ;;  %p6380_p4 = scmp.lt.s32.totalorder %s6378_s5, %s6371_s6 }
  0x63   : > { %p6375_p7 = pneg %p6374_p8  ;;  %p6381_p13 = por %p6380_p4, %p6379_p11 }
  0x65   : > { %p6382_p0 = pnand %p6381_p13, %p6375_p7 }
  0x67   : > { %6385 = shalt.err (!%p6382_p0)
}
  0x68   : > { %s6680_s13 = smov 192   ;;  %s6681_s15 = smov 12  }
  0x69   : > { %s7993_s2 = scalar_lea.sflag [#allocation7], %s6880_s14  ;;  %s5304_s17 = sshll.u32 %s6885_s25, 10 }
  0x6a   : > { %5989 = dma.hbm_to_vmem [thread:$0]  (!%p6891_p9), %s6898_s10, 3072, %s6900_s12, %s7993_s2, %s6680_s13, %s6680_s13, %s6681_s15  }
  0x6b   : > { %s5655_s6 = sshll.u32 %s6666_s26, 14  ;;  %s7994_s7 = sld [smem:[#allocation48_spill]] }
  0x6c   : > { %s581_s24 = scalar_lea.vmem [#allocation9], %s5304_s17  ;;  %s7936_s19 = scalar_lea.sflag [#allocation10], %s6880_s14 }
  0x6d   : > { %s588_s30 = sshll.u32 %s581_s24, 4  ;;  %s6943_s30 = int_to_ptr.vmem [resolvable:$true] %s588_s30 }
  0x71   : > { %s6939_s1 = scalar_lea.hbm %s7994_s7, %s5655_s6  ;;  %s6391_s13 = scalar_lea.hbm %s7994_s7, 32768 }
  0x72   : > { %s6386_s16 = scalar_lea.hbm %s6939_s1, 16384  ;;  %p6392_p3 = scmp.lt.u32.totalorder %s6939_s1, %s7994_s7 }
  0x73   : > { %p6387_p4 = scmp.ne.s32.totalorder %s6939_s1, %s6386_s16  ;;  %p6393_p6 = scmp.lt.u32.totalorder %s6391_s13, %s6386_s16 }
  0x74   : > { %p6395_p5 = scmp.lt.u32.totalorder %s6386_s16, %s6939_s1 }
  0x75   : > { %p6389_p12 = pnand %p6387_p4, %p6907_p10  ;;  %p6394_p1 = por %p6393_p6, %p6392_p3 }
  0x77   : > { %p6390_p2 = pneg %p6389_p12  ;;  %p6396_p8 = por %p6395_p5, %p6394_p1 }
  0x79   : > { %p6397_p7 = pnand %p6396_p8, %p6390_p2 }
  0x7b   : > { %6400 = shalt.err (!%p6397_p7)
}
  0x7c   : > { %s6401_s24 = scalar_lea.vmem %s6943_s30, 16384  ;;  %s6682_s11 = smov [#allocation9]  }
  0x7d   : > { %p6402_p11 = scmp.ne.s32.totalorder %s6943_s30, %s6401_s24  ;;  %s6406_s5 = sshll.u32 %s6682_s11, 4  ;;  %s6407_s5 = int_to_ptr.vmem [resolvable:$false] %s6406_s5 }
  0x7e   : > { %s6408_s10 = scalar_lea.vmem %s6407_s5, 32768  ;;  %p6409_p4 = scmp.lt.s32.totalorder %s6943_s30, %s6407_s5 }
  0x7f   : > { %p6404_p13 = pnand %p6402_p11, %p6907_p10  ;;  %p6410_p12 = scmp.lt.s32.totalorder %s6408_s10, %s6401_s24 }
  0x81   : > { %p6405_p0 = pneg %p6404_p13  ;;  %p6411_p3 = por %p6410_p12, %p6409_p4 }
  0x83   : > { %p6412_p6 = pnand %p6411_p3, %p6405_p0 }
  0x85   : > { %6415 = shalt.err (!%p6412_p6)
}
  0x86   : > { %s6683_s16 = smov 1024   ;;  %s7937_s12 = smov 64  }
  0x87   : > { %5995 = dma.hbm_to_vmem [thread:$0]  (!%p6891_p9), %s6939_s1, 16384, %s6943_s30, %s7936_s19, %s6683_s16, %s6683_s16, %s7937_s12  }
  0x88   : > { %s7995_s9 = sld [smem:[#allocation50_spill]]  ;;  %s621_s24 = scalar_lea.vmem [#allocation12], %s5304_s17 }
  0x89   : > { %s628_s11 = sshll.u32 %s621_s24, 4  ;;  %s5294_s5 = sadd.s32 4294967294, %s6674_s28   ;;  %s6979_s11 = int_to_ptr.vmem [resolvable:$true] %s628_s11 }
  0x8a   : > { %s49_s1 = sadd.s32 1, %s6666_s26  ;;  %s52_s30 = sadd.s32 1, %s6670_s27 }
  0x8b   : > { %p50_p2 = scmp.ge.s32.totalorder %s49_s1, 2  ;;  %s59_s10 = sadd.s32 1, %s6654_s23 }
  0x8c   : > { %p66_p1 = scmp.ne.s32.totalorder %s6654_s23, %s6650_s22  ;;  %p7997_p5 = scmp.eq.s32.totalorder %s6674_s28, 0 }
  0x8d   : > { %s8067_s1 = smov (%p50_p2, %s49_s1), 0  ;;  %s8069_s30 = smov (!%p50_p2, %s52_s30), %s6670_s27 }
  0x8e   : > { %s6975_s2 = scalar_lea.hbm %s7995_s9, %s5655_s6  ;;  %7996 = sst [smem:[#allocation34_spill]] %s8067_s1 }
  0x8f   : > { %p6995_p8 = por %p7997_p5, %p66_p1  ;;  %p72_p7 = scmp.ne.s32.totalorder %s6650_s22, %s6646_s21 }
  0x90   : > { %p54_p11 = scmp.ge.s32.totalorder %s8069_s30, 2  ;;  %s82_s6 = ssub.s32 %s6666_s26, %s8067_s1 }
  0x91   : > { %p7999_p13 = scmp.eq.s32.totalorder %s6834_s29, 0  ;;  %p83_p4 = scmp.eq.s32.totalorder %s82_s6, 0 }
  0x92   : > { %s8071_s30 = smov (%p54_p11, %s8069_s30), 0  ;;  %s8002_s13 = sadd.s32 1, %s6642_s20 }
  0x93   : > { %p7008_p0 = por %p7999_p13, %p72_p7  ;;  %8001 = sst [smem:[#allocation35_spill]] %s8071_s30 }
  0x94   : > { %s7017_s15 = scalar_select %p83_p4, %s6642_s20, %s8002_s13  }
  0x95   : > { %s8000_s16 = scalar_select %p7008_p0, 1, 0 }
  0x96   : > { %8003 = sst [smem:[#allocation36_spill]] %s7017_s15  ;;  %s56_s24 = ssub.s32 %s6670_s27, %s8071_s30 }
  0x97   : > { %p450_p12 = scmp.eq.s32.totalorder %s6834_s29, 3  ;;  %p57_p3 = scmp.eq.s32.totalorder %s56_s24, 0 }
  0x98   : > { %p456_p6 = scmp.eq.s32.totalorder %s5294_s5, 3  ;;  %s492_s12 = sand.u32 1, %s6654_s23  }
  0x99   : > { %p7025_p2 = por %p450_p12, %p66_p1  ;;  %s5298_s13 = sshll.u32 %s492_s12, 2 }
  0x9a   : > { %s7031_s6 = scalar_select %p57_p3, %s6654_s23, %s59_s10  }
  0x9b   : > { %s8004_s19 = scalar_select %p7025_p2, 1, 0 }
  0x9c   : > { %8006 = sst [smem:[#allocation38_spill]] %s7031_s6  ;;  %p7036_p5 = por %p456_p6, %p72_p7 }
  0x9d   : > { %8005 = sst [smem:[#allocation37_spill]] %s8004_s19  ;;  %s5299_s1 = sshll.u32 %s6670_s27, 6 }
  0x9e   : > { %s8007_s7 = scalar_select %p7036_p5, 1, 0 }
  0x9f   : > { %s8009_s0 = sld [smem:[#allocation41_spill]]  ;;  %s496_s5 = scalar_lea.vmem [#allocation3], %s5298_s13 }
  0xa0   : > { %8008 = sst [smem:[#allocation39_spill]] %s8007_s7  ;;  %s503_s20 = sshll.u32 %s496_s5, 4  ;;  %s7054_s20 = int_to_ptr.vmem [resolvable:$true] %s503_s20 }
  0xa1   : > { %p8010_p1 = scmp.lt.s32.totalorder %s6674_s28, 4  ;;  %s5301_s27 = sshll.u32 %s6885_s25, 6 }
  0xa2   : > { %s493_s30 = scalar_lea.sflag [#allocation4], %s492_s12 }
  0xa3   : > { %p7050_p11 = pnand %p8010_p1, %p6995_p8 }
  0xa5   : > { %s7044_s24 = scalar_lea.hbm %s8009_s0, %s5299_s1  ;;  %p6418_p13 = pneg %p7050_p11 }
  0xa6   : > { %s6416_s1 = scalar_lea.hbm %s7044_s24, 64  ;;  %s6421_s13 = scalar_lea.hbm %s8009_s0, 128 }
  0xa7   : > { %p6417_p7 = scmp.ne.s32.totalorder %s7044_s24, %s6416_s1  ;;  %p6422_p8 = scmp.lt.u32.totalorder %s7044_s24, %s8009_s0 }
  0xa8   : > { %p6423_p3 = scmp.lt.u32.totalorder %s6421_s13, %s6416_s1  ;;  %p6425_p1 = scmp.lt.u32.totalorder %s6416_s1, %s7044_s24 }
  0xa9   : > { %p6419_p4 = pnand %p6418_p13, %p6417_p7 }
  0xaa   : > { %p6424_p6 = por %p6423_p3, %p6422_p8 }
  0xab   : > { %p6420_p12 = pneg %p6419_p4 }
  0xac   : > { %p6426_p5 = por %p6425_p1, %p6424_p6 }
  0xae   : > { %p6427_p2 = pnand %p6426_p5, %p6420_p12 }
  0xb0   : > { %6430 = shalt.err (!%p6427_p2)
}
  0xb1   : > { %s6431_s12 = scalar_lea.vmem %s7054_s20, 64  ;;  %s6685_s17 = smov [#allocation3]  }
  0xb2   : > { %p6432_p7 = scmp.ne.s32.totalorder %s7054_s20, %s6431_s12  ;;  %s6436_s15 = sshll.u32 %s6685_s17, 4  ;;  %s6437_s15 = int_to_ptr.vmem [resolvable:$false] %s6436_s15 }
  0xb3   : > { %s6438_s6 = scalar_lea.vmem %s6437_s15, 128  ;;  %p6439_p9 = scmp.lt.s32.totalorder %s7054_s20, %s6437_s15 }
  0xb4   : > { %p6434_p4 = pnand %p6432_p7, %p6418_p13  ;;  %p6440_p8 = scmp.lt.s32.totalorder %s6438_s6, %s6431_s12 }
  0xb6   : > { %p6435_p0 = pneg %p6434_p4  ;;  %p6441_p3 = por %p6440_p8, %p6439_p9 }
  0xb8   : > { %p6442_p6 = pnand %p6441_p3, %p6435_p0 }
  0xba   : > { %6445 = shalt.err (!%p6442_p6)
}
  0xbb   : > { %5986 = dma.hbm_to_vmem [thread:$0]  (!%p7050_p11), %s7044_s24, 64, %s7054_s20, %s493_s30  }
  0xbc   : > { %s5654_s1 = sshll.u32 %s6666_s26, 10  ;;  %s542_s13 = scalar_lea.vmem [#allocation8], %s5301_s27 }
  0xbd   : > { %s549_s5 = sshll.u32 %s542_s13, 4  ;;  %s8012_s3 = sld [smem:[#allocation44_spill]]  ;;  %s7090_s5 = int_to_ptr.vmem [resolvable:$true] %s549_s5 }
  0xbe   : > { %s5307_s10 = sshll.u32 %s6885_s25, 4 }
  0xc3   : > { %s7088_s12 = scalar_lea.hbm %s8012_s3, %s5654_s1  ;;  %s6451_s24 = scalar_lea.hbm %s8012_s3, 2048 }
  0xc4   : > { %s6446_s15 = scalar_lea.hbm %s7088_s12, 1024  ;;  %p6452_p5 = scmp.lt.u32.totalorder %s7088_s12, %s8012_s3 }
  0xc5   : > { %p6447_p9 = scmp.ne.s32.totalorder %s7088_s12, %s6446_s15  ;;  %p6453_p11 = scmp.lt.u32.totalorder %s6451_s24, %s6446_s15 }
  0xc6   : > { %p6455_p12 = scmp.lt.u32.totalorder %s6446_s15, %s7088_s12 }
  0xc7   : > { %p6449_p0 = pnand %p6447_p9, %p6907_p10  ;;  %p6454_p13 = por %p6453_p11, %p6452_p5 }
  0xc9   : > { %p6450_p2 = pneg %p6449_p0  ;;  %p6456_p1 = por %p6455_p12, %p6454_p13 }
  0xcb   : > { %p6457_p7 = pnand %p6456_p1, %p6450_p2 }
  0xcd   : > { %6460 = shalt.err (!%p6457_p7)
}
  0xce   : > { %s6461_s6 = scalar_lea.vmem %s7090_s5, 1024  ;;  %s6686_s1 = smov [#allocation8]  }
  0xcf   : > { %p6462_p4 = scmp.ne.s32.totalorder %s7090_s5, %s6461_s6  ;;  %s6466_s13 = sshll.u32 %s6686_s1, 4  ;;  %s6467_s13 = int_to_ptr.vmem [resolvable:$false] %s6466_s13 }
  0xd0   : > { %s6468_s17 = scalar_lea.vmem %s6467_s13, 2048  ;;  %p6469_p6 = scmp.lt.s32.totalorder %s7090_s5, %s6467_s13 }
  0xd1   : > { %p6464_p8 = pnand %p6462_p4, %p6907_p10  ;;  %p6470_p9 = scmp.lt.s32.totalorder %s6468_s17, %s6461_s6 }
  0xd3   : > { %p6465_p3 = pneg %p6464_p8  ;;  %p6471_p0 = por %p6470_p9, %p6469_p6 }
  0xd5   : > { %p6472_p5 = pnand %p6471_p0, %p6465_p3 }
  0xd7   : > { %6475 = shalt.err (!%p6472_p5)
}
  0xd8   : > { %s6687_s15 = smov 4   ;;  %p8013_p2 = scmp.ne.s32.totalorder %s7990_s18, 0 }
  0xd9   : > { %s8014_s20 = smov 64   ;;  %s8015_s27 = scalar_lea.sflag [#allocation7], %s6880_s14 }
  0xda   : > { %5992 = dma.hbm_to_vmem [thread:$0]  (!%p8013_p2), %s7088_s12, 1024, %s7090_s5, %s8015_s27, %s8014_s20, %s8014_s20, %s6687_s15  }
  0xdb   : > { %s5656_s24 = sshll.u32 %s6666_s26, 8  ;;  %s8016_s8 = sld [smem:[#allocation49_spill]] }
  0xdc   : > { %s602_s1 = scalar_lea.vmem [#allocation11], %s5307_s10 }
  0xdd   : > { %s610_s13 = sshll.u32 %s602_s1, 4  ;;  %s611_s13 = int_to_ptr.vmem [resolvable:$true] %s610_s13 }
  0xe1   : > { %s7123_s6 = scalar_lea.hbm %s8016_s8, %s5656_s24  ;;  %s6481_s27 = scalar_lea.hbm %s8016_s8, 512 }
  0xe2   : > { %s6476_s17 = scalar_lea.hbm %s7123_s6, 256  ;;  %p6482_p1 = scmp.lt.u32.totalorder %s7123_s6, %s8016_s8 }
  0xe3   : > { %p6477_p11 = scmp.ne.s32.totalorder %s7123_s6, %s6476_s17  ;;  %p6483_p7 = scmp.lt.u32.totalorder %s6481_s27, %s6476_s17 }
  0xe4   : > { %p6485_p8 = scmp.lt.u32.totalorder %s6476_s17, %s7123_s6 }
  0xe5   : > { %p6479_p13 = pnand %p6477_p11, %p6907_p10  ;;  %p6484_p4 = por %p6483_p7, %p6482_p1 }
  0xe7   : > { %p6480_p12 = pneg %p6479_p13  ;;  %p6486_p3 = por %p6485_p8, %p6484_p4 }
  0xe9   : > { %p6487_p6 = pnand %p6486_p3, %p6480_p12 }
  0xeb   : > { %6490 = shalt.err (!%p6487_p6)
}
  0xec   : > { %s6491_s25 = scalar_lea.vmem %s611_s13, 256  ;;  %s6688_s10 = smov [#allocation11]  }
  0xed   : > { %p6492_p9 = scmp.ne.s32.totalorder %s611_s13, %s6491_s25  ;;  %s6496_s0 = sshll.u32 %s6688_s10, 4  ;;  %s6497_s0 = int_to_ptr.vmem [resolvable:$false] %s6496_s0 }
  0xee   : > { %s6498_s1 = scalar_lea.vmem %s6497_s0, 512  ;;  %p6499_p11 = scmp.lt.s32.totalorder %s611_s13, %s6497_s0 }
  0xef   : > { %p6494_p0 = pnand %p6492_p9, %p6907_p10  ;;  %p6500_p13 = scmp.lt.s32.totalorder %s6498_s1, %s6491_s25 }
  0xf1   : > { %p6495_p5 = pneg %p6494_p0  ;;  %p6501_p2 = por %p6500_p13, %p6499_p11 }
  0xf3   : > { %p6502_p1 = pnand %p6501_p2, %p6495_p5 }
  0xf5   : > { %6505 = shalt.err (!%p6502_p1)
}
  0xf6   : > { %p8017_p7 = scmp.ne.s32.totalorder %s7990_s18, 0  ;;  %s8018_s17 = scalar_lea.sflag [#allocation10], %s6880_s14 }
  0xf7   : > { %s618_s5 = scalar_lea.sflag [#allocation13], %s6880_s14  ;;  %s6506_s12 = scalar_lea.hbm %s6975_s2, 16384 }
  0xf8   : > { %5998 = dma.hbm_to_vmem [thread:$0]  (!%p8017_p7), %s7123_s6, 256, %s611_s13, %s8018_s17  }
  0xf9   : > { %p6507_p12 = scmp.ne.s32.totalorder %s6975_s2, %s6506_s12  ;;  %s6511_s24 = scalar_lea.hbm %s7995_s9, 32768 }
  0xfa   : > { %p6512_p2 = scmp.lt.u32.totalorder %s6975_s2, %s7995_s9  ;;  %p6513_p3 = scmp.lt.u32.totalorder %s6511_s24, %s6506_s12 }
  0xfb   : > { %p6509_p4 = pnand %p6507_p12, %p6907_p10  ;;  %p6515_p9 = scmp.lt.u32.totalorder %s6506_s12, %s6975_s2 }
  0xfc   : > { %p6514_p6 = por %p6513_p3, %p6512_p2 }
  0xfd   : > { %p6510_p8 = pneg %p6509_p4 }
  0xfe   : > { %p6516_p0 = por %p6515_p9, %p6514_p6 }
 0x100   : > { %p6517_p5 = pnand %p6516_p0, %p6510_p8 }
 0x102   : > { %6520 = shalt.err (!%p6517_p5)
}
 0x103   : > { %s6521_s6 = scalar_lea.vmem %s6979_s11, 16384  ;;  %s6689_s13 = smov [#allocation12]  }
 0x104   : > { %p6522_p11 = scmp.ne.s32.totalorder %s6979_s11, %s6521_s6  ;;  %s6526_s0 = sshll.u32 %s6689_s13, 4  ;;  %s6527_s0 = int_to_ptr.vmem [resolvable:$false] %s6526_s0 }
 0x105   : > { %s6528_s1 = scalar_lea.vmem %s6527_s0, 32768  ;;  %p6529_p12 = scmp.lt.s32.totalorder %s6979_s11, %s6527_s0 }
 0x106   : > { %p6524_p13 = pnand %p6522_p11, %p6907_p10  ;;  %p6530_p4 = scmp.lt.s32.totalorder %s6528_s1, %s6521_s6 }
 0x108   : > { %p6525_p1 = pneg %p6524_p13  ;;  %p6531_p2 = por %p6530_p4, %p6529_p12 }
 0x10a   : > { %p6532_p3 = pnand %p6531_p2, %p6525_p1 }
 0x10c   : > { %6535 = shalt.err (!%p6532_p3)
}
 0x10d   : > { %6001 = dma.hbm_to_vmem [thread:$0]  (!%p8017_p7), %s6975_s2, 16384, %s6979_s11, %s618_s5, %s8014_s20, %s8014_s20, %s6687_s15  }
 0x10e   : > { %s8019_s4 = sld [smem:[#allocation33_spill]] }
 0x114   : > { %p8020_p10 = scmp.ne.s32.totalorder %s8019_s4, 0 }
 0x116   : > { %658 = sbr.rel (%p8020_p10) target bundleno = 3288 (0xcd8), region = 80 }
 0x11d   : > { %s7176_s17 = sand.u32 1, %s6650_s22   ;;  %p8022_p8 = scmp.ne.s32.totalorder %s8000_s16, 0 }
 0x11e   : > { %8021 = sst [smem:[#allocation40_spill]] %s7176_s17  ;;  %s5314_s12 = sshll.u32 %s7176_s17, 2 }
 0x11f   : > { %s661_s27 = scalar_lea.sflag [#allocation4], %s7176_s17  ;;  %s7180_s18 = scalar_lea.vmem [#allocation3], %s5314_s12 }
 0x120   : > { %6609 = dma.done.wait (%p8022_p8), %s661_s27, 64  }
 0x121   : > { %6611 = vsyncadd (%p8022_p8), %s661_s27, 4294967232  ;;  %s8023_s14 = sld [smem:[#allocation22_spill]]  ;;  %s8024_s2 = sld [smem:[#allocation32_spill]] }
 0x122   : > { %s669_s11 = sand.u32 1, %s6834_s29  }
 0x123   : > { %s670_s5 = scalar_lea.sflag [#allocation7], %s669_s11 }
 0x127   : > { %s671_s15 = sand.u32 1, %s8023_s14   ;;  %p8025_p7 = scmp.ne.s32.totalorder %s8024_s2, 0 }
 0x128   : > { %s5959_s20 = smul.u32 192, %s671_s15 }
 0x12a   : > { %s7188_s30 = scalar_lea.vmem [#allocation6], %s5959_s20 }
 0x12b   : > { %6613 = dma.done.wait (%p8025_p7), %s670_s5, 4096  }
 0x12c   : > { %6615 = vsyncadd (%p8025_p7), %s670_s5, 4294963200  ;;  %s5315_s24 = sshll.u32 %s671_s15, 6  ;;  %s5316_s25 = sshll.u32 %s671_s15, 10 }
 0x12d   : > { %s7194_s10 = scalar_lea.vmem [#allocation8], %s5315_s24  ;;  %s688_s16 = scalar_lea.sflag [#allocation10], %s669_s11 }
 0x12e   : > { %s7196_s6 = scalar_lea.vmem [#allocation9], %s5316_s25 }
 0x12f   : > { %6617 = dma.done.wait (%p8025_p7), %s688_s16, 16640  }
 0x130   : > { %6619 = vsyncadd (%p8025_p7), %s688_s16, 4294950656  ;;  %s5317_s13 = sshll.u32 %s671_s15, 4  ;;  %s706_s1 = scalar_lea.sflag [#allocation13], %s669_s11 }
 0x131   : > { %s7202_s0 = scalar_lea.vmem [#allocation11], %s5317_s13  ;;  %s7204_s4 = scalar_lea.vmem [#allocation12], %s5316_s25 }
 0x132   : > { %6621 = dma.done.wait (%p8025_p7), %s706_s1, 16384  }
 0x133   : > { %6623 = vsyncadd (%p8025_p7), %s706_s1, 4294950912  ;;  %p8026_p6 = scmp.eq.s32.totalorder %s6834_s29, 0 }
 0x135   : > { %6625 = dma.done.wait (%p8026_p6), [#allocation13], 2048   ;;  %p8027_p9 = pmov %p8026_p6 }
 0x136   : > { %s8028_s12 = sld [smem:[#allocation27_spill]]  ;;  %s5320_s27 = sshll.u32 %s7176_s17, 4 }
 0x137   : > { %6627 = vsyncadd (%p8027_p9), [#allocation13], 4294965248  ;;  %s8031_s3 = sld [smem:[#allocation47_spill]]  ;;  %s8032_s23 = sld [smem:[#allocation43_spill]] }
 0x138   : > { %s8033_s28 = sld [smem:[#allocation51_spill]]  ;;  %s8034_s15 = sld [smem:[#allocation52_spill]] }
 0x139   : > { %s8035_s24 = sld [smem:[#allocation53_spill]]  ;;  %s7249_s16 = scalar_lea.vmem [#allocation15], %s5320_s27 }
 0x13c   : > { %p807_p0 = scmp.lt.s32.totalorder %s8028_s12, 1  ;;  %p5321_p5 = scmp.ne.s32.totalorder %s8028_s12, 0 }
 0x13d   : > { %v834_v0 = vld [vmem:[%s7180_s18] sm:$0xf] (!%p5321_p5) }
 0x13e   : > { %s7217_s14 = scalar_select %p807_p0, %s8028_s12, 1 }
 0x13f   : > { %833 = sbr.rel (%p5321_p5) target bundleno = 326 (0x146), region = 112  ;;  %v835_v1 = vunpack.c.l.bf16 (!%p5321_p5), %v834_v0 }
 0x140   : > { %s5960_s2 = smul.u32 3, %s7217_s14  ;;  %s819_s8 = scalar_lea.vmem %s8031_s3, %s7217_s14 }
 0x141   : > { %s822_s19 = scalar_lea.vmem %s8033_s28, %s7217_s14  ;;  %s825_s20 = scalar_lea.vmem %s8034_s15, %s7217_s14  ;;  %836 = vst [vmem:[#allocation2] sm:$0xff] (!%p5321_p5), %v835_v1 }
 0x142   : > { %s7235_s22 = scalar_lea.vmem %s8032_s23, %s5960_s2  ;;  %s828_s25 = scalar_lea.vmem %s8035_s24, %s7217_s14 }
 0x146 PF: > { %v6115_v2 = vld [vmem:[%s7188_s30 + $0x4] ss:$12 sps:$4 sm:$0xff]   ;;  %v6117_v3 = vld [vmem:[%s7188_s30] ss:$12 sps:$4 sm:$0xff]   ;;  %v6690_v4 = vmov 0   ;;  %v6691_v22 = vmov 0.0   ;;  %v873_v25 = vlaneseq }
 0x147   : > { %1048 = vmatprep.mubr.bf16.mxu0 %v6690_v4  ;;  %1016 = vmatprep.subr.bf16.mxu0 %v6115_v2  ;;  %v6118_v5 = vld [vmem:[%s7188_s30 + $0x1c] ss:$12 sps:$4 sm:$0xff]   ;;  %v6120_v6 = vld [vmem:[%s7188_s30 + $0x18] ss:$12 sps:$4 sm:$0xff]   ;;  %v6121_v7 = vld [vmem:[%s7188_s30 + $0x34] ss:$12 sps:$4 sm:$0xff]  }
 0x148   : > { %1017 = vmatpush1.bf16.msra.mxu0 %v6117_v3  ;;  %v6123_v8 = vld [vmem:[%s7188_s30 + $0x30] ss:$12 sps:$4 sm:$0xff]   ;;  %v6124_v9 = vld [vmem:[%s7188_s30 + $0x4c] ss:$12 sps:$4 sm:$0xff]   ;;  %v6126_v10 = vld [vmem:[%s7188_s30 + $0x48] ss:$12 sps:$4 sm:$0xff]   ;;  %5869 = vmatprep.subr.bf16.mxu1 %v6691_v22 }
 0x149   : > { %1018 = vmatprep.subr.bf16.mxu0 %v6118_v5  ;;  %v6127_v11 = vld [vmem:[%s7188_s30 + $0x64] ss:$12 sps:$4 sm:$0xff]   ;;  %v6129_v12 = vld [vmem:[%s7188_s30 + $0x60] ss:$12 sps:$4 sm:$0xff]   ;;  %v6130_v13 = vld [vmem:[%s7188_s30 + $0x7c] ss:$12 sps:$4 sm:$0xff]  }
 0x14a   : > { %v6132_v14 = vld [vmem:[%s7188_s30 + $0x78] ss:$12 sps:$4 sm:$0xff]   ;;  %v6133_v15 = vld [vmem:[%s7188_s30 + $0x94] ss:$12 sps:$4 sm:$0xff]   ;;  %v6135_v16 = vld [vmem:[%s7188_s30 + $0x90] ss:$12 sps:$4 sm:$0xff]  }
 0x14b   : > { %v6136_v17 = vld [vmem:[%s7188_s30 + $0xac] ss:$12 sps:$4 sm:$0xff]   ;;  %v6138_v18 = vld [vmem:[%s7188_s30 + $0xa8] ss:$12 sps:$4 sm:$0xff]   ;;  %v6142_v26 = vld [vmem:[%s7188_s30 + $0x50] ss:$12 sps:$4 sm:$0xff]  }
 0x14c   : > { %1019 = vmatpush1.bf16.msra.mxu0 %v6120_v6  ;;  %v837_v19 = vld [vmem:[#allocation2] sm:$0xff]  ;;  %v6140_v23 = vld [vmem:[%s7188_s30 + $0x20] ss:$12 sps:$4 sm:$0xff]   ;;  %v6141_v24 = vld [vmem:[%s7188_s30 + $0x38] ss:$12 sps:$4 sm:$0xff]   ;;  %v7279_v27 = vshrl.u32 %v873_v25, 7 }
 0x14d   : > { %1020 = vmatprep.subr.bf16.mxu0 %v6121_v7  ;;  %v838_v20 = vpack.c.bf16 %v837_v19, %v837_v19  ;;  %v6139_v21 = vld [vmem:[%s7188_s30 + $0x8] ss:$12 sps:$4 sm:$0xff]   ;;  %v7287_v30 = vld [vmem:[%s7235_s22] sm:$0x7]  ;;  %v6144_v33 = vld [vmem:[%s7188_s30 + $0x80] ss:$12 sps:$4 sm:$0xff]  }
 0x14e   : > { %5870 = vmatpush3.bf16.msra.mxu1 %v6139_v21  ;;  %v6143_v28 = vld [vmem:[%s7188_s30 + $0x68] ss:$12 sps:$4 sm:$0xff]   ;;  %v7284_v29 = vsub.s32 1, %v7279_v27  ;;  %v7291_v31 = vsub.s32 0, %v7279_v27  ;;  %v6145_v39 = vld [vmem:[%s7188_s30 + $0x98] ss:$12 sps:$4 sm:$0xff]  }
 0x14f   : > { %5871 = vmatprep.subr.bf16.mxu1 %v6691_v22  ;;  %s6692_s3 = smov 32   ;;  %s6693_s7 = smov 96   ;;  %v6146_v42 = vld [vmem:[%s7188_s30 + $0xb0] ss:$12 sps:$4 sm:$0xff]   ;;  %vm6695_vm0 = vmmov 0   ;;  %vm1543_vm1 = vcmask 261120  }
 0x150   : > { %1021 = vmatpush1.bf16.msra.mxu0 %v6123_v8  ;;  %v880_v32 = vrot.slane %v7287_v30, %v7284_v29  ;;  %v876_v36 = vrot.slane %v7287_v30, %v7291_v31  ;;  %s6694_s9 = smov 64   ;;  %5885 = vmatprep.mubr.msk.bf16.mxu1 %vm6695_vm0, %v6691_v22  ;;  %v6696_v43 = vmov 1983009808   ;;  %v6697_v45 = vmov 1934713408   ;;  %s8036_s23 = sld [smem:[#allocation45_spill]] }
 0x151   : > { %1022 = vmatprep.subr.bf16.mxu0 %v6124_v9  ;;  %v1110_v44 = vunpack.c.l.s4 %v6696_v43  ;;  %v1142_v46 = vunpack.c.l.s4 %v6697_v45  ;;  %vm1732_vm2 = vcmask 64512   ;;  %vm1788_vm3 = vcmask 1043456   ;;  %s8038_s18 = sld [smem:[#allocation46_spill]]  ;;  %s8044_s11 = sld [smem:[#allocation27_spill]] }
 0x152   : > { %5872 = vmatpush3.bf16.msra.mxu1 %v6140_v23  ;;  %vm2119_vm4 = vcmask 523264   ;;  %vm2121_vm5 = vcmask 785408  }
 0x153   : > { %5873 = vmatprep.subr.bf16.mxu1 %v6691_v22  ;;  %v1111_v47 = vunpack.c.0.s8 %v1110_v44  ;;  %v1143_v50 = vunpack.c.0.s8 %v1142_v46 }
 0x154   : > { %1023 = vmatpush1.bf16.msra.mxu0 %v6126_v10 }
 0x155   : > { %1024 = vmatprep.subr.bf16.mxu0 %v6127_v11  ;;  %v7316_v51 = vsub.s32 %v1111_v47, %v7279_v27  ;;  %v7319_v58 = vsub.s32 %v1143_v50, %v7279_v27 }
 0x156   : > { %5874 = vmatpush3.bf16.msra.mxu1 %v6141_v24  ;;  %s8037_s26 = scalar_lea.vmem %s8036_s23, %s7217_s14 }
 0x157   : > { %5875 = vmatprep.subr.bf16.mxu1 %v6691_v22  ;;  %s8039_s30 = scalar_lea.vmem %s8038_s18, %s7217_s14  ;;  %p5632_p11 = scmp.ne.s32.totalorder %s8044_s11, 1 }
 0x158   : > { %1025 = vmatpush1.bf16.msra.mxu0 %v6129_v12 }
 0x159   : > { %1026 = vmatprep.subr.bf16.mxu0 %v6130_v13 }
 0x15a   : > { %5876 = vmatpush3.bf16.msra.mxu1 %v6142_v26 }
 0x15b   : > { %5877 = vmatprep.subr.bf16.mxu1 %v6691_v22 }
 0x15c   : > { %1027 = vmatpush1.bf16.msra.mxu0 %v6132_v14 }
 0x15d   : > { %1028 = vmatprep.subr.bf16.mxu0 %v6133_v15 }
 0x15e   : > { %5878 = vmatpush3.bf16.msra.mxu1 %v6143_v28 }
 0x15f   : > { %5879 = vmatprep.subr.bf16.mxu1 %v6691_v22 }
 0x160   : > { %1029 = vmatpush1.bf16.msra.mxu0 %v6135_v16 }
 0x161   : > { %1030 = vmatprep.subr.bf16.mxu0 %v6136_v17 }
 0x162   : > { %5880 = vmatpush3.bf16.msra.mxu1 %v6144_v33 }
 0x163   : > { %5881 = vmatprep.subr.bf16.mxu1 %v6691_v22 }
 0x164   : > { %1031 = vmatpush1.bf16.msra.mxu0 %v6138_v18 }
 0x165   : > { %5913 = vmatprep.subr.bf16.mxu0 %v6691_v22 }
 0x166   : > { %5882 = vmatpush3.bf16.msra.mxu1 %v6145_v39 }
 0x167   : > { %1049 = vmatmul.mubr.bf16.vlgmr.msra.gmra.mrb[0].mxu0 %v838_v20  ;;  %5883 = vmatprep.subr.bf16.mxu1 %v6691_v22 }
 0x168   : > { %5915 = vmatprep.mubr.msk.bf16.mxu0 %vm6695_vm0, %v6691_v22 }
 0x16a   : > { %5884 = vmatpush3.bf16.msra.mxu1 %v6146_v42 }
 0x16b   : > { %5889 = vmatprep.subr.bf16.mxu1 %v6691_v22 }
 0x16d   : > { %5886 = vmatmul.mubr.bf16.vlgmr.msra.gmra.mrb[0].mxu1 %v838_v20 }
 0x16e   : > { %5891 = vmatprep.mubr.msk.bf16.mxu1 %vm6695_vm0, %v6691_v22 }
 0x23a   : > { %v1050_v34 = vpop.f32.mrb[0].mxu0 }
 0x23b   : > { %v1052_v35 = vpop.f32.mrb[1].mxu0  ;;  %v1051_v41 = vadd.f32 %v1050_v34, %v876_v36 }
 0x23c   : > { %v1053_v37 = vadd.f32 %v1052_v35, %v880_v32  ;;  %v1054_v38 = vpop.f32.mrb[2].mxu0 }
 0x23d   : > { %v1055_v40 = vpop.f32.mrb[3].mxu0 }
 0x23e   : > { %1250 = vrot.lane.b32.xlu1 %v1053_v37, %s6692_s3  ;;  %1244 = vrot.lane.b32.xlu0 %v1053_v37, %s6693_s7 }
 0x242   : > { %1247 = vrot.lane.b32.xlu0 %v1053_v37, %s6694_s9  ;;  %1098 = vrot.lane.b32.xlu1 %v1051_v41, %s6693_s7 }
 0x246   : > { %1101 = vrot.lane.b32.xlu0 %v1051_v41, %s6694_s9  ;;  %1104 = vrot.lane.b32.xlu1 %v1051_v41, %s6692_s3 }
 0x2b0   : > { %v1251_v48 = vpop.permute.xlu1 %1250  ;;  %v1245_v49 = vpop.permute.xlu0 %1244 }
 0x2b1   : > { %v1269_v52 = vcombine.low %v1245_v49, %v1251_v48  ;;  %v1270_v53 = vcombine.high %v1245_v49, %v1251_v48 }
 0x2b3   : > { %v1277_v59 = vrot.slane %v1269_v52, %v7316_v51  ;;  %v1284_v60 = vrot.slane %v1270_v53, %v7316_v51 }
 0x2b4   : > { %v1248_v54 = vpop.permute.xlu0 %1247  ;;  %v1099_v55 = vpop.permute.xlu1 %1098 }
 0x2b5   : > { %v1253_v56 = vcombine.low %v1053_v37, %v1248_v54  ;;  %v1254_v57 = vcombine.high %v1053_v37, %v1248_v54 }
 0x2b7   : > { %v1261_v61 = vrot.slane %v1253_v56, %v7316_v51  ;;  %v1268_v62 = vrot.slane %v1254_v57, %v7316_v51 }
 0x2b8   : > { %v1102_v63 = vpop.permute.xlu0 %1101  ;;  %v1105_v0 = vpop.permute.xlu1 %1104 }
 0x2b9   : > { %v1285_v1 = vcombine.low %v1261_v61, %v1277_v59  ;;  %v1286_v2 = vcombine.high %v1261_v61, %v1277_v59  ;;  %v1301_v3 = vcombine.low %v1268_v62, %v1284_v60  ;;  %v1302_v5 = vcombine.high %v1268_v62, %v1284_v60 }
 0x2ba   : > { %v1107_v6 = vcombine.low %v1051_v41, %v1102_v63  ;;  %v1108_v7 = vcombine.high %v1051_v41, %v1102_v63  ;;  %v1123_v8 = vcombine.low %v1099_v55, %v1105_v0  ;;  %v1124_v9 = vcombine.high %v1099_v55, %v1105_v0 }
 0x2bb   : > { %v1293_v10 = vrot.slane %v1285_v1, %v7319_v58  ;;  %v1300_v11 = vrot.slane %v1286_v2, %v7319_v58  ;;  %v1309_v12 = vrot.slane %v1301_v3, %v7319_v58  ;;  %v1316_v13 = vrot.slane %v1302_v5, %v7319_v58 }
 0x2bc   : > { %v1115_v14 = vrot.slane %v1107_v6, %v7316_v51  ;;  %v1122_v15 = vrot.slane %v1108_v7, %v7316_v51  ;;  %v1131_v16 = vrot.slane %v1123_v8, %v7316_v51  ;;  %v1138_v17 = vrot.slane %v1124_v9, %v7316_v51 }
 0x2bd   : > { %v1321_v18 = vcombine.low %v1293_v10, %v1300_v11  ;;  %v5348_v19 = vcombine.high %v1293_v10, %v1300_v11  ;;  %v1337_v20 = vcombine.low %v1309_v12, %v1316_v13  ;;  %v5349_v21 = vcombine.high %v1309_v12, %v1316_v13 }
 0x2be   : > { %v1139_v23 = vcombine.low %v1115_v14, %v1131_v16  ;;  %v1140_v24 = vcombine.high %v1115_v14, %v1131_v16  ;;  %v1155_v25 = vcombine.low %v1122_v15, %v1138_v17  ;;  %v1156_v26 = vcombine.high %v1122_v15, %v1138_v17 }
 0x2bf   : > { %v1328_v28 = vrot.slane %v1321_v18, %v7316_v51  ;;  %v1336_v32 = vrot.slane %v5348_v19, %v7316_v51  ;;  %v1344_v33 = vrot.slane %v1337_v20, %v7316_v51  ;;  %v1352_v34 = vrot.slane %v5349_v21, %v7316_v51 }
 0x2c0   : > { %v1147_v35 = vrot.slane %v1139_v23, %v7319_v58  ;;  %v1154_v36 = vrot.slane %v1140_v24, %v7319_v58  ;;  %v1163_v37 = vrot.slane %v1155_v25, %v7319_v58  ;;  %v1170_v38 = vrot.slane %v1156_v26, %v7319_v58  ;;  %v1091_v23 = vpop.f32.mrb[0].mxu1 }
 0x2c1   : > { %v1353_v39 = vcombine.low %v1328_v28, %v1336_v32  ;;  %v1369_v40 = vcombine.low %v1344_v33, %v1352_v34  ;;  %v1354_v61 = vcombine.high %v1328_v28, %v1336_v32  ;;  %v1370_v62 = vcombine.high %v1344_v33, %v1352_v34  ;;  %v5887_v24 = vpop.f32.mrb[1].mxu1 }
 0x2c2   : > { %v1175_v41 = vcombine.low %v1147_v35, %v1154_v36  ;;  %v5346_v42 = vcombine.high %v1147_v35, %v1154_v36  ;;  %v1191_v43 = vcombine.low %v1163_v37, %v1170_v38  ;;  %v5347_v44 = vcombine.high %v1163_v37, %v1170_v38  ;;  %v1094_v25 = vpop.f32.mrb[2].mxu1 }
 0x2c3   : > { %v1361_v45 = vrot.slane %v1353_v39, %v7319_v58  ;;  %v1377_v46 = vrot.slane %v1369_v40, %v7319_v58  ;;  %v1368_v1 = vrot.slane %v1354_v61, %v7319_v58  ;;  %v1384_v2 = vrot.slane %v1370_v62, %v7319_v58  ;;  %v5888_v26 = vpop.f32.mrb[3].mxu1 }
 0x2c4   : > { %v1182_v47 = vrot.slane %v1175_v41, %v7316_v51  ;;  %v1190_v48 = vrot.slane %v5346_v42, %v7316_v51  ;;  %v1198_v49 = vrot.slane %v1191_v43, %v7316_v51  ;;  %v1206_v50 = vrot.slane %v5347_v44, %v7316_v51 }
 0x2c5   : > { %v1385_v52 = vcombine.low %v1361_v45, %v1377_v46  ;;  %v1386_v60 = vcombine.high %v1361_v45, %v1377_v46  ;;  %v1387_v6 = vcombine.low %v1368_v1, %v1384_v2  ;;  %v1388_v15 = vcombine.high %v1368_v1, %v1384_v2 }
 0x2c6   : > { %v1207_v53 = vcombine.low %v1182_v47, %v1190_v48  ;;  %v1223_v54 = vcombine.low %v1198_v49, %v1206_v50  ;;  %v1208_v7 = vcombine.high %v1182_v47, %v1190_v48  ;;  %v1224_v8 = vcombine.high %v1198_v49, %v1206_v50 }
 0x2c7   : > { %v1539_v55 = vpack.c.bf16 %v1385_v52, %v1385_v52  ;;  %v1540_v0 = vpack.c.bf16 %v1386_v60, %v1386_v60  ;;  %v1541_v10 = vpack.c.bf16 %v1387_v6, %v1387_v6  ;;  %v1542_v17 = vpack.c.bf16 %v1388_v15, %v1388_v15 }
 0x2c8   : > { %v1215_v56 = vrot.slane %v1207_v53, %v7319_v58  ;;  %v1231_v57 = vrot.slane %v1223_v54, %v7319_v58  ;;  %v1222_v12 = vrot.slane %v1208_v7, %v7319_v58  ;;  %v1238_v13 = vrot.slane %v1224_v8, %v7319_v58 }
 0x2c9   : > { %v1548_v59 = vsel %vm1543_vm1, %v1539_v55, 0  ;;  %v1594_v5 = vsel %vm1543_vm1, %v1540_v0, 0  ;;  %v1640_v14 = vsel %vm1543_vm1, %v1541_v10, 0  ;;  %v1686_v19 = vsel %vm1543_vm1, %v1542_v17, 0 }
 0x2ca   : > { %5890 = vmatpush3.bf16.xpose.msra.mxu1 %v1548_v59  ;;  %v1239_v63 = vcombine.low %v1215_v56, %v1231_v57  ;;  %v1240_v9 = vcombine.high %v1215_v56, %v1231_v57  ;;  %v1241_v16 = vcombine.low %v1222_v12, %v1238_v13  ;;  %v1242_v20 = vcombine.high %v1222_v12, %v1238_v13 }
 0x2cb   : > { %5895 = vmatprep.subr.bf16.mxu1 %v6691_v22  ;;  %v7376_v47 = vsub.s32 2, %v7279_v27 }
 0x2cc   : > { %v1535_v3 = vpack.c.bf16 %v1239_v63, %v1239_v63  ;;  %v1536_v11 = vpack.c.bf16 %v1240_v9, %v1240_v9  ;;  %v1537_v18 = vpack.c.bf16 %v1241_v16, %v1241_v16  ;;  %v1538_v21 = vpack.c.bf16 %v1242_v20, %v1242_v20 }
 0x2cd   : > { %v884_v50 = vrot.slane %v7287_v30, %v7376_v47 }
 0x2cf   : > { %v1092_v56 = vadd.f32 %v1091_v23, %v884_v50 }
 0x2d1   : > { %5892 = vmatmul.mubr.msk.bf16.vlgmr.msra.gmra.mrb[4].mxu1 %vm1543_vm1, %v1535_v3 }
 0x2d2   : > { %5896 = vmatpush3.bf16.xpose.msra.mxu1 %v1594_v5  ;;  %5897 = vmatprep.mubr.msk.bf16.mxu1 %vm6695_vm0, %v6691_v22 }
 0x2d3   : > { %5901 = vmatprep.subr.bf16.mxu1 %v6691_v22 }
 0x2d9   : > { %5898 = vmatmul.mubr.msk.bf16.vlgmr.msra.gmra.mrb[8].mxu1 %vm1543_vm1, %v1536_v11 }
 0x2da   : > { %5902 = vmatpush3.bf16.xpose.msra.mxu1 %v1640_v14  ;;  %5903 = vmatprep.mubr.msk.bf16.mxu1 %vm6695_vm0, %v6691_v22 }
 0x2db   : > { %5907 = vmatprep.subr.bf16.mxu1 %v6691_v22 }
 0x2e1   : > { %5904 = vmatmul.mubr.msk.bf16.vlgmr.msra.gmra.mrb[12].mxu1 %vm1543_vm1, %v1537_v18 }
 0x2e2   : > { %5908 = vmatpush3.bf16.xpose.msra.mxu1 %v1686_v19  ;;  %5909 = vmatprep.mubr.msk.bf16.mxu1 %vm6695_vm0, %v6691_v22 }
 0x2e3   : > { %5919 = vmatprep.subr.bf16.mxu1 %v6691_v22 }
 0x2e9   : > { %5910 = vmatmul.mubr.msk.bf16.vlgmr.msra.gmra.mrb[16].mxu1 %vm1543_vm1, %v1538_v21 }
 0x2ea   : > { %5921 = vmatprep.mubr.msk.bf16.mxu1 %vm6695_vm0, %v6691_v22 }
 0x3a4   : > { %v1584_v28 = vpop.f32.mrb[4].mxu1 }
 0x3a5   : > { %v1728_v32 = vmul.f32 0.17677669, %v1584_v28  ;;  %v5893_v33 = vpop.f32.mrb[5].mxu1 }
 0x3a6   : > { %v1587_v34 = vpop.f32.mrb[6].mxu1 }
 0x3a7   : > { %v5894_v35 = vpop.f32.mrb[7].mxu1  ;;  %v1733_v36 = vsel %vm1732_vm2, %v1728_v32, -inf }
 0x3a8   : > { %1734 = vmax.xlane.f32.xlu0 %v1733_v36 }
 0x3ac   : > { %v1630_v37 = vpop.f32.mrb[8].mxu1 }
 0x3ad   : > { %v1729_v38 = vmul.f32 0.17677669, %v1630_v37  ;;  %v5899_v39 = vpop.f32.mrb[9].mxu1 }
 0x3ae   : > { %v1633_v40 = vpop.f32.mrb[10].mxu1 }
 0x3af   : > { %v5900_v41 = vpop.f32.mrb[11].mxu1  ;;  %v1736_v42 = vsel %vm1732_vm2, %v1729_v38, -inf }
 0x3b0   : > { %1737 = vmax.xlane.f32.xlu1 %v1736_v42 }
 0x3b4   : > { %v1676_v43 = vpop.f32.mrb[12].mxu1 }
 0x3b5   : > { %v1730_v44 = vmul.f32 0.17677669, %v1676_v43  ;;  %v5905_v45 = vpop.f32.mrb[13].mxu1 }
 0x3b6   : > { %v1679_v46 = vpop.f32.mrb[14].mxu1 }
 0x3b7   : > { %v5906_v48 = vpop.f32.mrb[15].mxu1  ;;  %v1739_v49 = vsel %vm1732_vm2, %v1730_v44, -inf }
 0x3b8   : > { %1740 = vmax.xlane.f32.xlu0 %v1739_v49 }
 0x3bc   : > { %v1722_v52 = vpop.f32.mrb[16].mxu1 }
 0x3bd   : > { %v1731_v53 = vmul.f32 0.17677669, %v1722_v52  ;;  %v5911_v54 = vpop.f32.mrb[17].mxu1 }
 0x3be   : > { %v1725_v55 = vpop.f32.mrb[18].mxu1 }
 0x3bf   : > { %v5912_v57 = vpop.f32.mrb[19].mxu1  ;;  %v1742_v59 = vsel %vm1732_vm2, %v1731_v53, -inf }
 0x3c0   : > { %1743 = vmax.xlane.f32.xlu0 %v1742_v59 }
 0x3c1   : > { %1390 = vrot.lane.b32.xlu1 %v1092_v56, %s6693_s7 }
 0x435   : > { %v1735_v60 = vpop.xlane.xlu0 %1734 }
 0x436   : > { %v1745_v61 = vsub.f32 %v1728_v32, %v1735_v60 }
 0x438   : > { %v1749_v62 = vmul.f32 1.442695, %v1745_v61 }
 0x43a   : > { %6283 = vpow2.f32 %v1749_v62 }
 0x43d   : > { %v1738_v63 = vpop.xlane.xlu1 %1737 }
 0x43e   : > { %v1746_v0 = vsub.f32 %v1729_v38, %v1738_v63 }
 0x440   : > { %v1751_v1 = vmul.f32 1.442695, %v1746_v0 }
 0x441   : > { %v1391_v16 = vpop.permute.xlu1 %1390 }
 0x442   : > { %6285 = vpow2.f32 %v1751_v1 }
 0x444   : > { %v7383_v30 = vpop.eup %6283 }
 0x445   : > { %v1757_v2 = vsel %vm1732_vm2, %v7383_v30, 0.0  ;;  %v1741_v6 = vpop.xlane.xlu0 %1740 }
 0x446   : > { %1758 = vadd.xlane.f32.xlu1 %v1757_v2  ;;  %v1747_v7 = vsub.f32 %v1730_v44, %v1741_v6 }
 0x448   : > { %v1753_v8 = vmul.f32 1.442695, %v1747_v7 }
 0x44a   : > { %6287 = vpow2.f32 %v1753_v8 }
 0x44c   : > { %v7387_v3 = vpop.eup %6285 }
 0x44d   : > { %v1760_v5 = vsel %vm1732_vm2, %v7387_v3, 0.0  ;;  %v1744_v9 = vpop.xlane.xlu0 %1743 }
 0x44e   : > { %1761 = vadd.xlane.f32.xlu0 %v1760_v5  ;;  %v1748_v10 = vsub.f32 %v1731_v53, %v1744_v9 }
 0x450   : > { %v1755_v11 = vmul.f32 1.442695, %v1748_v10 }
 0x452   : > { %6289 = vpow2.f32 %v1755_v11 }
 0x454   : > { %v7393_v12 = vpop.eup %6287 }
 0x455   : > { %v1763_v13 = vsel %vm1732_vm2, %v7393_v12, 0.0 }
 0x457   : > { %1396 = vrot.lane.b32.xlu1 %v1092_v56, %s6692_s3 }
 0x45c   : > { %v7397_v14 = vpop.eup %6289 }
 0x45d   : > { %v1766_v15 = vsel %vm1732_vm2, %v7397_v14, 0.0 }
 0x464   : > { %1393 = vrot.lane.b32.xlu0 %v1092_v56, %s6694_s9 }
 0x47b   : > { %1764 = vadd.xlane.f32.xlu1 %v1763_v13 }
 0x483   : > { %1767 = vadd.xlane.f32.xlu0 %v1766_v15 }
 0x4d3   : > { %v1759_v17 = vpop.xlane.xlu1 %1758 }
 0x4d4   : > { %6291 = vrcp.f32 %v1759_v17 }
 0x4d7   : > { %v1397_v18 = vpop.permute.xlu1 %1396 }
 0x4d8   : > { %v1415_v20 = vcombine.low %v1391_v16, %v1397_v18  ;;  %v1416_v21 = vcombine.high %v1391_v16, %v1397_v18 }
 0x4da   : > { %v1423_v26 = vrot.slane %v1415_v20, %v7316_v51  ;;  %v1430_v28 = vrot.slane %v1416_v21, %v7316_v51 }
 0x4db   : > { %v1762_v19 = vpop.xlane.xlu0 %1761 }
 0x4dc   : > { %6293 = vrcp.f32 %v1762_v19 }
 0x4df   : > { %v1394_v23 = vpop.permute.xlu0 %1393 }
 0x4e0   : > { %v1399_v24 = vcombine.low %v1092_v56, %v1394_v23  ;;  %v1400_v25 = vcombine.high %v1092_v56, %v1394_v23  ;;  %v6292_v56 = vpop.eup %6291 }
 0x4e1   : > { %v1773_v5 = vmul.f32 %v6292_v56, %v7383_v30 }
 0x4e2   : > { %v1407_v32 = vrot.slane %v1399_v24, %v7316_v51  ;;  %v1414_v33 = vrot.slane %v1400_v25, %v7316_v51 }
 0x4e3   : > { %v1777_v15 = vpack.c.bf16 %v1773_v5, %v1773_v5 }
 0x4e4   : > { %v1431_v34 = vcombine.low %v1407_v32, %v1423_v26  ;;  %v1432_v35 = vcombine.high %v1407_v32, %v1423_v26  ;;  %v1447_v36 = vcombine.low %v1414_v33, %v1430_v28  ;;  %v1448_v37 = vcombine.high %v1414_v33, %v1430_v28  ;;  %v6147_v26 = vld [vmem:[%s7194_s10] sm:$0xff]   ;;  %v6149_v28 = vld [vmem:[%s7194_s10 + $0x10] sm:$0xff]   ;;  %v6150_v32 = vld [vmem:[%s7194_s10 + $0x18] sm:$0xff]  }
 0x4e5   : > { %v6152_v33 = vld [vmem:[%s7194_s10 + $0x28] sm:$0xff]  }
 0x4e6   : > { %v1439_v38 = vrot.slane %v1431_v34, %v7319_v58  ;;  %v1446_v39 = vrot.slane %v1432_v35, %v7319_v58  ;;  %v1455_v40 = vrot.slane %v1447_v36, %v7319_v58  ;;  %v1462_v41 = vrot.slane %v1448_v37, %v7319_v58  ;;  %v6294_v62 = vpop.eup %6293 }
 0x4e7   : > { %v1774_v6 = vmul.f32 %v6294_v62, %v7387_v3 }
 0x4e8   : > { %v1467_v42 = vcombine.low %v1439_v38, %v1446_v39  ;;  %v5350_v43 = vcombine.high %v1439_v38, %v1446_v39  ;;  %v1483_v44 = vcombine.low %v1455_v40, %v1462_v41  ;;  %v5351_v45 = vcombine.high %v1455_v40, %v1462_v41 }
 0x4e9   : > { %v1778_v16 = vpack.c.bf16 %v1774_v6, %v1774_v6 }
 0x4ea   : > { %v1474_v46 = vrot.slane %v1467_v42, %v7316_v51  ;;  %v1482_v48 = vrot.slane %v5350_v43, %v7316_v51  ;;  %v1490_v49 = vrot.slane %v1483_v44, %v7316_v51  ;;  %v1498_v50 = vrot.slane %v5351_v45, %v7316_v51 }
 0x4ec   : > { %v1499_v52 = vcombine.low %v1474_v46, %v1482_v48  ;;  %v1515_v53 = vcombine.low %v1490_v49, %v1498_v50  ;;  %v1500_v54 = vcombine.high %v1474_v46, %v1482_v48  ;;  %v1516_v55 = vcombine.high %v1490_v49, %v1498_v50 }
 0x4ee   : > { %v1507_v57 = vrot.slane %v1499_v52, %v7319_v58  ;;  %v1523_v59 = vrot.slane %v1515_v53, %v7319_v58  ;;  %v1514_v60 = vrot.slane %v1500_v54, %v7319_v58  ;;  %v1530_v61 = vrot.slane %v1516_v55, %v7319_v58 }
 0x4f0   : > { %v1531_v63 = vcombine.low %v1507_v57, %v1523_v59  ;;  %v1532_v0 = vcombine.high %v1507_v57, %v1523_v59  ;;  %v1533_v1 = vcombine.low %v1514_v60, %v1530_v61  ;;  %v1534_v2 = vcombine.high %v1514_v60, %v1530_v61 }
 0x4f2   : > { %v1781_v7 = vpack.c.bf16 %v1531_v63, %v1531_v63  ;;  %v1782_v8 = vpack.c.bf16 %v1532_v0, %v1532_v0  ;;  %v1783_v11 = vpack.c.bf16 %v1533_v1, %v1533_v1  ;;  %v1784_v13 = vpack.c.bf16 %v1534_v2, %v1534_v2  ;;  %v6153_v1 = vld [vmem:[%s7194_s10 + $0x30] sm:$0xff]  }
 0x4f4   : > { %v1790_v9 = vsel %vm1788_vm3, %v1781_v7, 0  ;;  %v1836_v10 = vsel %vm1788_vm3, %v1782_v8, 0  ;;  %v1882_v30 = vsel %vm1788_vm3, %v1783_v11, 0  ;;  %v1928_v3 = vsel %vm1788_vm3, %v1784_v13, 0  ;;  %v6154_v13 = vld [vmem:[%s7194_s10 + $0x38] sm:$0xff]  }
 0x4f5   : > { %5914 = vmatpush3.bf16.msra.mxu0 %v1790_v9  ;;  %5920 = vmatpush3.bf16.msra.mxu1 %v1836_v10 }
 0x4f6   : > { %5925 = vmatprep.subr.bf16.mxu0 %v6691_v22  ;;  %5931 = vmatprep.subr.bf16.mxu1 %v6691_v22 }
 0x4f8   : > { %5916 = vmatmul.mubr.msk.bf16.vlgmr.msra.gmra.mrb[4].mxu0 %vm1732_vm2, %v1777_v15  ;;  %5922 = vmatmul.mubr.msk.bf16.vlgmr.msra.gmra.mrb[20].mxu1 %vm1732_vm2, %v1778_v16 }
 0x4f9   : > { %5926 = vmatpush3.bf16.msra.mxu0 %v1882_v30  ;;  %5932 = vmatpush3.bf16.msra.mxu1 %v1928_v3 }
 0x4fa   : > { %5927 = vmatprep.mubr.msk.bf16.mxu0 %vm6695_vm0, %v6691_v22  ;;  %5933 = vmatprep.mubr.msk.bf16.mxu1 %vm6695_vm0, %v6691_v22 }
 0x4fb   : > { %5937 = vmatprep.subr.bf16.mxu0 %v6691_v22 }
 0x508   : > { %v1765_v17 = vpop.xlane.xlu1 %1764 }
 0x509   : > { %6295 = vrcp.f32 %v1765_v17 }
 0x510   : > { %v1768_v18 = vpop.xlane.xlu0 %1767 }
 0x511   : > { %6297 = vrcp.f32 %v1768_v18 }
 0x513   : > { %v6296_v19 = vpop.eup %6295 }
 0x514   : > { %v1775_v20 = vmul.f32 %v6296_v19, %v7393_v12  ;;  %v6148_v12 = vld [vmem:[%s7194_s10 + $0x8] sm:$0xff]  }
 0x516   : > { %v1779_v21 = vpack.c.bf16 %v1775_v20, %v1775_v20 }
 0x518   : > { %5928 = vmatmul.mubr.msk.bf16.vlgmr.msra.gmra.mrb[8].mxu0 %vm1732_vm2, %v1779_v21 }
 0x519   : > { %5953 = vmatprep.mubr.msk.bf16.mxu0 %vm6695_vm0, %v6691_v22  ;;  %5938 = vmatpush3.bf16.msra.mxu0 %v6147_v26 }
 0x51a   : > { %5939 = vmatprep.subr.bf16.mxu0 %v6691_v22 }
 0x51b   : > { %v6298_v23 = vpop.eup %6297 }
 0x51c   : > { %v1776_v24 = vmul.f32 %v6298_v23, %v7397_v14  ;;  %v6151_v14 = vld [vmem:[%s7194_s10 + $0x20] sm:$0xff]  }
 0x51d   : > { %5940 = vmatpush3.bf16.msra.mxu0 %v6148_v12 }
 0x51e   : > { %v1780_v25 = vpack.c.bf16 %v1776_v24, %v1776_v24  ;;  %5941 = vmatprep.subr.bf16.mxu0 %v6691_v22 }
 0x520   : > { %5934 = vmatmul.mubr.msk.bf16.vlgmr.msra.gmra.mrb[24].mxu1 %vm1732_vm2, %v1780_v25 }
 0x521   : > { %3149 = vmatprep.mubr.bf16.mxu1 %v6690_v4  ;;  %5942 = vmatpush3.bf16.msra.mxu0 %v6149_v28 }
 0x522   : > { %5943 = vmatprep.subr.bf16.mxu0 %v6691_v22 }
 0x525   : > { %5944 = vmatpush3.bf16.msra.mxu0 %v6150_v32 }
 0x526   : > { %5945 = vmatprep.subr.bf16.mxu0 %v6691_v22 }
 0x529   : > { %5946 = vmatpush3.bf16.msra.mxu0 %v6151_v14 }
 0x52a   : > { %5947 = vmatprep.subr.bf16.mxu0 %v6691_v22 }
 0x52d   : > { %5948 = vmatpush3.bf16.msra.mxu0 %v6152_v33 }
 0x52e   : > { %5949 = vmatprep.subr.bf16.mxu0 %v6691_v22 }
 0x531   : > { %5950 = vmatpush3.bf16.msra.mxu0 %v6153_v1 }
 0x532   : > { %5951 = vmatprep.subr.bf16.mxu0 %v6691_v22 }
 0x535   : > { %5952 = vmatpush3.bf16.msra.mxu0 %v6154_v13 }
 0x5cb   : > { %v1826_v34 = vpop.f32.mrb[4].mxu0  ;;  %v1872_v35 = vpop.f32.mrb[20].mxu1 }
 0x5cc   : > { %v5917_v36 = vpop.f32.mrb[5].mxu0  ;;  %v5923_v37 = vpop.f32.mrb[21].mxu1 }
 0x5cd   : > { %v1829_v38 = vpop.f32.mrb[6].mxu0  ;;  %v1875_v39 = vpop.f32.mrb[22].mxu1  ;;  %v5362_v36 = vld [vmem:[%s8037_s26] ss:$0 sm:$0xff] }
 0x5ce   : > { %v5918_v40 = vpop.f32.mrb[7].mxu0  ;;  %v5924_v41 = vpop.f32.mrb[23].mxu1 }
 0x5eb   : > { %v1918_v42 = vpop.f32.mrb[8].mxu0 }
 0x5ec   : > { %v1970_v43 = vcombine.low %v1826_v34, %v1918_v42  ;;  %v1971_v44 = vcombine.high %v1826_v34, %v1918_v42  ;;  %v5929_v45 = vpop.f32.mrb[9].mxu0  ;;  %v6303_v42 = vld [vmem:[#allocation2] sm:$0xff] }
 0x5ed   : > { %v1921_v46 = vpop.f32.mrb[10].mxu0  ;;  %v2273_v45 = vld [vmem:[%s7196_s6 + $0x40] sm:$0xff] }
 0x5ee   : > { %v5930_v48 = vpop.f32.mrb[11].mxu0  ;;  %v1978_v55 = vrot.slane %v1970_v43, %v7316_v51  ;;  %v1985_v56 = vrot.slane %v1971_v44, %v7316_v51  ;;  %v2265_v44 = vld [vmem:[%s7196_s6] sm:$0xff]  ;;  %v2266_v46 = vld [vmem:[%s7196_s6 + $0x8] sm:$0xff] }
 0x5ef   : > { %v5373_v48 = vcombine.low %v2265_v44, %v2273_v45 }
 0x5f3   : > { %v1964_v49 = vpop.f32.mrb[24].mxu1 }
 0x5f4   : > { %v1986_v50 = vcombine.low %v1872_v35, %v1964_v49  ;;  %v1987_v52 = vcombine.high %v1872_v35, %v1964_v49  ;;  %v5935_v53 = vpop.f32.mrb[25].mxu1  ;;  %v5374_v49 = vcombine.high %v2265_v44, %v2273_v45  ;;  %v2377_v45 = vld [vmem:[%s7196_s6 + $0x380] sm:$0xff] }
 0x5f5   : > { %v1967_v54 = vpop.f32.mrb[26].mxu1  ;;  %v2289_v53 = vld [vmem:[%s7196_s6 + $0xc0] sm:$0xff] }
 0x5f6   : > { %v1994_v57 = vrot.slane %v1986_v50, %v7316_v51  ;;  %v2001_v59 = vrot.slane %v1987_v52, %v7316_v51  ;;  %v5936_v60 = vpop.f32.mrb[27].mxu1  ;;  %v2274_v50 = vld [vmem:[%s7196_s6 + $0x48] sm:$0xff]  ;;  %v2281_v52 = vld [vmem:[%s7196_s6 + $0x80] sm:$0xff]  ;;  %3117 = vmatprep.subr.bf16.mxu1 %v5374_v49 }
 0x5f7   : > { %v5375_v54 = vcombine.low %v2266_v46, %v2274_v50  ;;  %v2297_v60 = vld [vmem:[%s7196_s6 + $0x100] sm:$0xff]  ;;  %3118 = vmatpush1.bf16.msra.mxu1 %v5373_v48  ;;  %v5389_v1 = vcombine.low %v2281_v52, %v2289_v53  ;;  %v2378_v48 = vld [vmem:[%s7196_s6 + $0x388] sm:$0xff] }
 0x5f8   : > { %v2002_v61 = vcombine.low %v1978_v55, %v1994_v57  ;;  %v2003_v62 = vcombine.high %v1978_v55, %v1994_v57  ;;  %v2018_v63 = vcombine.low %v1985_v56, %v2001_v59  ;;  %v2019_v0 = vcombine.high %v1985_v56, %v2001_v59  ;;  %v2282_v57 = vld [vmem:[%s7196_s6 + $0x88] sm:$0xff] }
 0x5f9   : > { %v5376_v55 = vcombine.high %v2266_v46, %v2274_v50  ;;  %v5390_v56 = vcombine.high %v2281_v52, %v2289_v53  ;;  %v2290_v59 = vld [vmem:[%s7196_s6 + $0xc8] sm:$0xff]  ;;  %v2385_v46 = vld [vmem:[%s7196_s6 + $0x3c0] sm:$0xff] }
 0x5fa   : > { %v2010_v2 = vrot.slane %v2002_v61, %v7319_v58  ;;  %v2017_v5 = vrot.slane %v2003_v62, %v7319_v58  ;;  %v2026_v6 = vrot.slane %v2018_v63, %v7319_v58  ;;  %v2033_v7 = vrot.slane %v2019_v0, %v7319_v58  ;;  %v2305_v62 = vld [vmem:[%s7196_s6 + $0x140] sm:$0xff]  ;;  %v2298_v63 = vld [vmem:[%s7196_s6 + $0x108] sm:$0xff] }
 0x5fb   : > { %v5392_v61 = vcombine.high %v2282_v57, %v2290_v59  ;;  %v2306_v0 = vld [vmem:[%s7196_s6 + $0x148] sm:$0xff]  ;;  %3158 = vmatprep.subr.bf16.mxu0 %v5376_v55  ;;  %3119 = vmatprep.subr.bf16.mxu1 %v5390_v56  ;;  %v5486_v49 = vcombine.high %v2377_v45, %v2385_v46  ;;  %v5485_v52 = vcombine.low %v2377_v45, %v2385_v46  ;;  %v2267_v55 = vld [vmem:[%s7196_s6 + $0x10] sm:$0xff]  ;;  %v2356_v45 = vld [vmem:[%s7196_s6 + $0x2d8] sm:$0xff] }
 0x5fc   : > { %v2038_v8 = vcombine.low %v2010_v2, %v2017_v5  ;;  %v5360_v9 = vcombine.high %v2010_v2, %v2017_v5  ;;  %v2054_v10 = vcombine.low %v2026_v6, %v2033_v7  ;;  %v5361_v11 = vcombine.high %v2026_v6, %v2033_v7  ;;  %3120 = vmatpush1.bf16.msra.mxu1 %v5389_v1  ;;  %v2386_v50 = vld [vmem:[%s7196_s6 + $0x3c8] sm:$0xff]  ;;  %v2275_v56 = vld [vmem:[%s7196_s6 + $0x50] sm:$0xff] }
 0x5fd   : > { %v5391_v2 = vcombine.low %v2282_v57, %v2290_v59  ;;  %v5406_v5 = vcombine.high %v2297_v60, %v2305_v62  ;;  %v5408_v6 = vcombine.high %v2298_v63, %v2306_v0  ;;  %v5405_v7 = vcombine.low %v2297_v60, %v2305_v62  ;;  %v2268_v57 = vld [vmem:[%s7196_s6 + $0x18] sm:$0xff] }
 0x5fe   : > { %v2045_v15 = vrot.slane %v2038_v8, %v7316_v51  ;;  %v2053_v16 = vrot.slane %v5360_v9, %v7316_v51  ;;  %v2061_v30 = vrot.slane %v2054_v10, %v7316_v51  ;;  %v2069_v3 = vrot.slane %v5361_v11, %v7316_v51 }
 0x5ff   : > { %3121 = vmatprep.subr.bf16.mxu1 %v5406_v5  ;;  %v5407_v8 = vcombine.low %v2298_v63, %v2306_v0  ;;  %v5487_v53 = vcombine.low %v2378_v48, %v2386_v50  ;;  %v5377_v59 = vcombine.low %v2267_v55, %v2275_v56  ;;  %v5378_v60 = vcombine.high %v2267_v55, %v2275_v56  ;;  %v2372_v55 = vld [vmem:[%s7196_s6 + $0x358] sm:$0xff] }
 0x600   : > { %v2071_v17 = vcombine.high %v2045_v15, %v2053_v16  ;;  %v2087_v18 = vcombine.high %v2061_v30, %v2069_v3  ;;  %v2070_v19 = vcombine.low %v2045_v15, %v2053_v16  ;;  %v2086_v20 = vcombine.low %v2061_v30, %v2069_v3  ;;  %3122 = vmatpush1.bf16.msra.mxu1 %v5405_v7  ;;  %v2313_v15 = vld [vmem:[%s7196_s6 + $0x180] sm:$0xff]  ;;  %v2314_v30 = vld [vmem:[%s7196_s6 + $0x188] sm:$0xff] }
 0x601   : > { %v2321_v16 = vld [vmem:[%s7196_s6 + $0x1c0] sm:$0xff] }
 0x602   : > { %v2085_v22 = vrot.slane %v2071_v17, %v7319_v58  ;;  %v2101_v21 = vrot.slane %v2087_v18, %v7319_v58  ;;  %v2078_v23 = vrot.slane %v2070_v19, %v7319_v58  ;;  %v2094_v24 = vrot.slane %v2086_v20, %v7319_v58  ;;  %v2322_v17 = vld [vmem:[%s7196_s6 + $0x1c8] sm:$0xff] }
 0x603   : > { %v5422_v3 = vcombine.high %v2313_v15, %v2321_v16  ;;  %v5421_v18 = vcombine.low %v2313_v15, %v2321_v16  ;;  %v5423_v19 = vcombine.low %v2314_v30, %v2322_v17  ;;  %v5424_v20 = vcombine.high %v2314_v30, %v2322_v17  ;;  %v2284_v15 = vld [vmem:[%s7196_s6 + $0x98] sm:$0xff] }
 0x604   : > { %v2104_v25 = vcombine.low %v2085_v22, %v2101_v21  ;;  %v2103_v26 = vcombine.high %v2078_v23, %v2094_v24  ;;  %v2105_v12 = vcombine.high %v2085_v22, %v2101_v21  ;;  %v2102_v28 = vcombine.low %v2078_v23, %v2094_v24  ;;  %v2329_v22 = vld [vmem:[%s7196_s6 + $0x200] sm:$0xff]  ;;  %v2330_v23 = vld [vmem:[%s7196_s6 + $0x208] sm:$0xff]  ;;  %v2292_v16 = vld [vmem:[%s7196_s6 + $0xd8] sm:$0xff] }
 0x605   : > { %3123 = vmatprep.subr.bf16.mxu1 %v5422_v3  ;;  %v2337_v21 = vld [vmem:[%s7196_s6 + $0x240] sm:$0xff] }
 0x606   : > { %2111 = vrot.lane.b32.xlu1 %v2104_v25, %s6694_s9  ;;  %2107 = vrot.lane.b32.xlu0 %v2103_v26, %s6692_s3  ;;  %v5438_v24 = vcombine.high %v2329_v22, %v2337_v21  ;;  %v2338_v25 = vld [vmem:[%s7196_s6 + $0x248] sm:$0xff]  ;;  %v5437_v26 = vcombine.low %v2329_v22, %v2337_v21  ;;  %v2308_v22 = vld [vmem:[%s7196_s6 + $0x158] sm:$0xff] }
 0x607   : > { %3124 = vmatpush1.bf16.msra.mxu1 %v5421_v18  ;;  %v5396_v18 = vcombine.high %v2284_v15, %v2292_v16 }
 0x608   : > { %3125 = vmatprep.subr.bf16.mxu1 %v5438_v24 }
 0x60a   : > { %2115 = vrot.lane.b32.xlu1 %v2105_v12, %s6693_s7  ;;  %v5439_v12 = vcombine.low %v2330_v23, %v2338_v25 }
 0x60b   : > { %3126 = vmatpush1.bf16.msra.mxu1 %v5437_v26  ;;  %v2315_v26 = vld [vmem:[%s7196_s6 + $0x190] sm:$0xff] }
 0x678   : > { %v2112_v51 = vpop.permute.xlu1 %2111  ;;  %v2108_v32 = vpop.permute.xlu0 %2107 }
 0x679   : > { %v2118_v14 = vsel %vm1543_vm1, %v2102_v28, %v2108_v32  ;;  %v5440_v28 = vcombine.high %v2330_v23, %v2338_v25  ;;  %v2353_v32 = vld [vmem:[%s7196_s6 + $0x2c0] sm:$0xff]  ;;  %v5395_v23 = vcombine.low %v2284_v15, %v2292_v16 }
 0x67a   : > { %v2120_v58 = vsel %vm2119_vm4, %v2118_v14, %v2112_v51  ;;  %v2345_v51 = vld [vmem:[%s7196_s6 + $0x280] sm:$0xff]  ;;  %v2346_v14 = vld [vmem:[%s7196_s6 + $0x288] sm:$0xff] }
 0x67c   : > { %v2116_v33 = vpop.permute.xlu1 %2115 }
 0x67d   : > { %v2122_v34 = vsel %vm2121_vm5, %v2120_v58, %v2116_v33  ;;  %v5454_v33 = vcombine.high %v2345_v51, %v2353_v32  ;;  %v2354_v58 = vld [vmem:[%s7196_s6 + $0x2c8] sm:$0xff] }
 0x67e   : > { %v2123_v35 = vpack.c.bf16 %v2122_v34, %v2122_v34  ;;  %v5453_v34 = vcombine.low %v2345_v51, %v2353_v32  ;;  %v2324_v51 = vld [vmem:[%s7196_s6 + $0x1d8] sm:$0xff] }
 0x67f   : > { %3127 = vmatprep.subr.bf16.mxu1 %v5454_v33 }
 0x680   : > { %5954 = vmatmul.mubr.bf16.vlgmr.msra.gmra.mrb[12].mxu0 %v2123_v35  ;;  %v5455_v35 = vcombine.low %v2346_v14, %v2354_v58  ;;  %3128 = vmatpush1.bf16.msra.mxu1 %v5453_v34  ;;  %v2331_v34 = vld [vmem:[%s7196_s6 + $0x210] sm:$0xff] }
 0x681   : > { %3190 = vmatprep.mubr.bf16.mxu0 %v6690_v4  ;;  %3159 = vmatpush1.bf16.msra.mxu0 %v5375_v54  ;;  %v5488_v54 = vcombine.high %v2378_v48, %v2386_v50 }
 0x682   : > { %3160 = vmatprep.subr.bf16.mxu0 %v5392_v61  ;;  %v2276_v61 = vld [vmem:[%s7196_s6 + $0x58] sm:$0xff] }
 0x683   : > { %v5379_v62 = vcombine.low %v2268_v57, %v2276_v61  ;;  %v5380_v63 = vcombine.high %v2268_v57, %v2276_v61  ;;  %v2379_v61 = vld [vmem:[%s7196_s6 + $0x390] sm:$0xff] }
 0x685   : > { %3161 = vmatpush1.bf16.msra.mxu0 %v5391_v2 }
 0x686   : > { %3162 = vmatprep.subr.bf16.mxu0 %v5408_v6  ;;  %v5371_v6 = vld [vmem:[%s8039_s30] ss:$0 sm:$0xff] }
 0x689   : > { %3163 = vmatpush1.bf16.msra.mxu0 %v5407_v8  ;;  %v5372_v8 = vld [vmem:[%s819_s8] ss:$0 sm:$0xff] }
 0x68a   : > { %3164 = vmatprep.subr.bf16.mxu0 %v5424_v20  ;;  %v2300_v20 = vld [vmem:[%s7196_s6 + $0x118] sm:$0xff] }
 0x68b   : > { %v5412_v25 = vcombine.high %v2300_v20, %v2308_v22 }
 0x68d   : > { %3165 = vmatpush1.bf16.msra.mxu0 %v5423_v19  ;;  %v2307_v19 = vld [vmem:[%s7196_s6 + $0x150] sm:$0xff] }
 0x68e   : > { %3166 = vmatprep.subr.bf16.mxu0 %v5440_v28  ;;  %v2316_v28 = vld [vmem:[%s7196_s6 + $0x198] sm:$0xff] }
 0x691   : > { %3167 = vmatpush1.bf16.msra.mxu0 %v5439_v12  ;;  %v2323_v12 = vld [vmem:[%s7196_s6 + $0x1d0] sm:$0xff] }
 0x692   : > { %v5426_v33 = vcombine.high %v2315_v26, %v2323_v12 }
 0x753   : > { %v2229_v37 = vpop.f32.mrb[12].mxu0 }
 0x754   : > { %v2230_v38 = vadd.f32 %v5362_v36, %v2229_v37  ;;  %v5955_v39 = vpop.f32.mrb[13].mxu0  ;;  %v5456_v36 = vcombine.high %v2346_v14, %v2354_v58  ;;  %v2361_v37 = vld [vmem:[%s7196_s6 + $0x300] sm:$0xff]  ;;  %v5411_v14 = vcombine.low %v2300_v20, %v2308_v22  ;;  %v5428_v58 = vcombine.high %v2316_v28, %v2324_v51  ;;  %v2294_v20 = vld [vmem:[%s7196_s6 + $0xe8] sm:$0xff] }
 0x755   : > { %v2232_v40 = vpop.f32.mrb[14].mxu0  ;;  %v2362_v39 = vld [vmem:[%s7196_s6 + $0x308] sm:$0xff] }
 0x756   : > { %v5956_v41 = vpop.f32.mrb[15].mxu0  ;;  %v2235_v43 = vadd.f32 %v6303_v42, %v2230_v38  ;;  %3168 = vmatprep.subr.bf16.mxu0 %v5456_v36  ;;  %v2369_v38 = vld [vmem:[%s7196_s6 + $0x340] sm:$0xff]  ;;  %v2332_v36 = vld [vmem:[%s7196_s6 + $0x218] sm:$0xff] }
 0x757   : > { %3169 = vmatpush1.bf16.msra.mxu0 %v5455_v35  ;;  %v5470_v40 = vcombine.high %v2361_v37, %v2369_v38  ;;  %v2370_v41 = vld [vmem:[%s7196_s6 + $0x348] sm:$0xff]  ;;  %v5469_v42 = vcombine.low %v2361_v37, %v2369_v38  ;;  %v2339_v35 = vld [vmem:[%s7196_s6 + $0x250] sm:$0xff]  ;;  %v2340_v37 = vld [vmem:[%s7196_s6 + $0x258] sm:$0xff]  ;;  %v5425_v38 = vcombine.low %v2315_v26, %v2323_v12 }
 0x758   : > { %2238 = vadd.xlane.f32.xlu0 %v2235_v43  ;;  %v5472_v44 = vcombine.high %v2362_v39, %v2370_v41  ;;  %v5441_v46 = vcombine.low %v2331_v34, %v2339_v35  ;;  %v5443_v48 = vcombine.low %v2332_v36, %v2340_v37  ;;  %v2309_v26 = vld [vmem:[%s7196_s6 + $0x160] sm:$0xff]  ;;  %v2302_v12 = vld [vmem:[%s7196_s6 + $0x128] sm:$0xff] }
 0x759   : > { %3129 = vmatprep.subr.bf16.mxu1 %v5470_v40  ;;  %v5442_v40 = vcombine.high %v2331_v34, %v2339_v35  ;;  %v2325_v34 = vld [vmem:[%s7196_s6 + $0x1e0] sm:$0xff]  ;;  %v2318_v35 = vld [vmem:[%s7196_s6 + $0x1a8] sm:$0xff] }
 0x75a   : > { %3170 = vmatprep.subr.bf16.mxu0 %v5472_v44  ;;  %3130 = vmatpush1.bf16.msra.mxu1 %v5469_v42  ;;  %v2347_v42 = vld [vmem:[%s7196_s6 + $0x290] sm:$0xff]  ;;  %v2348_v44 = vld [vmem:[%s7196_s6 + $0x298] sm:$0xff] }
 0x75b   : > { %3131 = vmatprep.subr.bf16.mxu1 %v5486_v49  ;;  %v5460_v50 = vcombine.high %v2348_v44, %v2356_v45  ;;  %v5459_v57 = vcombine.low %v2348_v44, %v2356_v45  ;;  %v2342_v44 = vld [vmem:[%s7196_s6 + $0x268] sm:$0xff] }
 0x75e   : > { %3132 = vmatpush1.bf16.msra.mxu1 %v5485_v52  ;;  %v2363_v52 = vld [vmem:[%s7196_s6 + $0x310] sm:$0xff] }
 0x75f   : > { %3199 = vmatprep.subr.bf16.mxu1 %v5378_v60 }
 0x7e5   : > { %v2239_v9 = vpop.xlane.xlu0 %2238 }
 0x7e6   : > { %v2241_v10 = vmul.f32 0.0078125, %v2239_v9 }
 0x7e8   : > { %v7492_v11 = vsub.f32 %v2235_v43, %v2241_v10  ;;  %v5471_v43 = vcombine.low %v2362_v39, %v2370_v41  ;;  %v2283_v10 = vld [vmem:[%s7196_s6 + $0x90] sm:$0xff]  ;;  %v5427_v39 = vcombine.low %v2316_v28, %v2324_v51  ;;  %v5444_v41 = vcombine.high %v2332_v36, %v2340_v37  ;;  %v2310_v28 = vld [vmem:[%s7196_s6 + $0x168] sm:$0xff] }
 0x7e9   : > { %v2326_v36 = vld [vmem:[%s7196_s6 + $0x1e8] sm:$0xff] }
 0x7ea   : > { %v2243_v13 = vmul.f32 %v7492_v11, %v7492_v11  ;;  %3171 = vmatpush1.bf16.msra.mxu0 %v5471_v43  ;;  %v2355_v43 = vld [vmem:[%s7196_s6 + $0x2d0] sm:$0xff] }
 0x7eb   : > { %3172 = vmatprep.subr.bf16.mxu0 %v5488_v54  ;;  %v5458_v49 = vcombine.high %v2347_v42, %v2355_v43  ;;  %v2364_v54 = vld [vmem:[%s7196_s6 + $0x318] sm:$0xff]  ;;  %v5457_v56 = vcombine.low %v2347_v42, %v2355_v43  ;;  %v2341_v42 = vld [vmem:[%s7196_s6 + $0x260] sm:$0xff]  ;;  %v2334_v43 = vld [vmem:[%s7196_s6 + $0x228] sm:$0xff] }
 0x7ec   : > { %2244 = vadd.xlane.f32.xlu1 %v2243_v13  ;;  %v2291_v13 = vld [vmem:[%s7196_s6 + $0xd0] sm:$0xff]  ;;  %v5476_v60 = vcombine.high %v2364_v54, %v2372_v55 }
 0x7ed   : > { %v5394_v17 = vcombine.high %v2283_v10, %v2291_v13  ;;  %v5393_v21 = vcombine.low %v2283_v10, %v2291_v13  ;;  %v2278_v10 = vld [vmem:[%s7196_s6 + $0x68] sm:$0xff] }
 0x7ee   : > { %3173 = vmatpush1.bf16.msra.mxu0 %v5487_v53  ;;  %v2371_v53 = vld [vmem:[%s7196_s6 + $0x350] sm:$0xff] }
 0x7ef   : > { %3240 = vmatprep.subr.bf16.mxu0 %v5380_v63  ;;  %v2380_v63 = vld [vmem:[%s7196_s6 + $0x398] sm:$0xff] }
 0x879   : > { %v2245_v0 = vpop.xlane.xlu1 %2244 }
 0x87a   : > { %v2246_v1 = vmul.f32 0.0078125, %v2245_v0  ;;  %v2388_v0 = vld [vmem:[%s7196_s6 + $0x3d8] sm:$0xff] }
 0x87b   : > { %v5491_v15 = vcombine.low %v2380_v63, %v2388_v0 }
 0x87c   : > { %v2247_v2 = vadd.f32 1e-05, %v2246_v1  ;;  %v5473_v1 = vcombine.low %v2363_v52, %v2371_v53 }
 0x87e   : > { %6299 = vrsqrt.f32 %v2247_v2  ;;  %v5475_v2 = vcombine.low %v2364_v54, %v2372_v55  ;;  %v2358_v54 = vld [vmem:[%s7196_s6 + $0x2e8] sm:$0xff] }
 0x888   : > { %v6300_v5 = vpop.eup %6299 }
 0x889   : > { %v2249_v7 = vmul.f32 %v6300_v5, %v7492_v11  ;;  %v2299_v11 = vld [vmem:[%s7196_s6 + $0x110] sm:$0xff] }
 0x88a   : > { %v5410_v24 = vcombine.high %v2299_v11, %v2307_v19  ;;  %v5409_v32 = vcombine.low %v2299_v11, %v2307_v19  ;;  %v2293_v11 = vld [vmem:[%s7196_s6 + $0xe0] sm:$0xff]  ;;  %v2286_v19 = vld [vmem:[%s7196_s6 + $0xa8] sm:$0xff] }
 0x88b   : > { %v2256_v9 = vmul.f32 %v5371_v6, %v2249_v7  ;;  %v5492_v6 = vcombine.high %v2380_v63, %v2388_v0  ;;  %v2269_v7 = vld [vmem:[%s7196_s6 + $0x20] sm:$0xff]  ;;  %v2374_v63 = vld [vmem:[%s7196_s6 + $0x368] sm:$0xff] }
 0x88d   : > { %v7535_v30 = vadd.f32 %v5372_v8, %v2256_v9  ;;  %v2277_v8 = vld [vmem:[%s7196_s6 + $0x60] sm:$0xff]  ;;  %v2270_v9 = vld [vmem:[%s7196_s6 + $0x28] sm:$0xff] }
 0x88e   : > { %v5382_v16 = vcombine.high %v2269_v7, %v2277_v8  ;;  %v5381_v22 = vcombine.low %v2269_v7, %v2277_v8  ;;  %v2389_v7 = vld [vmem:[%s7196_s6 + $0x3e0] sm:$0xff]  ;;  %v2382_v8 = vld [vmem:[%s7196_s6 + $0x3a8] sm:$0xff] }
 0x88f   : > { %v7539_v3 = vpack.c.bf16 %v7535_v30, %v7535_v30 }
 0x891   : > { %3150 = vmatmul.mubr.bf16.vlgmr.msra.gmra.mrb[28].mxu1 %v7539_v3  ;;  %3191 = vmatmul.mubr.bf16.vlgmr.msra.gmra.mrb[16].mxu0 %v7539_v3 }
 0x892   : > { %3200 = vmatpush1.bf16.msra.mxu1 %v5377_v59  ;;  %3241 = vmatpush1.bf16.msra.mxu0 %v5379_v62  ;;  %v5474_v59 = vcombine.high %v2363_v52, %v2371_v53  ;;  %v2387_v62 = vld [vmem:[%s7196_s6 + $0x3d0] sm:$0xff]  ;;  %v2357_v52 = vld [vmem:[%s7196_s6 + $0x2e0] sm:$0xff]  ;;  %v2350_v53 = vld [vmem:[%s7196_s6 + $0x2a8] sm:$0xff] }
 0x893   : > { %3201 = vmatprep.subr.bf16.mxu1 %v5394_v17  ;;  %3242 = vmatprep.subr.bf16.mxu0 %v5396_v18  ;;  %v5490_v5 = vcombine.high %v2379_v61, %v2387_v62  ;;  %v5489_v13 = vcombine.low %v2379_v61, %v2387_v62  ;;  %v5384_v17 = vcombine.high %v2270_v9, %v2278_v10  ;;  %v2285_v18 = vld [vmem:[%s7196_s6 + $0xa0] sm:$0xff]  ;;  %v2366_v62 = vld [vmem:[%s7196_s6 + $0x328] sm:$0xff] }
 0x894   : > { %3231 = vmatprep.mubr.bf16.mxu1 %v6690_v4  ;;  %3272 = vmatprep.mubr.bf16.mxu0 %v6690_v4  ;;  %v5397_v51 = vcombine.low %v2285_v18, %v2293_v11  ;;  %v2373_v61 = vld [vmem:[%s7196_s6 + $0x360] sm:$0xff] }
 0x896   : > { %3202 = vmatpush1.bf16.msra.mxu1 %v5393_v21  ;;  %3243 = vmatpush1.bf16.msra.mxu0 %v5395_v23  ;;  %v5383_v21 = vcombine.low %v2270_v9, %v2278_v10  ;;  %v5398_v23 = vcombine.high %v2285_v18, %v2293_v11  ;;  %v2390_v9 = vld [vmem:[%s7196_s6 + $0x3e8] sm:$0xff]  ;;  %v2279_v18 = vld [vmem:[%s7196_s6 + $0x70] sm:$0xff]  ;;  %v2272_v11 = vld [vmem:[%s7196_s6 + $0x38] sm:$0xff] }
 0x897   : > { %3203 = vmatprep.subr.bf16.mxu1 %v5410_v24  ;;  %3244 = vmatprep.subr.bf16.mxu0 %v5412_v25  ;;  %v5400_v24 = vcombine.high %v2286_v19, %v2294_v20  ;;  %v2301_v25 = vld [vmem:[%s7196_s6 + $0x120] sm:$0xff] }
 0x898   : > { %v5413_v37 = vcombine.low %v2301_v25, %v2309_v26 }
 0x89a   : > { %3204 = vmatpush1.bf16.msra.mxu1 %v5409_v32  ;;  %3245 = vmatpush1.bf16.msra.mxu0 %v5411_v14  ;;  %v5399_v32 = vcombine.low %v2286_v19, %v2294_v20  ;;  %v5414_v14 = vcombine.high %v2301_v25, %v2309_v26  ;;  %v2280_v19 = vld [vmem:[%s7196_s6 + $0x78] sm:$0xff]  ;;  %v2295_v25 = vld [vmem:[%s7196_s6 + $0xf0] sm:$0xff] }
 0x89b   : > { %3205 = vmatprep.subr.bf16.mxu1 %v5426_v33  ;;  %3246 = vmatprep.subr.bf16.mxu0 %v5428_v58  ;;  %v5416_v33 = vcombine.high %v2302_v12, %v2310_v28  ;;  %v2317_v58 = vld [vmem:[%s7196_s6 + $0x1a0] sm:$0xff]  ;;  %v2288_v26 = vld [vmem:[%s7196_s6 + $0xb8] sm:$0xff] }
 0x89c   : > { %v5429_v45 = vcombine.low %v2317_v58, %v2325_v34 }
 0x89e   : > { %3206 = vmatpush1.bf16.msra.mxu1 %v5425_v38  ;;  %3247 = vmatpush1.bf16.msra.mxu0 %v5427_v39  ;;  %v5415_v38 = vcombine.low %v2302_v12, %v2310_v28  ;;  %v5430_v39 = vcombine.high %v2317_v58, %v2325_v34  ;;  %v2296_v12 = vld [vmem:[%s7196_s6 + $0xf8] sm:$0xff]  ;;  %v2311_v58 = vld [vmem:[%s7196_s6 + $0x170] sm:$0xff] }
 0x89f   : > { %3207 = vmatprep.subr.bf16.mxu1 %v5442_v40  ;;  %3248 = vmatprep.subr.bf16.mxu0 %v5444_v41  ;;  %v5432_v40 = vcombine.high %v2318_v35, %v2326_v36  ;;  %v2333_v41 = vld [vmem:[%s7196_s6 + $0x220] sm:$0xff]  ;;  %v2304_v34 = vld [vmem:[%s7196_s6 + $0x138] sm:$0xff] }
 0x8a0   : > { %v5445_v55 = vcombine.low %v2333_v41, %v2341_v42 }
 0x8a2   : > { %3208 = vmatpush1.bf16.msra.mxu1 %v5441_v46  ;;  %3249 = vmatpush1.bf16.msra.mxu0 %v5443_v48  ;;  %v5431_v46 = vcombine.low %v2318_v35, %v2326_v36  ;;  %v5446_v48 = vcombine.high %v2333_v41, %v2341_v42  ;;  %v2312_v35 = vld [vmem:[%s7196_s6 + $0x178] sm:$0xff]  ;;  %v2327_v41 = vld [vmem:[%s7196_s6 + $0x1f0] sm:$0xff] }
 0x8a3   : > { %3209 = vmatprep.subr.bf16.mxu1 %v5458_v49  ;;  %3250 = vmatprep.subr.bf16.mxu0 %v5460_v50  ;;  %v5448_v49 = vcombine.high %v2334_v43, %v2342_v44  ;;  %v2349_v50 = vld [vmem:[%s7196_s6 + $0x2a0] sm:$0xff]  ;;  %v2320_v42 = vld [vmem:[%s7196_s6 + $0x1b8] sm:$0xff] }
 0x8a4   : > { %v5461_v0 = vcombine.low %v2349_v50, %v2357_v52 }
 0x8a6   : > { %3210 = vmatpush1.bf16.msra.mxu1 %v5457_v56  ;;  %3251 = vmatpush1.bf16.msra.mxu0 %v5459_v57  ;;  %v5447_v56 = vcombine.low %v2334_v43, %v2342_v44  ;;  %v5462_v57 = vcombine.high %v2349_v50, %v2357_v52  ;;  %v2328_v43 = vld [vmem:[%s7196_s6 + $0x1f8] sm:$0xff]  ;;  %v2343_v50 = vld [vmem:[%s7196_s6 + $0x270] sm:$0xff] }
 0x8a7   : > { %3211 = vmatprep.subr.bf16.mxu1 %v5474_v59  ;;  %3252 = vmatprep.subr.bf16.mxu0 %v5476_v60  ;;  %v5464_v59 = vcombine.high %v2350_v53, %v2358_v54  ;;  %v2365_v60 = vld [vmem:[%s7196_s6 + $0x320] sm:$0xff]  ;;  %v2336_v52 = vld [vmem:[%s7196_s6 + $0x238] sm:$0xff] }
 0x8a8   : > { %v5477_v10 = vcombine.low %v2365_v60, %v2373_v61 }
 0x8aa   : > { %3212 = vmatpush1.bf16.msra.mxu1 %v5473_v1  ;;  %3253 = vmatpush1.bf16.msra.mxu0 %v5475_v2  ;;  %v5463_v1 = vcombine.low %v2350_v53, %v2358_v54  ;;  %v5478_v2 = vcombine.high %v2365_v60, %v2373_v61  ;;  %v2344_v53 = vld [vmem:[%s7196_s6 + $0x278] sm:$0xff] }
 0x8ab   : > { %3213 = vmatprep.subr.bf16.mxu1 %v5490_v5  ;;  %3254 = vmatprep.subr.bf16.mxu0 %v5492_v6  ;;  %v5480_v5 = vcombine.high %v2366_v62, %v2374_v63  ;;  %v2381_v6 = vld [vmem:[%s7196_s6 + $0x3a0] sm:$0xff]  ;;  %v2352_v60 = vld [vmem:[%s7196_s6 + $0x2b8] sm:$0xff] }
 0x8ac   : > { %v5493_v20 = vcombine.low %v2381_v6, %v2389_v7  ;;  %v2360_v61 = vld [vmem:[%s7196_s6 + $0x2f8] sm:$0xff] }
 0x8ae   : > { %3214 = vmatpush1.bf16.msra.mxu1 %v5489_v13  ;;  %3255 = vmatpush1.bf16.msra.mxu0 %v5491_v15  ;;  %v5479_v13 = vcombine.low %v2366_v62, %v2374_v63  ;;  %v5494_v15 = vcombine.high %v2381_v6, %v2389_v7  ;;  %v5451_v63 = vcombine.low %v2336_v52, %v2344_v53  ;;  %v2368_v6 = vld [vmem:[%s7196_s6 + $0x338] sm:$0xff] }
 0x8af   : > { %3281 = vmatprep.subr.bf16.mxu1 %v5382_v16  ;;  %3322 = vmatprep.subr.bf16.mxu0 %v5384_v17  ;;  %v5496_v16 = vcombine.high %v2382_v8, %v2390_v9  ;;  %v2271_v17 = vld [vmem:[%s7196_s6 + $0x30] sm:$0xff]  ;;  %v2376_v7 = vld [vmem:[%s7196_s6 + $0x378] sm:$0xff] }
 0x8b0   : > { %v5385_v28 = vcombine.low %v2271_v17, %v2279_v18 }
 0x8b1   : > { %3232 = vmatmul.mubr.bf16.vlgmr.msra.gmra.mrb[32].mxu1 %v7539_v3  ;;  %3273 = vmatmul.mubr.bf16.vlgmr.msra.gmra.mrb[20].mxu0 %v7539_v3 }
 0x8b2   : > { %3282 = vmatpush1.bf16.msra.mxu1 %v5381_v22  ;;  %3323 = vmatpush1.bf16.msra.mxu0 %v5383_v21  ;;  %v5495_v22 = vcombine.low %v2382_v8, %v2390_v9  ;;  %v5386_v21 = vcombine.high %v2271_v17, %v2279_v18  ;;  %v5467_v9 = vcombine.low %v2352_v60, %v2360_v61  ;;  %v2384_v17 = vld [vmem:[%s7196_s6 + $0x3b8] sm:$0xff] }
 0x8b3   : > { %3283 = vmatprep.subr.bf16.mxu1 %v5398_v23  ;;  %3324 = vmatprep.subr.bf16.mxu0 %v5400_v24  ;;  %v5388_v23 = vcombine.high %v2272_v11, %v2280_v19  ;;  %v2287_v24 = vld [vmem:[%s7196_s6 + $0xb0] sm:$0xff]  ;;  %v2392_v18 = vld [vmem:[%s7196_s6 + $0x3f8] sm:$0xff] }
 0x8b4   : > { %3313 = vmatprep.mubr.bf16.mxu1 %v6690_v4  ;;  %3354 = vmatprep.mubr.bf16.mxu0 %v6690_v4  ;;  %v5401_v36 = vcombine.low %v2287_v24, %v2295_v25 }
 0x8b6   : > { %3284 = vmatpush1.bf16.msra.mxu1 %v5397_v51  ;;  %3325 = vmatpush1.bf16.msra.mxu0 %v5399_v32  ;;  %v5387_v51 = vcombine.low %v2272_v11, %v2280_v19  ;;  %v5402_v32 = vcombine.high %v2287_v24, %v2295_v25  ;;  %v5483_v19 = vcombine.low %v2368_v6, %v2376_v7  ;;  %v6155_v24 = vld [vmem:[%s7204_s4 + $0x40] sm:$0xff]  }
 0x8b7   : > { %3285 = vmatprep.subr.bf16.mxu1 %v5414_v14  ;;  %3326 = vmatprep.subr.bf16.mxu0 %v5416_v33  ;;  %v5404_v14 = vcombine.high %v2288_v26, %v2296_v12  ;;  %v2303_v33 = vld [vmem:[%s7196_s6 + $0x130] sm:$0xff]  ;;  %v6156_v25 = vld [vmem:[%s7204_s4 + $0xc0] sm:$0xff]  }
 0x8b8   : > { %v5417_v44 = vcombine.low %v2303_v33, %v2311_v58 }
 0x8ba   : > { %3286 = vmatpush1.bf16.msra.mxu1 %v5413_v37  ;;  %3327 = vmatpush1.bf16.msra.mxu0 %v5415_v38  ;;  %v5403_v37 = vcombine.low %v2288_v26, %v2296_v12  ;;  %v5418_v38 = vcombine.high %v2303_v33, %v2311_v58  ;;  %v6157_v26 = vld [vmem:[%s7204_s4] sm:$0xff]   ;;  %v6163_v33 = vld [vmem:[%s7204_s4 + $0x50] sm:$0xff]  }
 0x8bb   : > { %3287 = vmatprep.subr.bf16.mxu1 %v5430_v39  ;;  %3328 = vmatprep.subr.bf16.mxu0 %v5432_v40  ;;  %v5420_v39 = vcombine.high %v2304_v34, %v2312_v35  ;;  %v2319_v40 = vld [vmem:[%s7196_s6 + $0x1b0] sm:$0xff]  ;;  %v6158_v12 = vld [vmem:[%s7204_s4 + $0x80] sm:$0xff]  }
 0x8bc   : > { %v5433_v54 = vcombine.low %v2319_v40, %v2327_v41  ;;  %v6164_v58 = vld [vmem:[%s7204_s4 + $0xd0] sm:$0xff]  }
 0x8be   : > { %3288 = vmatpush1.bf16.msra.mxu1 %v5429_v45  ;;  %3329 = vmatpush1.bf16.msra.mxu0 %v5431_v46  ;;  %v5419_v45 = vcombine.low %v2304_v34, %v2312_v35  ;;  %v5434_v46 = vcombine.high %v2319_v40, %v2327_v41  ;;  %v6165_v34 = vld [vmem:[%s7204_s4 + $0x10] sm:$0xff]   ;;  %v6172_v40 = vld [vmem:[%s7204_s4 + $0xe0] sm:$0xff]  }
 0x8bf   : > { %3289 = vmatprep.subr.bf16.mxu1 %v5446_v48  ;;  %3330 = vmatprep.subr.bf16.mxu0 %v5448_v49  ;;  %v5436_v48 = vcombine.high %v2320_v42, %v2328_v43  ;;  %v2335_v49 = vld [vmem:[%s7196_s6 + $0x230] sm:$0xff]  ;;  %v6173_v41 = vld [vmem:[%s7204_s4 + $0x20] sm:$0xff]  }
 0x8c0   : > { %v5449_v62 = vcombine.low %v2335_v49, %v2343_v50  ;;  %v6166_v35 = vld [vmem:[%s7204_s4 + $0x90] sm:$0xff]  }
 0x8c2   : > { %3290 = vmatpush1.bf16.msra.mxu1 %v5445_v55  ;;  %3331 = vmatpush1.bf16.msra.mxu0 %v5447_v56  ;;  %v5450_v55 = vcombine.high %v2335_v49, %v2343_v50  ;;  %v5452_v56 = vcombine.high %v2336_v52, %v2344_v53  ;;  %v6180_v49 = vld [vmem:[%s7204_s4 + $0xf0] sm:$0xff]   ;;  %v6183_v53 = vld [vmem:[%s7204_s4 + $0x78] sm:$0xff]  }
 0x8c3   : > { %3291 = vmatprep.subr.bf16.mxu1 %v5462_v57  ;;  %3332 = vmatprep.subr.bf16.mxu0 %v5464_v59  ;;  %v2351_v57 = vld [vmem:[%s7196_s6 + $0x2b0] sm:$0xff] }
 0x8c4   : > { %v2359_v59 = vld [vmem:[%s7196_s6 + $0x2f0] sm:$0xff] }
 0x8c5   : > { %v5465_v8 = vcombine.low %v2351_v57, %v2359_v59  ;;  %v6181_v50 = vld [vmem:[%s7204_s4 + $0x30] sm:$0xff]  }
 0x8c6   : > { %3292 = vmatpush1.bf16.msra.mxu1 %v5461_v0  ;;  %3333 = vmatpush1.bf16.msra.mxu0 %v5463_v1  ;;  %v5466_v0 = vcombine.high %v2351_v57, %v2359_v59  ;;  %v5468_v1 = vcombine.high %v2352_v60, %v2360_v61  ;;  %v6182_v52 = vld [vmem:[%s7204_s4 + $0xb0] sm:$0xff]   ;;  %v6188_v57 = vld [vmem:[%s7204_s4 + $0x1c0] sm:$0xff]   ;;  %v2411_v60 = vsub.s32 3, %v7279_v27 }
 0x8c7   : > { %3293 = vmatprep.subr.bf16.mxu1 %v5478_v2  ;;  %3334 = vmatprep.subr.bf16.mxu0 %v5480_v5  ;;  %v2367_v2 = vld [vmem:[%s7196_s6 + $0x330] sm:$0xff] }
 0x8c8   : > { %v2375_v5 = vld [vmem:[%s7196_s6 + $0x370] sm:$0xff] }
 0x8c9   : > { %v5481_v11 = vcombine.low %v2367_v2, %v2375_v5  ;;  %v7678_v59 = vld [vmem:[%s7202_s0] sm:$0xff] }
 0x8ca   : > { %3294 = vmatpush1.bf16.msra.mxu1 %v5477_v10  ;;  %3335 = vmatpush1.bf16.msra.mxu0 %v5479_v13  ;;  %v5482_v10 = vcombine.high %v2367_v2, %v2375_v5  ;;  %v5484_v13 = vcombine.high %v2368_v6, %v2376_v7  ;;  %v2400_v61 = vrot.slane %v7678_v59, %v7291_v31 }
 0x8cb   : > { %3295 = vmatprep.subr.bf16.mxu1 %v5494_v15  ;;  %3336 = vmatprep.subr.bf16.mxu0 %v5496_v16  ;;  %v2383_v15 = vld [vmem:[%s7196_s6 + $0x3b0] sm:$0xff] }
 0x8cc   : > { %v2391_v16 = vld [vmem:[%s7196_s6 + $0x3f0] sm:$0xff] }
 0x8ce   : > { %3296 = vmatpush1.bf16.msra.mxu1 %v5493_v20  ;;  %3337 = vmatpush1.bf16.msra.mxu0 %v5495_v22  ;;  %v5498_v20 = vcombine.high %v2383_v15, %v2391_v16  ;;  %v5500_v22 = vcombine.high %v2384_v17, %v2392_v18 }
 0x8cf   : > { %3363 = vmatprep.subr.bf16.mxu1 %v5386_v21  ;;  %3404 = vmatprep.subr.bf16.mxu0 %v5388_v23  ;;  %v5497_v21 = vcombine.low %v2383_v15, %v2391_v16  ;;  %v5499_v23 = vcombine.low %v2384_v17, %v2392_v18 }
 0x8d1   : > { %3314 = vmatmul.mubr.bf16.vlgmr.msra.gmra.mrb[36].mxu1 %v7539_v3  ;;  %3355 = vmatmul.mubr.bf16.vlgmr.msra.gmra.mrb[24].mxu0 %v7539_v3 }
 0x8d2   : > { %3364 = vmatpush1.bf16.msra.mxu1 %v5385_v28  ;;  %3405 = vmatpush1.bf16.msra.mxu0 %v5387_v51  ;;  %v6159_v28 = vld [vmem:[%s7204_s4 + $0x48] sm:$0xff]  }
 0x8d3   : > { %3365 = vmatprep.subr.bf16.mxu1 %v5402_v32  ;;  %3406 = vmatprep.subr.bf16.mxu0 %v5404_v14  ;;  %v6160_v51 = vld [vmem:[%s7204_s4 + $0xc8] sm:$0xff]  }
 0x8d4   : > { %3395 = vmatprep.mubr.bf16.mxu1 %v6690_v4  ;;  %3436 = vmatprep.mubr.bf16.mxu0 %v6690_v4  ;;  %v5435_v4 = vcombine.low %v2320_v42, %v2328_v43  ;;  %v6161_v32 = vld [vmem:[%s7204_s4 + $0x8] sm:$0xff]   ;;  %v6174_v42 = vld [vmem:[%s7204_s4 + $0xa0] sm:$0xff]  }
 0x8d5   : > { %v6162_v14 = vld [vmem:[%s7204_s4 + $0x88] sm:$0xff]  }
 0x8d6   : > { %3366 = vmatpush1.bf16.msra.mxu1 %v5401_v36  ;;  %3407 = vmatpush1.bf16.msra.mxu0 %v5403_v37  ;;  %v6168_v36 = vld [vmem:[%s7204_s4 + $0xd8] sm:$0xff]   ;;  %v6175_v43 = vld [vmem:[%s7204_s4 + $0x68] sm:$0xff]  }
 0x8d7   : > { %3367 = vmatprep.subr.bf16.mxu1 %v5418_v38  ;;  %3408 = vmatprep.subr.bf16.mxu0 %v5420_v39  ;;  %v6169_v37 = vld [vmem:[%s7204_s4 + $0x18] sm:$0xff]   ;;  %v6171_v39 = vld [vmem:[%s7204_s4 + $0x60] sm:$0xff]  }
 0x8d8   : > { %v6170_v38 = vld [vmem:[%s7204_s4 + $0x98] sm:$0xff]  }
 0x8da   : > { %3368 = vmatpush1.bf16.msra.mxu1 %v5417_v44  ;;  %3409 = vmatpush1.bf16.msra.mxu0 %v5419_v45  ;;  %v6176_v44 = vld [vmem:[%s7204_s4 + $0xe8] sm:$0xff]  }
 0x8db   : > { %3369 = vmatprep.subr.bf16.mxu1 %v5434_v46  ;;  %3410 = vmatprep.subr.bf16.mxu0 %v5436_v48  ;;  %v6177_v45 = vld [vmem:[%s7204_s4 + $0x28] sm:$0xff]   ;;  %v6179_v48 = vld [vmem:[%s7204_s4 + $0x70] sm:$0xff]  }
 0x8dc   : > { %v6178_v46 = vld [vmem:[%s7204_s4 + $0xa8] sm:$0xff]  }
 0x8de   : > { %3370 = vmatpush1.bf16.msra.mxu1 %v5433_v54  ;;  %3411 = vmatpush1.bf16.msra.mxu0 %v5435_v4  ;;  %v6184_v54 = vld [vmem:[%s7204_s4 + $0xf8] sm:$0xff]  }
 0x8df   : > { %3371 = vmatprep.subr.bf16.mxu1 %v5450_v55  ;;  %3412 = vmatprep.subr.bf16.mxu0 %v5452_v56  ;;  %v6185_v4 = vld [vmem:[%s7204_s4 + $0x38] sm:$0xff]   ;;  %v6187_v56 = vld [vmem:[%s7204_s4 + $0x140] sm:$0xff]  }
 0x8e0   : > { %v6186_v55 = vld [vmem:[%s7204_s4 + $0xb8] sm:$0xff]  }
 0x8e2   : > { %3372 = vmatpush1.bf16.msra.mxu1 %v5449_v62  ;;  %3413 = vmatpush1.bf16.msra.mxu0 %v5451_v63  ;;  %v2408_v62 = vrot.slane %v7678_v59, %v7376_v47  ;;  %v2404_v63 = vrot.slane %v7678_v59, %v7284_v29 }
 0x8e3   : > { %3373 = vmatprep.subr.bf16.mxu1 %v5466_v0  ;;  %3414 = vmatprep.subr.bf16.mxu0 %v5468_v1  ;;  %v2412_v0 = vrot.slane %v7678_v59, %v2411_v60 }
 0x8e6   : > { %3374 = vmatpush1.bf16.msra.mxu1 %v5465_v8  ;;  %3415 = vmatpush1.bf16.msra.mxu0 %v5467_v9 }
 0x8e7   : > { %3375 = vmatprep.subr.bf16.mxu1 %v5482_v10  ;;  %3416 = vmatprep.subr.bf16.mxu0 %v5484_v13 }
 0x8ea   : > { %3376 = vmatpush1.bf16.msra.mxu1 %v5481_v11  ;;  %3417 = vmatpush1.bf16.msra.mxu0 %v5483_v19 }
 0x8eb   : > { %3377 = vmatprep.subr.bf16.mxu1 %v5498_v20  ;;  %3418 = vmatprep.subr.bf16.mxu0 %v5500_v22 }
 0x8ee   : > { %3378 = vmatpush1.bf16.msra.mxu1 %v5497_v21  ;;  %3419 = vmatpush1.bf16.msra.mxu0 %v5499_v23  ;;  %v6189_v23 = vld [vmem:[%s7204_s4 + $0x100] sm:$0xff]  }
 0x8ef   : > { %5693 = vmatprep.subr.bf16.mxu1 %v6155_v24  ;;  %5715 = vmatprep.subr.bf16.mxu0 %v6156_v25  ;;  %v6190_v24 = vld [vmem:[%s7204_s4 + $0x180] sm:$0xff]  }
 0x8f1   : > { %3396 = vmatmul.mubr.bf16.vlgmr.msra.gmra.mrb[40].mxu1 %v7539_v3  ;;  %3437 = vmatmul.mubr.bf16.vlgmr.msra.gmra.mrb[28].mxu0 %v7539_v3  ;;  %v6167_v3 = vld [vmem:[%s7204_s4 + $0x58] sm:$0xff]  }
 0x8f2   : > { %5694 = vmatpush3.bf16.msra.mxu1 %v6157_v26  ;;  %5716 = vmatpush3.bf16.msra.mxu0 %v6158_v12  ;;  %v6191_v12 = vld [vmem:[%s7204_s4 + $0x148] sm:$0xff]  }
 0x8f3   : > { %5695 = vmatprep.subr.bf16.mxu1 %v6159_v28  ;;  %5717 = vmatprep.subr.bf16.mxu0 %v6160_v51  ;;  %v6192_v28 = vld [vmem:[%s7204_s4 + $0x1c8] sm:$0xff]  }
 0x8f4   : > { %v6193_v51 = vld [vmem:[%s7204_s4 + $0x108] sm:$0xff]  }
 0x8f6   : > { %5696 = vmatpush3.bf16.msra.mxu1 %v6161_v32  ;;  %5718 = vmatpush3.bf16.msra.mxu0 %v6162_v14  ;;  %v6194_v32 = vld [vmem:[%s7204_s4 + $0x188] sm:$0xff]   ;;  %v6195_v14 = vld [vmem:[%s7204_s4 + $0x150] sm:$0xff]  }
 0x8f7   : > { %5697 = vmatprep.subr.bf16.mxu1 %v6163_v33  ;;  %5719 = vmatprep.subr.bf16.mxu0 %v6164_v58  ;;  %v6196_v33 = vld [vmem:[%s7204_s4 + $0x1d0] sm:$0xff]  }
 0x8f8   : > { %v6197_v58 = vld [vmem:[%s7204_s4 + $0x110] sm:$0xff]  }
 0x8fa   : > { %5698 = vmatpush3.bf16.msra.mxu1 %v6165_v34  ;;  %5720 = vmatpush3.bf16.msra.mxu0 %v6166_v35  ;;  %v6198_v34 = vld [vmem:[%s7204_s4 + $0x190] sm:$0xff]   ;;  %v6199_v35 = vld [vmem:[%s7204_s4 + $0x158] sm:$0xff]  }
 0x8fb   : > { %5699 = vmatprep.subr.bf16.mxu1 %v6167_v3  ;;  %5721 = vmatprep.subr.bf16.mxu0 %v6168_v36  ;;  %v6200_v3 = vld [vmem:[%s7204_s4 + $0x1d8] sm:$0xff]  }
 0x8fc   : > { %v6201_v36 = vld [vmem:[%s7204_s4 + $0x118] sm:$0xff]  }
 0x8fe   : > { %5700 = vmatpush3.bf16.msra.mxu1 %v6169_v37  ;;  %5722 = vmatpush3.bf16.msra.mxu0 %v6170_v38  ;;  %v6202_v37 = vld [vmem:[%s7204_s4 + $0x198] sm:$0xff]   ;;  %v6203_v38 = vld [vmem:[%s7204_s4 + $0x160] sm:$0xff]  }
 0x8ff   : > { %5701 = vmatprep.subr.bf16.mxu1 %v6171_v39  ;;  %5723 = vmatprep.subr.bf16.mxu0 %v6172_v40  ;;  %v6204_v39 = vld [vmem:[%s7204_s4 + $0x1e0] sm:$0xff]  }
 0x900   : > { %v6205_v40 = vld [vmem:[%s7204_s4 + $0x120] sm:$0xff]  }
 0x902   : > { %5702 = vmatpush3.bf16.msra.mxu1 %v6173_v41  ;;  %5724 = vmatpush3.bf16.msra.mxu0 %v6174_v42  ;;  %v6206_v41 = vld [vmem:[%s7204_s4 + $0x1a0] sm:$0xff]   ;;  %v6207_v42 = vld [vmem:[%s7204_s4 + $0x168] sm:$0xff]  }
 0x903   : > { %5703 = vmatprep.subr.bf16.mxu1 %v6175_v43  ;;  %5725 = vmatprep.subr.bf16.mxu0 %v6176_v44  ;;  %v6208_v43 = vld [vmem:[%s7204_s4 + $0x1e8] sm:$0xff]   ;;  %v2415_v44 = vsub.s32 4, %v7279_v27 }
 0x906   : > { %5704 = vmatpush3.bf16.msra.mxu1 %v6177_v45  ;;  %5726 = vmatpush3.bf16.msra.mxu0 %v6178_v46  ;;  %v2423_v45 = vsub.s32 6, %v7279_v27  ;;  %v6209_v46 = vld [vmem:[%s7204_s4 + $0x128] sm:$0xff]  }
 0x907   : > { %5705 = vmatprep.subr.bf16.mxu1 %v6179_v48  ;;  %5727 = vmatprep.subr.bf16.mxu0 %v6180_v49  ;;  %v6210_v48 = vld [vmem:[%s7204_s4 + $0x1a8] sm:$0xff]   ;;  %v2419_v49 = vsub.s32 5, %v7279_v27 }
 0x90a   : > { %5706 = vmatpush3.bf16.msra.mxu1 %v6181_v50  ;;  %5728 = vmatpush3.bf16.msra.mxu0 %v6182_v52  ;;  %v2427_v50 = vsub.s32 7, %v7279_v27  ;;  %v6211_v52 = vld [vmem:[%s7204_s4 + $0x170] sm:$0xff]  }
 0x90b   : > { %5707 = vmatprep.subr.bf16.mxu1 %v6183_v53  ;;  %5729 = vmatprep.subr.bf16.mxu0 %v6184_v54  ;;  %v6212_v53 = vld [vmem:[%s7204_s4 + $0x1f0] sm:$0xff]   ;;  %v2416_v54 = vrot.slane %v7678_v59, %v2415_v44 }
 0x90e   : > { %5708 = vmatpush3.bf16.msra.mxu1 %v6185_v4  ;;  %5730 = vmatpush3.bf16.msra.mxu0 %v6186_v55  ;;  %v2424_v4 = vrot.slane %v7678_v59, %v2423_v45  ;;  %v2420_v55 = vrot.slane %v7678_v59, %v2419_v49 }
 0x90f   : > { %5737 = vmatprep.subr.bf16.mxu1 %v6187_v56  ;;  %5759 = vmatprep.subr.bf16.mxu0 %v6188_v57  ;;  %v2428_v56 = vrot.slane %v7678_v59, %v2427_v50  ;;  %v6213_v57 = vld [vmem:[%s7204_s4 + $0x130] sm:$0xff]  }
 0x964   : > { %v3151_v1 = vpop.f32.mrb[28].mxu1  ;;  %v3192_v2 = vpop.f32.mrb[16].mxu0 }
 0x965   : > { %v3152_v5 = vadd.f32 %v3151_v1, %v2400_v61  ;;  %v3193_v6 = vadd.f32 %v3192_v2, %v2408_v62  ;;  %v3153_v7 = vpop.f32.mrb[29].mxu1  ;;  %v3194_v8 = vpop.f32.mrb[17].mxu0  ;;  %v6214_v61 = vld [vmem:[%s7204_s4 + $0x1b0] sm:$0xff]   ;;  %v6215_v62 = vld [vmem:[%s7204_s4 + $0x178] sm:$0xff]  }
 0x966   : > { %v3154_v9 = vadd.f32 %v3153_v7, %v2404_v63  ;;  %v3195_v10 = vadd.f32 %v3194_v8, %v2412_v0  ;;  %v3155_v13 = vpop.f32.mrb[30].mxu1  ;;  %v3196_v15 = vpop.f32.mrb[18].mxu0  ;;  %v6216_v63 = vld [vmem:[%s7204_s4 + $0x1f8] sm:$0xff]  }
 0x967   : > { %v3445_v16 = vmax.f32 %v3152_v5, 0.0  ;;  %v3447_v17 = vmax.f32 %v3193_v6, 0.0  ;;  %v3156_v18 = vpop.f32.mrb[31].mxu1  ;;  %v3197_v11 = vpop.f32.mrb[19].mxu0  ;;  %v6217_v13 = vld [vmem:[%s7204_s4 + $0x138] sm:$0xff]  }
 0x968   : > { %v3446_v19 = vmax.f32 %v3154_v9, 0.0  ;;  %v3448_v20 = vmax.f32 %v3195_v10, 0.0  ;;  %v6218_v15 = vld [vmem:[%s7204_s4 + $0x1b8] sm:$0xff]  }
 0x969   : > { %v3461_v25 = vpack.c.bf16 %v3445_v16, %v3445_v16  ;;  %v3463_v26 = vpack.c.bf16 %v3447_v17, %v3447_v17 }
 0x96a   : > { %v3462_v22 = vpack.c.bf16 %v3446_v19, %v3446_v19  ;;  %v3464_v21 = vpack.c.bf16 %v3448_v20, %v3448_v20  ;;  %v6219_v19 = vld [vmem:[%s7204_s4 + $0x240] sm:$0xff]  }
 0x96b   : > { %v6220_v20 = vld [vmem:[%s7204_s4 + $0x2c0] sm:$0xff]  }
 0x96c   : > { %4540 = vmatprep.mubr.bf16.mxu1 %v3462_v22  ;;  %4580 = vmatprep.mubr.bf16.mxu0 %v3464_v21 }
 0x96d   : > { %4541 = vmatmul.mubr.bf16.vlgmr.msra.gmra.mrb[44].mxu1 %v3461_v25  ;;  %4581 = vmatmul.mubr.bf16.vlgmr.msra.gmra.mrb[32].mxu0 %v3463_v26  ;;  %v6221_v25 = vld [vmem:[%s7204_s4 + $0x200] sm:$0xff]  }
 0x96e   : > { %5738 = vmatpush3.bf16.msra.mxu1 %v6189_v23  ;;  %5760 = vmatpush3.bf16.msra.mxu0 %v6190_v24  ;;  %v6222_v26 = vld [vmem:[%s7204_s4 + $0x280] sm:$0xff]  }
 0x96f   : > { %5739 = vmatprep.subr.bf16.mxu1 %v6191_v12  ;;  %5761 = vmatprep.subr.bf16.mxu0 %v6192_v28 }
 0x972   : > { %5740 = vmatpush3.bf16.msra.mxu1 %v6193_v51  ;;  %5762 = vmatpush3.bf16.msra.mxu0 %v6194_v32  ;;  %v6223_v51 = vld [vmem:[%s7204_s4 + $0x248] sm:$0xff]  }
 0x973   : > { %5741 = vmatprep.subr.bf16.mxu1 %v6195_v14  ;;  %5763 = vmatprep.subr.bf16.mxu0 %v6196_v33  ;;  %v6224_v32 = vld [vmem:[%s7204_s4 + $0x2c8] sm:$0xff]  }
 0x974   : > { %v6225_v14 = vld [vmem:[%s7204_s4 + $0x208] sm:$0xff]  }
 0x975   : > { %v6226_v33 = vld [vmem:[%s7204_s4 + $0x288] sm:$0xff]  }
 0x976   : > { %5742 = vmatpush3.bf16.msra.mxu1 %v6197_v58  ;;  %5764 = vmatpush3.bf16.msra.mxu0 %v6198_v34  ;;  %v6227_v58 = vld [vmem:[%s7204_s4 + $0x250] sm:$0xff]  }
 0x977   : > { %5743 = vmatprep.subr.bf16.mxu1 %v6199_v35  ;;  %5765 = vmatprep.subr.bf16.mxu0 %v6200_v3  ;;  %v6228_v34 = vld [vmem:[%s7204_s4 + $0x2d0] sm:$0xff]  }
 0x978   : > { %v6229_v35 = vld [vmem:[%s7204_s4 + $0x210] sm:$0xff]  }
 0x979   : > { %v6230_v3 = vld [vmem:[%s7204_s4 + $0x290] sm:$0xff]  }
 0x97a   : > { %5744 = vmatpush3.bf16.msra.mxu1 %v6201_v36  ;;  %5766 = vmatpush3.bf16.msra.mxu0 %v6202_v37  ;;  %v6231_v36 = vld [vmem:[%s7204_s4 + $0x258] sm:$0xff]  }
 0x97b   : > { %5745 = vmatprep.subr.bf16.mxu1 %v6203_v38  ;;  %5767 = vmatprep.subr.bf16.mxu0 %v6204_v39  ;;  %v6232_v37 = vld [vmem:[%s7204_s4 + $0x2d8] sm:$0xff]  }
 0x97c   : > { %v6233_v38 = vld [vmem:[%s7204_s4 + $0x218] sm:$0xff]  }
 0x97d   : > { %v6234_v39 = vld [vmem:[%s7204_s4 + $0x298] sm:$0xff]  }
 0x97e   : > { %5746 = vmatpush3.bf16.msra.mxu1 %v6205_v40  ;;  %5768 = vmatpush3.bf16.msra.mxu0 %v6206_v41  ;;  %v6235_v40 = vld [vmem:[%s7204_s4 + $0x260] sm:$0xff]  }
 0x97f   : > { %5747 = vmatprep.subr.bf16.mxu1 %v6207_v42  ;;  %5769 = vmatprep.subr.bf16.mxu0 %v6208_v43  ;;  %v6236_v41 = vld [vmem:[%s7204_s4 + $0x2e0] sm:$0xff]  }
 0x980   : > { %v6237_v42 = vld [vmem:[%s7204_s4 + $0x220] sm:$0xff]  }
 0x981   : > { %v6238_v43 = vld [vmem:[%s7204_s4 + $0x2a0] sm:$0xff]  }
 0x982   : > { %5748 = vmatpush3.bf16.msra.mxu1 %v6209_v46  ;;  %5770 = vmatpush3.bf16.msra.mxu0 %v6210_v48  ;;  %v6239_v46 = vld [vmem:[%s7204_s4 + $0x268] sm:$0xff]  }
 0x983   : > { %5749 = vmatprep.subr.bf16.mxu1 %v6211_v52  ;;  %5771 = vmatprep.subr.bf16.mxu0 %v6212_v53  ;;  %v6240_v48 = vld [vmem:[%s7204_s4 + $0x2e8] sm:$0xff]  }
 0x984   : > { %v3233_v0 = vpop.f32.mrb[32].mxu1  ;;  %v3274_v1 = vpop.f32.mrb[20].mxu0  ;;  %v6241_v52 = vld [vmem:[%s7204_s4 + $0x228] sm:$0xff]  }
 0x985   : > { %v3234_v2 = vadd.f32 %v3233_v0, %v2416_v54  ;;  %v3275_v5 = vadd.f32 %v3274_v1, %v2424_v4  ;;  %v3235_v6 = vpop.f32.mrb[33].mxu1  ;;  %v3276_v7 = vpop.f32.mrb[21].mxu0  ;;  %v6242_v53 = vld [vmem:[%s7204_s4 + $0x2a8] sm:$0xff]   ;;  %v6243_v4 = vld [vmem:[%s7204_s4 + $0x270] sm:$0xff]   ;;  %v6247_v1 = vld [vmem:[%s7204_s4 + $0x278] sm:$0xff]  }
 0x986   : > { %v3236_v8 = vadd.f32 %v3235_v6, %v2420_v55  ;;  %v3277_v9 = vadd.f32 %v3276_v7, %v2428_v56  ;;  %v3237_v10 = vpop.f32.mrb[34].mxu1  ;;  %v3278_v59 = vpop.f32.mrb[22].mxu0  ;;  %5750 = vmatpush3.bf16.msra.mxu1 %v6213_v57  ;;  %5772 = vmatpush3.bf16.msra.mxu0 %v6214_v61  ;;  %v7761_v54 = vld [vmem:[%s7202_s0 + $0x8] sm:$0xff]  ;;  %v6244_v55 = vld [vmem:[%s7204_s4 + $0x2f0] sm:$0xff]  }
 0x987   : > { %v3449_v16 = vmax.f32 %v3234_v2, 0.0  ;;  %v3451_v17 = vmax.f32 %v3275_v5, 0.0  ;;  %v3238_v18 = vpop.f32.mrb[35].mxu1  ;;  %v3279_v11 = vpop.f32.mrb[23].mxu0  ;;  %5751 = vmatprep.subr.bf16.mxu1 %v6215_v62  ;;  %5773 = vmatprep.subr.bf16.mxu0 %v6216_v63  ;;  %v2432_v56 = vrot.slane %v7761_v54, %v7291_v31  ;;  %v2440_v57 = vrot.slane %v7761_v54, %v7376_v47  ;;  %v6245_v63 = vld [vmem:[%s7204_s4 + $0x230] sm:$0xff]   ;;  %v6248_v2 = vld [vmem:[%s7204_s4 + $0x2f8] sm:$0xff]  }
 0x988   : > { %v3450_v22 = vmax.f32 %v3236_v8, 0.0  ;;  %v3452_v21 = vmax.f32 %v3277_v9, 0.0  ;;  %v2436_v61 = vrot.slane %v7761_v54, %v7284_v29  ;;  %v2444_v62 = vrot.slane %v7761_v54, %v2411_v60  ;;  %v6246_v0 = vld [vmem:[%s7204_s4 + $0x2b0] sm:$0xff]  }
 0x989   : > { %v3465_v12 = vpack.c.bf16 %v3449_v16, %v3449_v16  ;;  %v3467_v28 = vpack.c.bf16 %v3451_v17, %v3451_v17  ;;  %v6250_v16 = vld [vmem:[%s7204_s4 + $0x2b8] sm:$0xff]  }
 0x98a   : > { %v3466_v23 = vpack.c.bf16 %v3450_v22, %v3450_v22  ;;  %v3468_v24 = vpack.c.bf16 %v3452_v21, %v3452_v21  ;;  %5752 = vmatpush3.bf16.msra.mxu1 %v6217_v13  ;;  %5774 = vmatpush3.bf16.msra.mxu0 %v6218_v15  ;;  %v6249_v15 = vld [vmem:[%s7204_s4 + $0x238] sm:$0xff]   ;;  %v6252_v22 = vld [vmem:[%s7204_s4 + $0x3c0] sm:$0xff]  }
 0x98b   : > { %5781 = vmatprep.subr.bf16.mxu1 %v6219_v19  ;;  %5803 = vmatprep.subr.bf16.mxu0 %v6220_v20  ;;  %v6251_v20 = vld [vmem:[%s7204_s4 + $0x340] sm:$0xff]  }
 0x98c   : > { %4620 = vmatprep.mubr.bf16.mxu1 %v3466_v23  ;;  %4660 = vmatprep.mubr.bf16.mxu0 %v3468_v24 }
 0x98d   : > { %4621 = vmatmul.mubr.bf16.vlgmr.msra.gmra.mrb[48].mxu1 %v3465_v12  ;;  %4661 = vmatmul.mubr.bf16.vlgmr.msra.gmra.mrb[36].mxu0 %v3467_v28  ;;  %v6254_v12 = vld [vmem:[%s7204_s4 + $0x380] sm:$0xff]  }
 0x98e   : > { %5782 = vmatpush3.bf16.msra.mxu1 %v6221_v25  ;;  %5804 = vmatpush3.bf16.msra.mxu0 %v6222_v26  ;;  %v6253_v26 = vld [vmem:[%s7204_s4 + $0x300] sm:$0xff]  }
 0x98f   : > { %5783 = vmatprep.subr.bf16.mxu1 %v6223_v51  ;;  %5805 = vmatprep.subr.bf16.mxu0 %v6224_v32  ;;  %v6255_v32 = vld [vmem:[%s7204_s4 + $0x348] sm:$0xff]  }
 0x992   : > { %5784 = vmatpush3.bf16.msra.mxu1 %v6225_v14  ;;  %5806 = vmatpush3.bf16.msra.mxu0 %v6226_v33  ;;  %v6256_v14 = vld [vmem:[%s7204_s4 + $0x3c8] sm:$0xff]  }
 0x993   : > { %5785 = vmatprep.subr.bf16.mxu1 %v6227_v58  ;;  %5807 = vmatprep.subr.bf16.mxu0 %v6228_v34  ;;  %v6257_v33 = vld [vmem:[%s7204_s4 + $0x308] sm:$0xff]   ;;  %v6259_v34 = vld [vmem:[%s7204_s4 + $0x350] sm:$0xff]  }
 0x994   : > { %v6258_v58 = vld [vmem:[%s7204_s4 + $0x388] sm:$0xff]  }
 0x996   : > { %5786 = vmatpush3.bf16.msra.mxu1 %v6229_v35  ;;  %5808 = vmatpush3.bf16.msra.mxu0 %v6230_v3  ;;  %v6260_v35 = vld [vmem:[%s7204_s4 + $0x3d0] sm:$0xff]  }
 0x997   : > { %5787 = vmatprep.subr.bf16.mxu1 %v6231_v36  ;;  %5809 = vmatprep.subr.bf16.mxu0 %v6232_v37  ;;  %v6261_v3 = vld [vmem:[%s7204_s4 + $0x310] sm:$0xff]   ;;  %v6263_v37 = vld [vmem:[%s7204_s4 + $0x358] sm:$0xff]  }
 0x998   : > { %v6262_v36 = vld [vmem:[%s7204_s4 + $0x390] sm:$0xff]  }
 0x99a   : > { %5788 = vmatpush3.bf16.msra.mxu1 %v6233_v38  ;;  %5810 = vmatpush3.bf16.msra.mxu0 %v6234_v39  ;;  %v6264_v38 = vld [vmem:[%s7204_s4 + $0x3d8] sm:$0xff]  }
 0x99b   : > { %5789 = vmatprep.subr.bf16.mxu1 %v6235_v40  ;;  %5811 = vmatprep.subr.bf16.mxu0 %v6236_v41  ;;  %v6265_v39 = vld [vmem:[%s7204_s4 + $0x318] sm:$0xff]   ;;  %v6267_v41 = vld [vmem:[%s7204_s4 + $0x360] sm:$0xff]  }
 0x99c   : > { %v6266_v40 = vld [vmem:[%s7204_s4 + $0x398] sm:$0xff]  }
 0x99e   : > { %5790 = vmatpush3.bf16.msra.mxu1 %v6237_v42  ;;  %5812 = vmatpush3.bf16.msra.mxu0 %v6238_v43  ;;  %v6268_v42 = vld [vmem:[%s7204_s4 + $0x3e0] sm:$0xff]  }
 0x99f   : > { %5791 = vmatprep.subr.bf16.mxu1 %v6239_v46  ;;  %5813 = vmatprep.subr.bf16.mxu0 %v6240_v48  ;;  %v6269_v43 = vld [vmem:[%s7204_s4 + $0x320] sm:$0xff]   ;;  %v6271_v48 = vld [vmem:[%s7204_s4 + $0x368] sm:$0xff]  }
 0x9a0   : > { %v6270_v46 = vld [vmem:[%s7204_s4 + $0x3a0] sm:$0xff]  }
 0x9a2   : > { %5792 = vmatpush3.bf16.msra.mxu1 %v6241_v52  ;;  %5814 = vmatpush3.bf16.msra.mxu0 %v6242_v53  ;;  %v6272_v52 = vld [vmem:[%s7204_s4 + $0x3e8] sm:$0xff]  }
 0x9a3   : > { %5793 = vmatprep.subr.bf16.mxu1 %v6243_v4  ;;  %5815 = vmatprep.subr.bf16.mxu0 %v6244_v55  ;;  %v6273_v53 = vld [vmem:[%s7204_s4 + $0x328] sm:$0xff]   ;;  %v6275_v55 = vld [vmem:[%s7204_s4 + $0x370] sm:$0xff]  }
 0x9a4   : > { %v3315_v5 = vpop.f32.mrb[36].mxu1  ;;  %v3356_v6 = vpop.f32.mrb[24].mxu0  ;;  %v6274_v4 = vld [vmem:[%s7204_s4 + $0x3a8] sm:$0xff]  }
 0x9a5   : > { %v3316_v47 = vadd.f32 %v3315_v5, %v2432_v56  ;;  %v3357_v7 = vadd.f32 %v3356_v6, %v2440_v57  ;;  %v3317_v8 = vpop.f32.mrb[37].mxu1  ;;  %v3358_v9 = vpop.f32.mrb[25].mxu0  ;;  %v6276_v56 = vld [vmem:[%s7204_s4 + $0x3f0] sm:$0xff]   ;;  %v2448_v57 = vrot.slane %v7761_v54, %v2415_v44  ;;  %v6279_v44 = vld [vmem:[%s7204_s4 + $0x378] sm:$0xff]  }
 0x9a6   : > { %v3318_v10 = vadd.f32 %v3317_v8, %v2436_v61  ;;  %v3359_v59 = vadd.f32 %v3358_v9, %v2444_v62  ;;  %v3319_v13 = vpop.f32.mrb[38].mxu1  ;;  %v3360_v60 = vpop.f32.mrb[26].mxu0  ;;  %5794 = vmatpush3.bf16.msra.mxu1 %v6245_v63  ;;  %5816 = vmatpush3.bf16.msra.mxu0 %v6246_v0  ;;  %v2456_v61 = vrot.slane %v7761_v54, %v2423_v45  ;;  %v6277_v0 = vld [vmem:[%s7204_s4 + $0x330] sm:$0xff]  }
 0x9a7   : > { %v3453_v17 = vmax.f32 %v3316_v47, 0.0  ;;  %v3455_v18 = vmax.f32 %v3357_v7, 0.0  ;;  %v3320_v11 = vpop.f32.mrb[39].mxu1  ;;  %v3361_v19 = vpop.f32.mrb[27].mxu0  ;;  %5795 = vmatprep.subr.bf16.mxu1 %v6247_v1  ;;  %5817 = vmatprep.subr.bf16.mxu0 %v6248_v2  ;;  %v2452_v62 = vrot.slane %v7761_v54, %v2419_v49  ;;  %v2460_v63 = vrot.slane %v7761_v54, %v2427_v50  ;;  %v6278_v1 = vld [vmem:[%s7204_s4 + $0x3b0] sm:$0xff]   ;;  %v6280_v2 = vld [vmem:[%s7204_s4 + $0x3f8] sm:$0xff]  }
 0x9a8   : > { %v3454_v21 = vmax.f32 %v3318_v10, 0.0  ;;  %v3456_v23 = vmax.f32 %v3359_v59, 0.0  ;;  %v6281_v50 = vld [vmem:[%s7204_s4 + $0x338] sm:$0xff]  }
 0x9a9   : > { %v3469_v28 = vpack.c.bf16 %v3453_v17, %v3453_v17  ;;  %v3471_v51 = vpack.c.bf16 %v3455_v18, %v3455_v18  ;;  %v6282_v54 = vld [vmem:[%s7204_s4 + $0x3b8] sm:$0xff]  }
 0x9aa   : > { %v3470_v24 = vpack.c.bf16 %v3454_v21, %v3454_v21  ;;  %v3472_v25 = vpack.c.bf16 %v3456_v23, %v3456_v23  ;;  %5796 = vmatpush3.bf16.msra.mxu1 %v6249_v15  ;;  %5818 = vmatpush3.bf16.msra.mxu0 %v6250_v16  ;;  %v5501_v23 = vld [vmem:[%s822_s19] ss:$0 sm:$0xff] }
 0x9ab   : > { %5825 = vmatprep.subr.bf16.mxu1 %v6251_v20  ;;  %5847 = vmatprep.subr.bf16.mxu0 %v6252_v22 }
 0x9ac   : > { %4700 = vmatprep.mubr.bf16.mxu1 %v3470_v24  ;;  %4740 = vmatprep.mubr.bf16.mxu0 %v3472_v25 }
 0x9ad   : > { %4701 = vmatmul.mubr.bf16.vlgmr.msra.gmra.mrb[52].mxu1 %v3469_v28  ;;  %4741 = vmatmul.mubr.bf16.vlgmr.msra.gmra.mrb[40].mxu0 %v3471_v51 }
 0x9ae   : > { %5826 = vmatpush3.bf16.msra.mxu1 %v6253_v26  ;;  %5848 = vmatpush3.bf16.msra.mxu0 %v6254_v12 }
 0x9af   : > { %5827 = vmatprep.subr.bf16.mxu1 %v6255_v32  ;;  %5849 = vmatprep.subr.bf16.mxu0 %v6256_v14 }
 0x9b2   : > { %5828 = vmatpush3.bf16.msra.mxu1 %v6257_v33  ;;  %5850 = vmatpush3.bf16.msra.mxu0 %v6258_v58 }
 0x9b3   : > { %5829 = vmatprep.subr.bf16.mxu1 %v6259_v34  ;;  %5851 = vmatprep.subr.bf16.mxu0 %v6260_v35 }
 0x9b6   : > { %5830 = vmatpush3.bf16.msra.mxu1 %v6261_v3  ;;  %5852 = vmatpush3.bf16.msra.mxu0 %v6262_v36 }
 0x9b7   : > { %5831 = vmatprep.subr.bf16.mxu1 %v6263_v37  ;;  %5853 = vmatprep.subr.bf16.mxu0 %v6264_v38 }
 0x9ba   : > { %5832 = vmatpush3.bf16.msra.mxu1 %v6265_v39  ;;  %5854 = vmatpush3.bf16.msra.mxu0 %v6266_v40 }
 0x9bb   : > { %5833 = vmatprep.subr.bf16.mxu1 %v6267_v41  ;;  %5855 = vmatprep.subr.bf16.mxu0 %v6268_v42 }
 0x9be   : > { %5834 = vmatpush3.bf16.msra.mxu1 %v6269_v43  ;;  %5856 = vmatpush3.bf16.msra.mxu0 %v6270_v46 }
 0x9bf   : > { %5835 = vmatprep.subr.bf16.mxu1 %v6271_v48  ;;  %5857 = vmatprep.subr.bf16.mxu0 %v6272_v52 }
 0x9c2   : > { %5836 = vmatpush3.bf16.msra.mxu1 %v6273_v53  ;;  %5858 = vmatpush3.bf16.msra.mxu0 %v6274_v4 }
 0x9c3   : > { %5837 = vmatprep.subr.bf16.mxu1 %v6275_v55  ;;  %5859 = vmatprep.subr.bf16.mxu0 %v6276_v56 }
 0x9c4   : > { %v3397_v5 = vpop.f32.mrb[40].mxu1  ;;  %v3438_v45 = vpop.f32.mrb[28].mxu0 }
 0x9c5   : > { %v3398_v6 = vadd.f32 %v3397_v5, %v2448_v57  ;;  %v3439_v47 = vadd.f32 %v3438_v45, %v2456_v61  ;;  %v3399_v7 = vpop.f32.mrb[41].mxu1  ;;  %v3440_v8 = vpop.f32.mrb[29].mxu0 }
 0x9c6   : > { %v3400_v9 = vadd.f32 %v3399_v7, %v2452_v62  ;;  %v3441_v49 = vadd.f32 %v3440_v8, %v2460_v63  ;;  %v3401_v10 = vpop.f32.mrb[42].mxu1  ;;  %v3442_v27 = vpop.f32.mrb[30].mxu0  ;;  %5838 = vmatpush3.bf16.msra.mxu1 %v6277_v0  ;;  %5860 = vmatpush3.bf16.msra.mxu0 %v6278_v1 }
 0x9c7   : > { %v3457_v59 = vmax.f32 %v3398_v6, 0.0  ;;  %v3459_v13 = vmax.f32 %v3439_v47, 0.0  ;;  %v3402_v60 = vpop.f32.mrb[43].mxu1  ;;  %v3443_v15 = vpop.f32.mrb[31].mxu0  ;;  %5839 = vmatprep.subr.bf16.mxu1 %v6279_v44  ;;  %5861 = vmatprep.subr.bf16.mxu0 %v6280_v2 }
 0x9c8   : > { %v3458_v16 = vmax.f32 %v3400_v9, 0.0  ;;  %v3460_v17 = vmax.f32 %v3441_v49, 0.0 }
 0x9c9   : > { %v3473_v19 = vpack.c.bf16 %v3457_v59, %v3457_v59  ;;  %v3475_v20 = vpack.c.bf16 %v3459_v13, %v3459_v13 }
 0x9ca   : > { %v3474_v18 = vpack.c.bf16 %v3458_v16, %v3458_v16  ;;  %v3476_v11 = vpack.c.bf16 %v3460_v17, %v3460_v17  ;;  %5840 = vmatpush3.bf16.msra.mxu1 %v6281_v50  ;;  %5862 = vmatpush3.bf16.msra.mxu0 %v6282_v54 }
 0x9cc   : > { %4780 = vmatprep.mubr.bf16.mxu1 %v3474_v18  ;;  %4820 = vmatprep.mubr.bf16.mxu0 %v3476_v11  ;;  %v5630_v11 = vld [vmem:[%s825_s20] ss:$0 sm:$0xff]  ;;  %s8045_s20 = sld [smem:[#allocation55_spill]] (!%p5632_p11) }
 0x9cd   : > { %4781 = vmatmul.mubr.bf16.vlgmr.msra.gmra.mrb[56].mxu1 %v3473_v19  ;;  %4821 = vmatmul.mubr.bf16.vlgmr.msra.gmra.mrb[44].mxu0 %v3475_v20 }
 0xa40   : > { %v5709_v22 = vpop.f32.mrb[44].mxu1  ;;  %v5731_v21 = vpop.f32.mrb[32].mxu0 }
 0xa41   : > { %v5710_v24 = vpop.f32.mrb[45].mxu1  ;;  %v5732_v25 = vpop.f32.mrb[33].mxu0 }
 0xa42   : > { %v5711_v26 = vadd.f32 %v5710_v24, %v5709_v22  ;;  %v5733_v12 = vadd.f32 %v5732_v25, %v5731_v21  ;;  %v5712_v28 = vpop.f32.mrb[46].mxu1  ;;  %v5734_v51 = vpop.f32.mrb[34].mxu0  ;;  %v6304_v21 = vld [vmem:[#allocation14 + $0x4] ss:$8 sps:$4 sm:$0xff] (!%p5632_p11)   ;;  %v6698_v24 = vmov (!%p5632_p11), 0  }
 0xa43   : > { %v5713_v32 = vpop.f32.mrb[47].mxu1  ;;  %v5735_v14 = vpop.f32.mrb[35].mxu0  ;;  %5002 = vmatprep.mubr.bf16.mxu0 (!%p5632_p11), %v6698_v24  ;;  %4970 = vmatprep.subr.bf16.mxu0 (!%p5632_p11), %v6304_v21  ;;  %v6307_v25 = vld [vmem:[#allocation14 + $0x14] ss:$8 sps:$4 sm:$0xff] (!%p5632_p11)   ;;  %v6312_v28 = vld [vmem:[#allocation14 + $0x20] ss:$8 sps:$4 sm:$0xff] (!%p5632_p11)  }
 0xa44   : > { %v4543_v33 = vadd.f32 %v5711_v26, %v5501_v23  ;;  %v6306_v23 = vld [vmem:[#allocation14] ss:$8 sps:$4 sm:$0xff] (!%p5632_p11)   ;;  %v6309_v26 = vld [vmem:[#allocation14 + $0x10] ss:$8 sps:$4 sm:$0xff] (!%p5632_p11)   ;;  %v6313_v51 = vld [vmem:[#allocation14 + $0x34] ss:$8 sps:$4 sm:$0xff] (!%p5632_p11)  }
 0xa45   : > { %4971 = vmatpush1.bf16.msra.mxu0 (!%p5632_p11), %v6306_v23  ;;  %v6315_v32 = vld [vmem:[#allocation14 + $0x30] ss:$8 sps:$4 sm:$0xff] (!%p5632_p11)   ;;  %v6316_v14 = vld [vmem:[#allocation14 + $0x44] ss:$8 sps:$4 sm:$0xff] (!%p5632_p11)  }
 0xa46   : > { %v4583_v58 = vadd.f32 %v5733_v12, %v4543_v33  ;;  %4972 = vmatprep.subr.bf16.mxu0 (!%p5632_p11), %v6307_v25  ;;  %v6310_v12 = vld [vmem:[#allocation14 + $0x24] ss:$8 sps:$4 sm:$0xff] (!%p5632_p11)   ;;  %v6318_v33 = vld [vmem:[#allocation14 + $0x40] ss:$8 sps:$4 sm:$0xff] (!%p5632_p11)  }
 0xa49   : > { %4973 = vmatpush1.bf16.msra.mxu0 (!%p5632_p11), %v6309_v26 }
 0xa4a   : > { %4974 = vmatprep.subr.bf16.mxu0 (!%p5632_p11), %v6310_v12 }
 0xa4d   : > { %4975 = vmatpush1.bf16.msra.mxu0 (!%p5632_p11), %v6312_v28 }
 0xa4e   : > { %4976 = vmatprep.subr.bf16.mxu0 (!%p5632_p11), %v6313_v51 }
 0xa51   : > { %4977 = vmatpush1.bf16.msra.mxu0 (!%p5632_p11), %v6315_v32 }
 0xa52   : > { %4978 = vmatprep.subr.bf16.mxu0 (!%p5632_p11), %v6316_v14 }
 0xa55   : > { %4979 = vmatpush1.bf16.msra.mxu0 (!%p5632_p11), %v6318_v33 }
 0xa60   : > { %v5753_v34 = vpop.f32.mrb[48].mxu1  ;;  %v5775_v35 = vpop.f32.mrb[36].mxu0 }
 0xa61   : > { %v5754_v3 = vpop.f32.mrb[49].mxu1  ;;  %v5776_v36 = vpop.f32.mrb[37].mxu0 }
 0xa62   : > { %v5755_v37 = vadd.f32 %v5754_v3, %v5753_v34  ;;  %v5777_v38 = vadd.f32 %v5776_v36, %v5775_v35  ;;  %v5756_v39 = vpop.f32.mrb[50].mxu1  ;;  %v5778_v40 = vpop.f32.mrb[38].mxu0  ;;  %v6321_v34 = vld [vmem:[#allocation14 + $0x50] ss:$8 sps:$4 sm:$0xff] (!%p5632_p11)   ;;  %v6322_v35 = vld [vmem:[#allocation14 + $0x64] ss:$8 sps:$4 sm:$0xff] (!%p5632_p11)  }
 0xa63   : > { %v5757_v41 = vpop.f32.mrb[51].mxu1  ;;  %v5779_v42 = vpop.f32.mrb[39].mxu0  ;;  %v6324_v3 = vld [vmem:[#allocation14 + $0x60] ss:$8 sps:$4 sm:$0xff] (!%p5632_p11)   ;;  %v6325_v36 = vld [vmem:[#allocation14 + $0x74] ss:$8 sps:$4 sm:$0xff] (!%p5632_p11)  }
 0xa64   : > { %v4623_v43 = vadd.f32 %v5755_v37, %v4583_v58  ;;  %v6319_v58 = vld [vmem:[#allocation14 + $0x54] ss:$8 sps:$4 sm:$0xff] (!%p5632_p11)   ;;  %v6327_v37 = vld [vmem:[#allocation14 + $0x70] ss:$8 sps:$4 sm:$0xff] (!%p5632_p11)  }
 0xa65   : > { %4980 = vmatprep.subr.bf16.mxu0 (!%p5632_p11), %v6319_v58  ;;  %v4878_v39 = vld [vmem:[%s8045_s20] sm:$0x3] (!%p5632_p11) }
 0xa66   : > { %v4663_v46 = vadd.f32 %v5777_v38, %v4623_v43  ;;  %4981 = vmatpush1.bf16.msra.mxu0 (!%p5632_p11), %v6321_v34  ;;  %v4883_v40 = vrot.slane (!%p5632_p11), %v4878_v39, %v7291_v31  ;;  %v4887_v41 = vrot.slane (!%p5632_p11), %v4878_v39, %v7284_v29 }
 0xa67   : > { %4982 = vmatprep.subr.bf16.mxu0 (!%p5632_p11), %v6322_v35 }
 0xa6a   : > { %4983 = vmatpush1.bf16.msra.mxu0 (!%p5632_p11), %v6324_v3 }
 0xa6b   : > { %4984 = vmatprep.subr.bf16.mxu0 (!%p5632_p11), %v6325_v36 }
 0xa6e   : > { %4985 = vmatpush1.bf16.msra.mxu0 (!%p5632_p11), %v6327_v37 }
 0xa80   : > { %v5797_v48 = vpop.f32.mrb[52].mxu1  ;;  %v5819_v52 = vpop.f32.mrb[40].mxu0 }
 0xa81   : > { %v5798_v53 = vpop.f32.mrb[53].mxu1  ;;  %v5820_v4 = vpop.f32.mrb[41].mxu0 }
 0xa82   : > { %v5799_v55 = vadd.f32 %v5798_v53, %v5797_v48  ;;  %v5821_v56 = vadd.f32 %v5820_v4, %v5819_v52  ;;  %v5800_v57 = vpop.f32.mrb[54].mxu1  ;;  %v5822_v61 = vpop.f32.mrb[42].mxu0 }
 0xa83   : > { %v5801_v62 = vpop.f32.mrb[55].mxu1  ;;  %v5823_v63 = vpop.f32.mrb[43].mxu0 }
 0xa84   : > { %v4703_v0 = vadd.f32 %v5799_v55, %v4663_v46 }
 0xa86   : > { %v4743_v1 = vadd.f32 %v5821_v56, %v4703_v0 }
 0xaa0   : > { %v5841_v44 = vpop.f32.mrb[56].mxu1  ;;  %v5863_v2 = vpop.f32.mrb[44].mxu0 }
 0xaa1   : > { %v5842_v5 = vpop.f32.mrb[57].mxu1  ;;  %v5864_v45 = vpop.f32.mrb[45].mxu0 }
 0xaa2   : > { %v5843_v6 = vadd.f32 %v5842_v5, %v5841_v44  ;;  %v5865_v47 = vadd.f32 %v5864_v45, %v5863_v2  ;;  %v5844_v7 = vpop.f32.mrb[58].mxu1  ;;  %v5866_v8 = vpop.f32.mrb[46].mxu0 }
 0xaa3   : > { %v5845_v9 = vpop.f32.mrb[59].mxu1  ;;  %v5867_v49 = vpop.f32.mrb[47].mxu0 }
 0xaa4   : > { %v4783_v10 = vadd.f32 %v5843_v6, %v4743_v1 }
 0xaa6   : > { %v4823_v27 = vadd.f32 %v5865_v47, %v4783_v10 }
 0xaa8   : > { %v4828_v50 = vadd.f32 %v4823_v27, %v7535_v30  ;;  %v5631_v30 = vld [vmem:[%s828_s25] ss:$0 sm:$0xff] }
 0xaaa   : > { %4831 = vadd.xlane.f32.xlu0 %v4828_v50 }
 0xb37   : > { %v4832_v54 = vpop.xlane.xlu0 %4831 }
 0xb38   : > { %v4833_v59 = vmul.f32 0.0078125, %v4832_v54 }
 0xb3a   : > { %v4834_v13 = vsub.f32 %v4828_v50, %v4833_v59 }
 0xb3c   : > { %v4835_v60 = vmul.f32 %v4834_v13, %v4834_v13 }
 0xb3e   : > { %4836 = vadd.xlane.f32.xlu0 %v4835_v60 }
 0xbcb   : > { %v4837_v15 = vpop.xlane.xlu0 %4836 }
 0xbcc   : > { %v4838_v16 = vmul.f32 0.0078125, %v4837_v15 }
 0xbce   : > { %v4839_v17 = vadd.f32 1e-05, %v4838_v16 }
 0xbd0   : > { %6301 = vrsqrt.f32 %v4839_v17 }
 0xbda   : > { %v6302_v18 = vpop.eup %6301 }
 0xbdb   : > { %v4841_v19 = vmul.f32 %v6302_v18, %v4834_v13  ;;  %4860 = sbr.rel (%p5632_p11) target bundleno = 3259 (0xcbb), region = 116 }
 0xbdd   : > { %v4848_v20 = vmul.f32 %v5630_v11, %v4841_v19 }
 0xbdf   : > { %v4855_v22 = vadd.f32 %v5631_v30, %v4848_v20 }
 0xbe1   : > { %4856 = vst [vmem:[#allocation2] sm:$0xff] %v4855_v22  ;;  %v4861_v38 = vpack.c.bf16 (!%p5632_p11), %v4855_v22, %v4855_v22 }
 0xbe3   : > { %5003 = vmatmul.mubr.bf16.vlgmr.msra.gmra.mrb[0].mxu0 %v4861_v38 }
 0xcb6   : > { %v5004_v42 = vpop.f32.mrb[0].mxu0 }
 0xcb7   : > { %v5005_v43 = vadd.f32 %v5004_v42, %v4883_v40  ;;  %v5006_v46 = vpop.f32.mrb[1].mxu0 }
 0xcb8   : > { %v5007_v48 = vadd.f32 %v5006_v46, %v4887_v41  ;;  %v5008_v52 = vpop.f32.mrb[2].mxu0 }
 0xcb9   : > { %5011 = vst [vmem:[%s7249_s16] sm:$0xff] %v5005_v43  ;;  %v5009_v53 = vpop.f32.mrb[3].mxu0 }
 0xcba   : > { %5012 = vst [vmem:[%s7249_s16 + $0x8] sm:$0xff] %v5007_v48 }
 0xcbb PF: > { %s8046_s5 = sld [smem:[#allocation28_spill]]  ;;  %s8047_s24 = sld [smem:[#allocation40_spill]] }
 0xcbc   : > { %s8048_s25 = sld [smem:[#allocation37_spill]]  ;;  %s8049_s21 = sld [smem:[#allocation56_spill]] }
 0xcbd   : > { %s5028_s23 = sshll.u32 %s7249_s16, 4  ;;  %s6699_s18 = smov [#allocation15]   ;;  %s5029_s23 = int_to_ptr.vmem [resolvable:$true] %s5028_s23 }
 0xcbe   : > { %s6536_s28 = scalar_lea.vmem %s5029_s23, 256  ;;  %s6540_s30 = sshll.u32 %s6699_s18, 4  ;;  %s6541_s30 = int_to_ptr.vmem [resolvable:$false] %s6540_s30 }
 0xcbf   : > { %p6537_p13 = scmp.ne.s32.totalorder %s5029_s23, %s6536_s28  ;;  %s6542_s10 = scalar_lea.vmem %s6541_s30, 512 }
 0xcc0   : > { %p6543_p2 = scmp.lt.s32.totalorder %s5029_s23, %s6541_s30  ;;  %p6544_p3 = scmp.lt.s32.totalorder %s6542_s10, %s6536_s28 }
 0xcc1   : > { %s5658_s3 = sshll.u32 %s8046_s5, 8  ;;  %s5014_s26 = scalar_lea.sflag [#allocation5], %s8047_s24 }
 0xcc2   : > { %s8050_s17 = smov %s8049_s21  ;;  %s7852_s22 = scalar_lea.hbm %s8049_s21, %s5658_s3 }
 0xcc3   : > { %p8051_p1 = scmp.ne.s32.totalorder %s8048_s25, 0  ;;  %p6545_p10 = por %p6544_p3, %p6543_p2 }
 0xcc5   : > { %p6538_p12 = pnand %p6537_p13, %p8051_p1 }
 0xcc7   : > { %p6539_p4 = pneg %p6538_p12 }
 0xcc9   : > { %p6546_p8 = pnand %p6545_p10, %p6539_p4 }
 0xccb   : > { %6549 = shalt.err (!%p6546_p8)
}
 0xccc   : > { %s6550_s16 = scalar_lea.hbm %s7852_s22, 256  ;;  %s6554_s8 = scalar_lea.hbm %s8050_s17, 512 }
 0xccd   : > { %p6551_p7 = scmp.ne.s32.totalorder %s7852_s22, %s6550_s16  ;;  %p6555_p0 = scmp.lt.u32.totalorder %s7852_s22, %s8050_s17 }
 0xcce   : > { %p6556_p5 = scmp.lt.u32.totalorder %s6554_s8, %s6550_s16  ;;  %p6558_p13 = scmp.lt.u32.totalorder %s6550_s16, %s7852_s22 }
 0xccf   : > { %p6552_p6 = pnand %p6551_p7, %p8051_p1 }
 0xcd0   : > { %p6557_p11 = por %p6556_p5, %p6555_p0 }
 0xcd1   : > { %p6553_p9 = pneg %p6552_p6 }
 0xcd2   : > { %p6559_p12 = por %p6558_p13, %p6557_p11 }
 0xcd4   : > { %p6560_p4 = pnand %p6559_p12, %p6553_p9 }
 0xcd6   : > { %6563 = shalt.err (!%p6560_p4)
}
 0xcd7   : > { %5977 = dma.vmem_to_hbm [thread:$0]  (%p8051_p1), %s5029_s23, 256, %s7852_s22, %s5014_s26  }
 0xcd8 PF: > { %s8052_s19 = sld [smem:[#allocation31_spill]]  ;;  %s8053_s4 = sld [smem:[#allocation24_spill]] }
 0xcd9   : > { %s8054_s2 = sld [smem:[#allocation39_spill]] }
 0xcde   : > { %p6009_p2 = scmp.ge.s32.totalorder %s8052_s19, 2  ;;  %s5040_s29 = sand.u32 1, %s8053_s4  }
 0xcdf   : > { %p8055_p3 = scmp.ne.s32.totalorder %s8054_s2, 0  ;;  %s5041_s13 = scalar_lea.sflag [#allocation5], %s5040_s29 }
 0xce1   : > { %p6003_p10 = pnand %p6009_p2, %p8055_p3 }
 0xce3   : > { %6629 = dma.done.wait (!%p6003_p10), %s5041_s13, 256  }
 0xce4   : > { %6631 = vsyncadd (!%p6003_p10), %s5041_s13, 4294967040  ;;  %s40_s28 = sadd.s32 1, %s8052_s19   ;;  %s8056_s18 = sld [smem:[#allocation22_spill]] }
 0xce5   : > { %p37_p8 = scmp.ge.s32.totalorder %s40_s28, 6   ;;  %s8057_s19 = sld [smem:[#allocation23_spill]] }
 0xce6   : > { %s8058_s20 = sld [smem:[#allocation36_spill]]  ;;  %s8059_s21 = sld [smem:[#allocation25_spill]] }
 0xce7   : > { %s8060_s22 = sld [smem:[#allocation26_spill]]  ;;  %s8061_s23 = sld [smem:[#allocation38_spill]] }
 0xce8   : > { %s8062_s24 = sld [smem:[#allocation29_spill]]  ;;  %s8063_s25 = sld [smem:[#allocation30_spill]] }
 0xce9   : > { %s8064_s26 = sld [smem:[#allocation34_spill]]  ;;  %s8065_s27 = sld [smem:[#allocation35_spill]] }
 0xcea   :  { %39 = sbr.rel (!%p37_p8) target bundleno = 32 (0x20), region = 219 }
 0xcf1   :  { %5046 = vsyncpa [#allocation4], 1 }
 0xcf2   :  { %5048 = vsyncpa [#allocation4 + $0x1], 1 }
 0xcf3   :  { %5049 = vsyncpa [#allocation7], 1 }
 0xcf4   :  { %5051 = vsyncpa [#allocation7 + $0x1], 1 }
 0xcf5   :  { %5052 = vsyncpa [#allocation10], 1 }
 0xcf6   :  { %5054 = vsyncpa [#allocation10 + $0x1], 1 }
 0xcf7   :  { %5055 = vsyncpa [#allocation13], 1 }
 0xcf8   :  { %5057 = vsyncpa [#allocation13 + $0x1], 1 }
 0xcf9   :  { %5058 = vsyncpa [#allocation5], 1 }
 0xcfa   :  { %5060 = vsyncpa [#allocation5 + $0x1], 1 }

</bundles_post_ra>
